<compile_context>
chip_gen: v7x
topology: tpu7x:2x2x1
jax: 0.10.0
libtpu: 0.0.40
codegen_flags: <defaults>
</compile_context>

<pallas_src>
import numpy as np
import jax
import jax.numpy as jnp
from jax import lax
from jax.experimental import pallas as pl
from jax.experimental.pallas import tpu as pltpu


# ----------------------------------------------------------------------------
# Fused Pallas kernel: one grid step per batch element.
# ----------------------------------------------------------------------------
def _block1_kernel(x_ref, dw1_ref, pw1_ref, b1_ref,
                   dw2_ref, pw2_ref, b2_ref,
                   dw3_ref, w3cat_ref, b3_ref, sel_ref,
                   out_ref, pad1_ref, pad2_ref):
    _, H, W, Cin = x_ref.shape            # (1, 16, 16, 64)
    _, H2, W2, Cout = out_ref.shape       # (1, 8, 8, 128)
    Cmid = pw1_ref.shape[1]               # 128

    x = x_ref[0]                          # (H, W, 64) f32 -- also feeds the skip path

    # ---- stage 1 (rep1): depthwise 3x3 (64) -> pointwise 64->128 -> ReLU ----
    # (BatchNorm affines are pre-folded into dw1/pw1/b1.)
    pad1_ref[...] = jnp.zeros_like(pad1_ref)
    pad1_ref[1:H + 1, 1:W + 1, :] = x
    acc = jnp.zeros((H, W, Cin), jnp.float32)
    for k in range(9):
        ky, kx = divmod(k, 3)
        acc = acc + pad1_ref[ky:ky + H, kx:kx + W, :] * dw1_ref[k]
    y = jnp.dot(acc.reshape(H * W, Cin).astype(jnp.bfloat16), pw1_ref[...],
                preferred_element_type=jnp.float32)
    y = jnp.maximum(y + b1_ref[...], 0.0)                       # (HW, 128)

    # ---- stage 2 (rep2): depthwise 3x3 (128) -> pointwise 128->128 -> ReLU --
    pad2_ref[...] = jnp.zeros_like(pad2_ref)
    pad2_ref[1:H + 1, 1:W + 1, :] = y.reshape(H, W, Cmid)
    acc = jnp.zeros((H, W, Cmid), jnp.float32)
    for k in range(9):
        ky, kx = divmod(k, 3)
        acc = acc + pad2_ref[ky:ky + H, kx:kx + W, :] * dw2_ref[k]
    y = jnp.dot(acc.reshape(H * W, Cmid).astype(jnp.bfloat16), pw2_ref[...],
                preferred_element_type=jnp.float32)
    y = jnp.maximum(y + b2_ref[...], 0.0)                       # (HW, 128)

    # ---- stage 3 (rep3, stride 2) + skip branch + residual add --------------
    # Border of pad2 is still zero; only the interior needs rewriting.
    pad2_ref[1:H + 1, 1:W + 1, :] = y.reshape(H, W, Cmid)
    acc = jnp.zeros((H, W, Cmid), jnp.float32)
    for k in range(9):
        ky, kx = divmod(k, 3)
        acc = acc + pad2_ref[ky:ky + H, kx:kx + W, :] * dw3_ref[k]
    # stride-2 depthwise == full-res (stride-1) depthwise sampled at even
    # positions.  The 0/1 selection matrix `sel` subsamples BOTH the main path
    # and the skip input in one MXU pass, then a single K=192 matmul fuses
    # pointwise(128->128) + skip 1x1(64->128) + folded BN + residual add.
    cat = jnp.concatenate(
        [acc.reshape(H * W, Cmid), x.reshape(H * W, Cin)], axis=-1)  # (HW, 192)
    sub = jnp.dot(sel_ref[...], cat.astype(jnp.bfloat16),
                  preferred_element_type=jnp.float32)                # (H2*W2, 192)
    z = jnp.dot(sub.astype(jnp.bfloat16), w3cat_ref[...],
                preferred_element_type=jnp.float32) + b3_ref[...]
    out_ref[0] = z.reshape(H2, W2, Cout).astype(out_ref.dtype)


# ----------------------------------------------------------------------------
# pallas_call wrapper
# ----------------------------------------------------------------------------
def block1_forward(x_nhwc, fp):
    N, H, W, Cin = x_nhwc.shape
    H2, W2 = H // 2, W // 2
    Cmid = Cout = 128

    def rep(*shape):  # replicated (broadcast) parameter block
        return pl.BlockSpec(shape, lambda n, _d=len(shape): (0,) * _d)

    # NOTE(v7x): with the whole block fused, grid=(N,) gives each TensorCore at
    # most one step at N=2; for large images this kernel should be re-tiled
    # into H-row strips with halos to restore pipelining and fit 64 MiB VMEM.
    return pl.pallas_call(
        _block1_kernel,
        out_shape=jax.ShapeDtypeStruct((N, H2, W2, Cout), jnp.float32),
        grid=(N,),
        in_specs=[
            pl.BlockSpec((1, H, W, Cin), lambda n: (n, 0, 0, 0)),
            rep(9, Cin), rep(Cin, Cmid), rep(1, Cmid),           # stage 1
            rep(9, Cmid), rep(Cmid, Cmid), rep(1, Cmid),         # stage 2
            rep(9, Cmid), rep(Cmid + Cin, Cout), rep(1, Cout),   # stage 3 + skip
            rep(H2 * W2, H * W),                                 # stride-2 selector
        ],
        out_specs=pl.BlockSpec((1, H2, W2, Cout), lambda n: (n, 0, 0, 0)),
        scratch_shapes=[
            pltpu.VMEM((H + 2, W + 2, Cin), jnp.float32),   # padded stage-1 input
            pltpu.VMEM((H + 2, W + 2, Cmid), jnp.float32),  # padded stage-2/3 input
        ],
        compiler_params=pltpu.CompilerParams(
            dimension_semantics=("parallel",)),
    )(x_nhwc, fp["dw1"], fp["pw1"], fp["b1"],
      fp["dw2"], fp["pw2"], fp["b2"],
      fp["dw3"], fp["w3cat"], fp["b3"], fp["sel"])


# ----------------------------------------------------------------------------
# Host-side parameter setup: BN folding, weight stacking, selection matrix.
# ----------------------------------------------------------------------------
def fold_bn(bn, eps=1e-5):
    gamma, beta, mean, var = bn
    scale = gamma / jnp.sqrt(var + eps)
    shift = beta - mean * scale
    return scale, shift


def make_downsample_matrix(H, W):
    """0/1 matrix S with S[i*W2+j, (2i)*W + 2j] = 1 (even-position subsample)."""
    H2, W2 = H // 2, W // 2
    rows = np.arange(H2 * W2)
    cols = (2 * (rows // W2)) * W + 2 * (rows % W2)
    S = np.zeros((H2 * W2, H * W), np.float32)
    S[rows, cols] = 1.0
    return S


def fold_params(raw, H, W):
    s_a1, b_a1 = fold_bn(raw["bn_a1"])
    s_b1, b_b1 = fold_bn(raw["bn_b1"])
    s_a2, b_a2 = fold_bn(raw["bn_a2"])
    s_b2, b_b2 = fold_bn(raw["bn_b2"])
    s_a3, b_a3 = fold_bn(raw["bn_a3"])
    s_b3, b_b3 = fold_bn(raw["bn_b3"])
    s_sk, b_sk = fold_bn(raw["bn_sk"])

    dw1 = raw["dw1"] * s_a1[None, :]
    pw1 = raw["pw1"] * s_b1[None, :]
    b1 = (b_a1 @ pw1 + b_b1)[None, :]

    dw2 = raw["dw2"] * s_a2[None, :]
    pw2 = raw["pw2"] * s_b2[None, :]
    b2 = (b_a2 @ pw2 + b_b2)[None, :]

    dw3 = raw["dw3"] * s_a3[None, :]
    pw3 = raw["pw3"] * s_b3[None, :]
    wsk = raw["wskip"] * s_sk[None, :]
    w3cat = jnp.concatenate([pw3, wsk], axis=0)            # (192, 128)
    b3 = (b_a3 @ pw3 + b_b3 + b_sk)[None, :]

    return dict(
        dw1=dw1.astype(jnp.float32), pw1=pw1.astype(jnp.bfloat16),
        b1=b1.astype(jnp.float32),
        dw2=dw2.astype(jnp.float32), pw2=pw2.astype(jnp.bfloat16),
        b2=b2.astype(jnp.float32),
        dw3=dw3.astype(jnp.float32), w3cat=w3cat.astype(jnp.bfloat16),
        b3=b3.astype(jnp.float32),
        sel=jnp.asarray(make_downsample_matrix(H, W), jnp.bfloat16),
    )


def init_raw_params(key):
    """Synthetic parameters matching Block1's shapes (kaiming conv weights).

    PyTorch's _init_weight gives gamma=1 / beta=0; mildly random BN running
    stats are used here so the inference-mode BN folding path is exercised.
    """
    ks = jax.random.split(key, 14)

    def kaiming(k, shape, fan_in):
        return jax.random.normal(k, shape, jnp.float32) * np.sqrt(2.0 / fan_in)

    def bn_stats(k, c):
        k1, k2, k3, k4 = jax.random.split(k, 4)
        gamma = 1.0 + 0.1 * jax.random.normal(k1, (c,), jnp.float32)
        beta = 0.1 * jax.random.normal(k2, (c,), jnp.float32)
        mean = 0.1 * jax.random.normal(k3, (c,), jnp.float32)
        var = 1.0 + 0.5 * jax.random.uniform(k4, (c,), jnp.float32)
        return (gamma, beta, mean, var)

    return {
        "dw1": kaiming(ks[0], (9, 64), 9),      # depthwise weights as (tap, C)
        "pw1": kaiming(ks[1], (64, 128), 64),   # pointwise as (Cin, Cout)
        "dw2": kaiming(ks[2], (9, 128), 9),
        "pw2": kaiming(ks[3], (128, 128), 128),
        "dw3": kaiming(ks[4], (9, 128), 9),
        "pw3": kaiming(ks[5], (128, 128), 128),
        "wskip": kaiming(ks[6], (64, 128), 64),
        "bn_a1": bn_stats(ks[7], 64),
        "bn_b1": bn_stats(ks[8], 128),
        "bn_a2": bn_stats(ks[9], 128),
        "bn_b2": bn_stats(ks[10], 128),
        "bn_a3": bn_stats(ks[11], 128),
        "bn_b3": bn_stats(ks[12], 128),
        "bn_sk": bn_stats(ks[13], 128),
    }


# ----------------------------------------------------------------------------
# Pure-JAX reference (lax convolutions, unfolded BN) for correctness check.
# ----------------------------------------------------------------------------
def fixed_padding_nhwc(x, kernel_size=3, dilation=1):
    eff = kernel_size + (kernel_size - 1) * (dilation - 1)
    pad_total = eff - 1
    pb = pad_total // 2
    pe = pad_total - pb
    return jnp.pad(x, ((0, 0), (pb, pe), (pb, pe), (0, 0)))


def block1_reference(x, raw, eps=1e-5):
    def bn(v, p):
        g, b, m, var = p
        return (v - m) * (g / jnp.sqrt(var + eps)) + b

    def dwconv(v, w9, stride):
        C = v.shape[-1]
        w = w9.reshape(3, 3, C)[:, :, None, :]       # HWIO, I=1 (grouped)
        return lax.conv_general_dilated(
            v, w, (stride, stride), "VALID",
            dimension_numbers=("NHWC", "HWIO", "NHWC"),
            feature_group_count=C)

    def pwconv(v, w, stride=1):
        return lax.conv_general_dilated(
            v, w.reshape(1, 1, *w.shape), (stride, stride), "VALID",
            dimension_numbers=("NHWC", "HWIO", "NHWC"))

    h = fixed_padding_nhwc(x)
    h = bn(dwconv(h, raw["dw1"], 1), raw["bn_a1"])
    h = jax.nn.relu(bn(pwconv(h, raw["pw1"]), raw["bn_b1"]))

    h = fixed_padding_nhwc(h)
    h = bn(dwconv(h, raw["dw2"], 1), raw["bn_a2"])
    h = jax.nn.relu(bn(pwconv(h, raw["pw2"]), raw["bn_b2"]))

    h = fixed_padding_nhwc(h)
    h = bn(dwconv(h, raw["dw3"], 2), raw["bn_a3"])
    h = bn(pwconv(h, raw["pw3"]), raw["bn_b3"])

    skip = bn(pwconv(x, raw["wskip"], stride=2), raw["bn_sk"])
    return h + skip


# ----------------------------------------------------------------------------
if __name__ == "__main__":
    key = jax.random.PRNGKey(0)
    k_in, k_par = jax.random.split(key)

    # PyTorch-style NCHW input (2, 64, 16, 16); kernel runs NHWC.
    inp_nchw = jax.random.normal(k_in, (2, 64, 16, 16), jnp.float32)
    inp_nhwc = jnp.transpose(inp_nchw, (0, 2, 3, 1))

    raw = init_raw_params(k_par)
    fp = fold_params(raw, H=16, W=16)

    fwd = jax.jit(block1_forward)
    out_nhwc = jax.block_until_ready(fwd(inp_nhwc, fp))
    out_nchw = jnp.transpose(out_nhwc, (0, 3, 1, 2))
    assert out_nchw.shape == (2, 128, 8, 8), out_nchw.shape

    # Correctness vs. a pure-JAX f32 reference with unfolded BN.  Tolerance is
    # lenient because the kernel uses bf16 MXU operands (f32 accumulation).
    ref = block1_reference(inp_nhwc, raw)
    np.testing.assert_allclose(np.asarray(out_nhwc), np.asarray(ref),
                               rtol=5e-2, atol=1e-1)

    # TODO(synk): BatchNorm is inference-mode (running stats folded into the
    # conv weights); PyTorch train-mode batch statistics / running-stat
    # updates are not reproduced.
    print("KERNEL_OK")
</pallas_src>

<mosaic_0001>
module attributes {stable_mosaic.version = 11 : i64} {
  func.func @_block1_kernel(%arg0: i32, %arg1: memref<1x16x16x64xf32, #tpu.memory_space<vmem>>, %arg2: memref<9x64xf32, #tpu.memory_space<vmem>>, %arg3: memref<64x128xbf16, #tpu.memory_space<vmem>>, %arg4: memref<1x128xf32, #tpu.memory_space<vmem>>, %arg5: memref<9x128xf32, #tpu.memory_space<vmem>>, %arg6: memref<128x128xbf16, #tpu.memory_space<vmem>>, %arg7: memref<1x128xf32, #tpu.memory_space<vmem>>, %arg8: memref<9x128xf32, #tpu.memory_space<vmem>>, %arg9: memref<192x128xbf16, #tpu.memory_space<vmem>>, %arg10: memref<1x128xf32, #tpu.memory_space<vmem>>, %arg11: memref<64x256xbf16, #tpu.memory_space<vmem>>, %arg12: memref<1x8x8x128xf32, #tpu.memory_space<vmem>>, %arg13: memref<18x18x64xf32, #tpu.memory_space<vmem>>, %arg14: memref<18x18x128xf32, #tpu.memory_space<vmem>>) attributes {dimension_semantics = [#tpu.dimension_semantics<parallel>], iteration_bounds = array<i64: 2>, scalar_prefetch = 0 : i64, scratch_operands = 2 : i64, tpu.core_type = #tpu.core_type<tc>, window_params = [{transform_indices = @transform_0, window_bounds = array<i64: 1, 16, 16, 64>}, {pipeline_mode = #tpu.pipeline_mode<synchronous>, transform_indices = @transform_1, window_bounds = array<i64: 9, 64>}, {pipeline_mode = #tpu.pipeline_mode<synchronous>, transform_indices = @transform_2, window_bounds = array<i64: 64, 128>}, {pipeline_mode = #tpu.pipeline_mode<synchronous>, transform_indices = @transform_3, window_bounds = array<i64: 1, 128>}, {pipeline_mode = #tpu.pipeline_mode<synchronous>, transform_indices = @transform_4, window_bounds = array<i64: 9, 128>}, {pipeline_mode = #tpu.pipeline_mode<synchronous>, transform_indices = @transform_5, window_bounds = array<i64: 128, 128>}, {pipeline_mode = #tpu.pipeline_mode<synchronous>, transform_indices = @transform_6, window_bounds = array<i64: 1, 128>}, {pipeline_mode = #tpu.pipeline_mode<synchronous>, transform_indices = @transform_7, window_bounds = array<i64: 9, 128>}, {pipeline_mode = #tpu.pipeline_mode<synchronous>, transform_indices = @transform_8, window_bounds = array<i64: 192, 128>}, {pipeline_mode = #tpu.pipeline_mode<synchronous>, transform_indices = @transform_9, window_bounds = array<i64: 1, 128>}, {pipeline_mode = #tpu.pipeline_mode<synchronous>, transform_indices = @transform_10, window_bounds = array<i64: 64, 256>}, {transform_indices = @transform_11, window_bounds = array<i64: 1, 8, 8, 128>}]} {
    %c0 = arith.constant 0 : index
    %c0_0 = arith.constant 0 : index
    %c0_1 = arith.constant 0 : index
    %c0_2 = arith.constant 0 : index
    %0 = vector.load %arg1[%c0, %c0_0, %c0_1, %c0_2] : memref<1x16x16x64xf32, #tpu.memory_space<vmem>>, vector<1x16x16x64xf32>
    %1 = vector.shape_cast %0 : vector<1x16x16x64xf32> to vector<16x16x64xf32>
    %cst = arith.constant 0.000000e+00 : f32
    %2 = vector.broadcast %cst : f32 to vector<18x18x64xf32>
    %c0_3 = arith.constant 0 : index
    %c0_4 = arith.constant 0 : index
    %c0_5 = arith.constant 0 : index
    %3 = vector.load %arg13[%c0_3, %c0_4, %c0_5] : memref<18x18x64xf32, #tpu.memory_space<vmem>>, vector<18x18x64xf32>
    tpu.vector_store %arg13[%c0_3, %c0_4, %c0_5], %2 {strides = array<i32>} : memref<18x18x64xf32, #tpu.memory_space<vmem>>, vector<18x18x64xf32>,
    %c1 = arith.constant 1 : index
    %c1_6 = arith.constant 1 : index
    %c0_7 = arith.constant 0 : index
    %4 = vector.load %arg13[%c1, %c1_6, %c0_7] : memref<18x18x64xf32, #tpu.memory_space<vmem>>, vector<16x16x64xf32>
    tpu.vector_store %arg13[%c1, %c1_6, %c0_7], %1 {strides = array<i32>} : memref<18x18x64xf32, #tpu.memory_space<vmem>>, vector<16x16x64xf32>,
    %cst_8 = arith.constant 0.000000e+00 : f32
    %5 = vector.broadcast %cst_8 : f32 to vector<16x16x64xf32>
    %c0_9 = arith.constant 0 : index
    %c0_10 = arith.constant 0 : index
    %c0_11 = arith.constant 0 : index
    %6 = vector.load %arg13[%c0_9, %c0_10, %c0_11] : memref<18x18x64xf32, #tpu.memory_space<vmem>>, vector<16x16x64xf32>
    %c0_12 = arith.constant 0 : index
    %c0_13 = arith.constant 0 : index
    %7 = vector.load %arg2[%c0_12, %c0_13] : memref<9x64xf32, #tpu.memory_space<vmem>>, vector<1x64xf32>
    %8 = vector.shape_cast %7 : vector<1x64xf32> to vector<64xf32>
    %9 = vector.shape_cast %8 : vector<64xf32> to vector<1x1x64xf32>
    %10 = vector.broadcast %9 : vector<1x1x64xf32> to vector<16x16x64xf32>
    %11 = arith.mulf %6, %10 : vector<16x16x64xf32>
    %12 = arith.addf %5, %11 : vector<16x16x64xf32>
    %c0_14 = arith.constant 0 : index
    %c1_15 = arith.constant 1 : index
    %c0_16 = arith.constant 0 : index
    %13 = vector.load %arg13[%c0_14, %c1_15, %c0_16] : memref<18x18x64xf32, #tpu.memory_space<vmem>>, vector<16x16x64xf32>
    %c1_17 = arith.constant 1 : index
    %c0_18 = arith.constant 0 : index
    %14 = vector.load %arg2[%c1_17, %c0_18] : memref<9x64xf32, #tpu.memory_space<vmem>>, vector<1x64xf32>
    %15 = vector.shape_cast %14 : vector<1x64xf32> to vector<64xf32>
    %16 = vector.shape_cast %15 : vector<64xf32> to vector<1x1x64xf32>
    %17 = vector.broadcast %16 : vector<1x1x64xf32> to vector<16x16x64xf32>
    %18 = arith.mulf %13, %17 : vector<16x16x64xf32>
    %19 = arith.addf %12, %18 : vector<16x16x64xf32>
    %c0_19 = arith.constant 0 : index
    %c2 = arith.constant 2 : index
    %c0_20 = arith.constant 0 : index
    %20 = vector.load %arg13[%c0_19, %c2, %c0_20] : memref<18x18x64xf32, #tpu.memory_space<vmem>>, vector<16x16x64xf32>
    %c2_21 = arith.constant 2 : index
    %c0_22 = arith.constant 0 : index
    %21 = vector.load %arg2[%c2_21, %c0_22] : memref<9x64xf32, #tpu.memory_space<vmem>>, vector<1x64xf32>
    %22 = vector.shape_cast %21 : vector<1x64xf32> to vector<64xf32>
    %23 = vector.shape_cast %22 : vector<64xf32> to vector<1x1x64xf32>
    %24 = vector.broadcast %23 : vector<1x1x64xf32> to vector<16x16x64xf32>
    %25 = arith.mulf %20, %24 : vector<16x16x64xf32>
    %26 = arith.addf %19, %25 : vector<16x16x64xf32>
    %c1_23 = arith.constant 1 : index
    %c0_24 = arith.constant 0 : index
    %c0_25 = arith.constant 0 : index
    %27 = vector.load %arg13[%c1_23, %c0_24, %c0_25] : memref<18x18x64xf32, #tpu.memory_space<vmem>>, vector<16x16x64xf32>
    %c3 = arith.constant 3 : index
    %c0_26 = arith.constant 0 : index
    %28 = vector.load %arg2[%c3, %c0_26] : memref<9x64xf32, #tpu.memory_space<vmem>>, vector<1x64xf32>
    %29 = vector.shape_cast %28 : vector<1x64xf32> to vector<64xf32>
    %30 = vector.shape_cast %29 : vector<64xf32> to vector<1x1x64xf32>
    %31 = vector.broadcast %30 : vector<1x1x64xf32> to vector<16x16x64xf32>
    %32 = arith.mulf %27, %31 : vector<16x16x64xf32>
    %33 = arith.addf %26, %32 : vector<16x16x64xf32>
    %c1_27 = arith.constant 1 : index
    %c1_28 = arith.constant 1 : index
    %c0_29 = arith.constant 0 : index
    %34 = vector.load %arg13[%c1_27, %c1_28, %c0_29] : memref<18x18x64xf32, #tpu.memory_space<vmem>>, vector<16x16x64xf32>
    %c4 = arith.constant 4 : index
    %c0_30 = arith.constant 0 : index
    %35 = vector.load %arg2[%c4, %c0_30] : memref<9x64xf32, #tpu.memory_space<vmem>>, vector<1x64xf32>
    %36 = vector.shape_cast %35 : vector<1x64xf32> to vector<64xf32>
    %37 = vector.shape_cast %36 : vector<64xf32> to vector<1x1x64xf32>
    %38 = vector.broadcast %37 : vector<1x1x64xf32> to vector<16x16x64xf32>
    %39 = arith.mulf %34, %38 : vector<16x16x64xf32>
    %40 = arith.addf %33, %39 : vector<16x16x64xf32>
    %c1_31 = arith.constant 1 : index
    %c2_32 = arith.constant 2 : index
    %c0_33 = arith.constant 0 : index
    %41 = vector.load %arg13[%c1_31, %c2_32, %c0_33] : memref<18x18x64xf32, #tpu.memory_space<vmem>>, vector<16x16x64xf32>
    %c5 = arith.constant 5 : index
    %c0_34 = arith.constant 0 : index
    %42 = vector.load %arg2[%c5, %c0_34] : memref<9x64xf32, #tpu.memory_space<vmem>>, vector<1x64xf32>
    %43 = vector.shape_cast %42 : vector<1x64xf32> to vector<64xf32>
    %44 = vector.shape_cast %43 : vector<64xf32> to vector<1x1x64xf32>
    %45 = vector.broadcast %44 : vector<1x1x64xf32> to vector<16x16x64xf32>
    %46 = arith.mulf %41, %45 : vector<16x16x64xf32>
    %47 = arith.addf %40, %46 : vector<16x16x64xf32>
    %c2_35 = arith.constant 2 : index
    %c0_36 = arith.constant 0 : index
    %c0_37 = arith.constant 0 : index
    %48 = vector.load %arg13[%c2_35, %c0_36, %c0_37] : memref<18x18x64xf32, #tpu.memory_space<vmem>>, vector<16x16x64xf32>
    %c6 = arith.constant 6 : index
    %c0_38 = arith.constant 0 : index
    %49 = vector.load %arg2[%c6, %c0_38] : memref<9x64xf32, #tpu.memory_space<vmem>>, vector<1x64xf32>
    %50 = vector.shape_cast %49 : vector<1x64xf32> to vector<64xf32>
    %51 = vector.shape_cast %50 : vector<64xf32> to vector<1x1x64xf32>
    %52 = vector.broadcast %51 : vector<1x1x64xf32> to vector<16x16x64xf32>
    %53 = arith.mulf %48, %52 : vector<16x16x64xf32>
    %54 = arith.addf %47, %53 : vector<16x16x64xf32>
    %c2_39 = arith.constant 2 : index
    %c1_40 = arith.constant 1 : index
    %c0_41 = arith.constant 0 : index
    %55 = vector.load %arg13[%c2_39, %c1_40, %c0_41] : memref<18x18x64xf32, #tpu.memory_space<vmem>>, vector<16x16x64xf32>
    %c7 = arith.constant 7 : index
    %c0_42 = arith.constant 0 : index
    %56 = vector.load %arg2[%c7, %c0_42] : memref<9x64xf32, #tpu.memory_space<vmem>>, vector<1x64xf32>
    %57 = vector.shape_cast %56 : vector<1x64xf32> to vector<64xf32>
    %58 = vector.shape_cast %57 : vector<64xf32> to vector<1x1x64xf32>
    %59 = vector.broadcast %58 : vector<1x1x64xf32> to vector<16x16x64xf32>
    %60 = arith.mulf %55, %59 : vector<16x16x64xf32>
    %61 = arith.addf %54, %60 : vector<16x16x64xf32>
    %c2_43 = arith.constant 2 : index
    %c2_44 = arith.constant 2 : index
    %c0_45 = arith.constant 0 : index
    %62 = vector.load %arg13[%c2_43, %c2_44, %c0_45] : memref<18x18x64xf32, #tpu.memory_space<vmem>>, vector<16x16x64xf32>
    %c8 = arith.constant 8 : index
    %c0_46 = arith.constant 0 : index
    %63 = vector.load %arg2[%c8, %c0_46] : memref<9x64xf32, #tpu.memory_space<vmem>>, vector<1x64xf32>
    %64 = vector.shape_cast %63 : vector<1x64xf32> to vector<64xf32>
    %65 = vector.shape_cast %64 : vector<64xf32> to vector<1x1x64xf32>
    %66 = vector.broadcast %65 : vector<1x1x64xf32> to vector<16x16x64xf32>
    %67 = arith.mulf %62, %66 : vector<16x16x64xf32>
    %68 = arith.addf %61, %67 : vector<16x16x64xf32>
    %69 = vector.shape_cast %68 : vector<16x16x64xf32> to vector<256x64xf32>
    %70 = arith.truncf %69 : vector<256x64xf32> to vector<256x64xbf16>
    %c0_47 = arith.constant 0 : index
    %c0_48 = arith.constant 0 : index
    %71 = vector.load %arg3[%c0_47, %c0_48] : memref<64x128xbf16, #tpu.memory_space<vmem>>, vector<64x128xbf16>
    %cst_49 = arith.constant dense<0.000000e+00> : vector<256x128xf32>
    %72 = tpu.matmul %70, %71, %cst_49 {dimension_numbers = #tpu.dot_dimension_numbers<[1], [0], [0], [1], [0, 0, 1, 1], [], []>} : vector<256x64xbf16>, vector<64x128xbf16>, vector<256x128xf32> -> vector<256x128xf32>
    %c0_50 = arith.constant 0 : index
    %c0_51 = arith.constant 0 : index
    %73 = vector.load %arg4[%c0_50, %c0_51] : memref<1x128xf32, #tpu.memory_space<vmem>>, vector<1x128xf32>
    %74 = vector.broadcast %73 : vector<1x128xf32> to vector<256x128xf32>
    %75 = arith.addf %72, %74 : vector<256x128xf32>
    %cst_52 = arith.constant 0.000000e+00 : f32
    %76 = vector.broadcast %cst_52 : f32 to vector<256x128xf32>
    %77 = arith.maximumf %75, %76 : vector<256x128xf32>
    %cst_53 = arith.constant 0.000000e+00 : f32
    %78 = vector.broadcast %cst_53 : f32 to vector<18x18x128xf32>
    %c0_54 = arith.constant 0 : index
    %c0_55 = arith.constant 0 : index
    %c0_56 = arith.constant 0 : index
    %79 = vector.load %arg14[%c0_54, %c0_55, %c0_56] : memref<18x18x128xf32, #tpu.memory_space<vmem>>, vector<18x18x128xf32>
    tpu.vector_store %arg14[%c0_54, %c0_55, %c0_56], %78 {strides = array<i32>} : memref<18x18x128xf32, #tpu.memory_space<vmem>>, vector<18x18x128xf32>,
    %80 = vector.shape_cast %77 : vector<256x128xf32> to vector<16x16x128xf32>
    %c1_57 = arith.constant 1 : index
    %c1_58 = arith.constant 1 : index
    %c0_59 = arith.constant 0 : index
    %81 = vector.load %arg14[%c1_57, %c1_58, %c0_59] : memref<18x18x128xf32, #tpu.memory_space<vmem>>, vector<16x16x128xf32>
    tpu.vector_store %arg14[%c1_57, %c1_58, %c0_59], %80 {strides = array<i32>} : memref<18x18x128xf32, #tpu.memory_space<vmem>>, vector<16x16x128xf32>,
    %cst_60 = arith.constant 0.000000e+00 : f32
    %82 = vector.broadcast %cst_60 : f32 to vector<16x16x128xf32>
    %c0_61 = arith.constant 0 : index
    %c0_62 = arith.constant 0 : index
    %c0_63 = arith.constant 0 : index
    %83 = vector.load %arg14[%c0_61, %c0_62, %c0_63] : memref<18x18x128xf32, #tpu.memory_space<vmem>>, vector<16x16x128xf32>
    %c0_64 = arith.constant 0 : index
    %c0_65 = arith.constant 0 : index
    %84 = vector.load %arg5[%c0_64, %c0_65] : memref<9x128xf32, #tpu.memory_space<vmem>>, vector<1x128xf32>
    %85 = vector.shape_cast %84 : vector<1x128xf32> to vector<128xf32>
    %86 = vector.shape_cast %85 : vector<128xf32> to vector<1x1x128xf32>
    %87 = vector.broadcast %86 : vector<1x1x128xf32> to vector<16x16x128xf32>
    %88 = arith.mulf %83, %87 : vector<16x16x128xf32>
    %89 = arith.addf %82, %88 : vector<16x16x128xf32>
    %c0_66 = arith.constant 0 : index
    %c1_67 = arith.constant 1 : index
    %c0_68 = arith.constant 0 : index
    %90 = vector.load %arg14[%c0_66, %c1_67, %c0_68] : memref<18x18x128xf32, #tpu.memory_space<vmem>>, vector<16x16x128xf32>
    %c1_69 = arith.constant 1 : index
    %c0_70 = arith.constant 0 : index
    %91 = vector.load %arg5[%c1_69, %c0_70] : memref<9x128xf32, #tpu.memory_space<vmem>>, vector<1x128xf32>
    %92 = vector.shape_cast %91 : vector<1x128xf32> to vector<128xf32>
    %93 = vector.shape_cast %92 : vector<128xf32> to vector<1x1x128xf32>
    %94 = vector.broadcast %93 : vector<1x1x128xf32> to vector<16x16x128xf32>
    %95 = arith.mulf %90, %94 : vector<16x16x128xf32>
    %96 = arith.addf %89, %95 : vector<16x16x128xf32>
    %c0_71 = arith.constant 0 : index
    %c2_72 = arith.constant 2 : index
    %c0_73 = arith.constant 0 : index
    %97 = vector.load %arg14[%c0_71, %c2_72, %c0_73] : memref<18x18x128xf32, #tpu.memory_space<vmem>>, vector<16x16x128xf32>
    %c2_74 = arith.constant 2 : index
    %c0_75 = arith.constant 0 : index
    %98 = vector.load %arg5[%c2_74, %c0_75] : memref<9x128xf32, #tpu.memory_space<vmem>>, vector<1x128xf32>
    %99 = vector.shape_cast %98 : vector<1x128xf32> to vector<128xf32>
    %100 = vector.shape_cast %99 : vector<128xf32> to vector<1x1x128xf32>
    %101 = vector.broadcast %100 : vector<1x1x128xf32> to vector<16x16x128xf32>
    %102 = arith.mulf %97, %101 : vector<16x16x128xf32>
    %103 = arith.addf %96, %102 : vector<16x16x128xf32>
    %c1_76 = arith.constant 1 : index
    %c0_77 = arith.constant 0 : index
    %c0_78 = arith.constant 0 : index
    %104 = vector.load %arg14[%c1_76, %c0_77, %c0_78] : memref<18x18x128xf32, #tpu.memory_space<vmem>>, vector<16x16x128xf32>
    %c3_79 = arith.constant 3 : index
    %c0_80 = arith.constant 0 : index
    %105 = vector.load %arg5[%c3_79, %c0_80] : memref<9x128xf32, #tpu.memory_space<vmem>>, vector<1x128xf32>
    %106 = vector.shape_cast %105 : vector<1x128xf32> to vector<128xf32>
    %107 = vector.shape_cast %106 : vector<128xf32> to vector<1x1x128xf32>
    %108 = vector.broadcast %107 : vector<1x1x128xf32> to vector<16x16x128xf32>
    %109 = arith.mulf %104, %108 : vector<16x16x128xf32>
    %110 = arith.addf %103, %109 : vector<16x16x128xf32>
    %c1_81 = arith.constant 1 : index
    %c1_82 = arith.constant 1 : index
    %c0_83 = arith.constant 0 : index
    %111 = vector.load %arg14[%c1_81, %c1_82, %c0_83] : memref<18x18x128xf32, #tpu.memory_space<vmem>>, vector<16x16x128xf32>
    %c4_84 = arith.constant 4 : index
    %c0_85 = arith.constant 0 : index
    %112 = vector.load %arg5[%c4_84, %c0_85] : memref<9x128xf32, #tpu.memory_space<vmem>>, vector<1x128xf32>
    %113 = vector.shape_cast %112 : vector<1x128xf32> to vector<128xf32>
    %114 = vector.shape_cast %113 : vector<128xf32> to vector<1x1x128xf32>
    %115 = vector.broadcast %114 : vector<1x1x128xf32> to vector<16x16x128xf32>
    %116 = arith.mulf %111, %115 : vector<16x16x128xf32>
    %117 = arith.addf %110, %116 : vector<16x16x128xf32>
    %c1_86 = arith.constant 1 : index
    %c2_87 = arith.constant 2 : index
    %c0_88 = arith.constant 0 : index
    %118 = vector.load %arg14[%c1_86, %c2_87, %c0_88] : memref<18x18x128xf32, #tpu.memory_space<vmem>>, vector<16x16x128xf32>
    %c5_89 = arith.constant 5 : index
    %c0_90 = arith.constant 0 : index
    %119 = vector.load %arg5[%c5_89, %c0_90] : memref<9x128xf32, #tpu.memory_space<vmem>>, vector<1x128xf32>
    %120 = vector.shape_cast %119 : vector<1x128xf32> to vector<128xf32>
    %121 = vector.shape_cast %120 : vector<128xf32> to vector<1x1x128xf32>
    %122 = vector.broadcast %121 : vector<1x1x128xf32> to vector<16x16x128xf32>
    %123 = arith.mulf %118, %122 : vector<16x16x128xf32>
    %124 = arith.addf %117, %123 : vector<16x16x128xf32>
    %c2_91 = arith.constant 2 : index
    %c0_92 = arith.constant 0 : index
    %c0_93 = arith.constant 0 : index
    %125 = vector.load %arg14[%c2_91, %c0_92, %c0_93] : memref<18x18x128xf32, #tpu.memory_space<vmem>>, vector<16x16x128xf32>
    %c6_94 = arith.constant 6 : index
    %c0_95 = arith.constant 0 : index
    %126 = vector.load %arg5[%c6_94, %c0_95] : memref<9x128xf32, #tpu.memory_space<vmem>>, vector<1x128xf32>
    %127 = vector.shape_cast %126 : vector<1x128xf32> to vector<128xf32>
    %128 = vector.shape_cast %127 : vector<128xf32> to vector<1x1x128xf32>
    %129 = vector.broadcast %128 : vector<1x1x128xf32> to vector<16x16x128xf32>
    %130 = arith.mulf %125, %129 : vector<16x16x128xf32>
    %131 = arith.addf %124, %130 : vector<16x16x128xf32>
    %c2_96 = arith.constant 2 : index
    %c1_97 = arith.constant 1 : index
    %c0_98 = arith.constant 0 : index
    %132 = vector.load %arg14[%c2_96, %c1_97, %c0_98] : memref<18x18x128xf32, #tpu.memory_space<vmem>>, vector<16x16x128xf32>
    %c7_99 = arith.constant 7 : index
    %c0_100 = arith.constant 0 : index
    %133 = vector.load %arg5[%c7_99, %c0_100] : memref<9x128xf32, #tpu.memory_space<vmem>>, vector<1x128xf32>
    %134 = vector.shape_cast %133 : vector<1x128xf32> to vector<128xf32>
    %135 = vector.shape_cast %134 : vector<128xf32> to vector<1x1x128xf32>
    %136 = vector.broadcast %135 : vector<1x1x128xf32> to vector<16x16x128xf32>
    %137 = arith.mulf %132, %136 : vector<16x16x128xf32>
    %138 = arith.addf %131, %137 : vector<16x16x128xf32>
    %c2_101 = arith.constant 2 : index
    %c2_102 = arith.constant 2 : index
    %c0_103 = arith.constant 0 : index
    %139 = vector.load %arg14[%c2_101, %c2_102, %c0_103] : memref<18x18x128xf32, #tpu.memory_space<vmem>>, vector<16x16x128xf32>
    %c8_104 = arith.constant 8 : index
    %c0_105 = arith.constant 0 : index
    %140 = vector.load %arg5[%c8_104, %c0_105] : memref<9x128xf32, #tpu.memory_space<vmem>>, vector<1x128xf32>
    %141 = vector.shape_cast %140 : vector<1x128xf32> to vector<128xf32>
    %142 = vector.shape_cast %141 : vector<128xf32> to vector<1x1x128xf32>
    %143 = vector.broadcast %142 : vector<1x1x128xf32> to vector<16x16x128xf32>
    %144 = arith.mulf %139, %143 : vector<16x16x128xf32>
    %145 = arith.addf %138, %144 : vector<16x16x128xf32>
    %146 = vector.shape_cast %145 : vector<16x16x128xf32> to vector<256x128xf32>
    %147 = arith.truncf %146 : vector<256x128xf32> to vector<256x128xbf16>
    %c0_106 = arith.constant 0 : index
    %c0_107 = arith.constant 0 : index
    %148 = vector.load %arg6[%c0_106, %c0_107] : memref<128x128xbf16, #tpu.memory_space<vmem>>, vector<128x128xbf16>
    %cst_108 = arith.constant dense<0.000000e+00> : vector<256x128xf32>
    %149 = tpu.matmul %147, %148, %cst_108 {dimension_numbers = #tpu.dot_dimension_numbers<[1], [0], [0], [1], [0, 0, 1, 1], [], []>} : vector<256x128xbf16>, vector<128x128xbf16>, vector<256x128xf32> -> vector<256x128xf32>
    %c0_109 = arith.constant 0 : index
    %c0_110 = arith.constant 0 : index
    %150 = vector.load %arg7[%c0_109, %c0_110] : memref<1x128xf32, #tpu.memory_space<vmem>>, vector<1x128xf32>
    %151 = vector.broadcast %150 : vector<1x128xf32> to vector<256x128xf32>
    %152 = arith.addf %149, %151 : vector<256x128xf32>
    %cst_111 = arith.constant 0.000000e+00 : f32
    %153 = vector.broadcast %cst_111 : f32 to vector<256x128xf32>
    %154 = arith.maximumf %152, %153 : vector<256x128xf32>
    %155 = vector.shape_cast %154 : vector<256x128xf32> to vector<16x16x128xf32>
    %c1_112 = arith.constant 1 : index
    %c1_113 = arith.constant 1 : index
    %c0_114 = arith.constant 0 : index
    %156 = vector.load %arg14[%c1_112, %c1_113, %c0_114] : memref<18x18x128xf32, #tpu.memory_space<vmem>>, vector<16x16x128xf32>
    tpu.vector_store %arg14[%c1_112, %c1_113, %c0_114], %155 {strides = array<i32>} : memref<18x18x128xf32, #tpu.memory_space<vmem>>, vector<16x16x128xf32>,
    %cst_115 = arith.constant 0.000000e+00 : f32
    %157 = vector.broadcast %cst_115 : f32 to vector<16x16x128xf32>
    %c0_116 = arith.constant 0 : index
    %c0_117 = arith.constant 0 : index
    %c0_118 = arith.constant 0 : index
    %158 = vector.load %arg14[%c0_116, %c0_117, %c0_118] : memref<18x18x128xf32, #tpu.memory_space<vmem>>, vector<16x16x128xf32>
    %c0_119 = arith.constant 0 : index
    %c0_120 = arith.constant 0 : index
    %159 = vector.load %arg8[%c0_119, %c0_120] : memref<9x128xf32, #tpu.memory_space<vmem>>, vector<1x128xf32>
    %160 = vector.shape_cast %159 : vector<1x128xf32> to vector<128xf32>
    %161 = vector.shape_cast %160 : vector<128xf32> to vector<1x1x128xf32>
    %162 = vector.broadcast %161 : vector<1x1x128xf32> to vector<16x16x128xf32>
    %163 = arith.mulf %158, %162 : vector<16x16x128xf32>
    %164 = arith.addf %157, %163 : vector<16x16x128xf32>
    %c0_121 = arith.constant 0 : index
    %c1_122 = arith.constant 1 : index
    %c0_123 = arith.constant 0 : index
    %165 = vector.load %arg14[%c0_121, %c1_122, %c0_123] : memref<18x18x128xf32, #tpu.memory_space<vmem>>, vector<16x16x128xf32>
    %c1_124 = arith.constant 1 : index
    %c0_125 = arith.constant 0 : index
    %166 = vector.load %arg8[%c1_124, %c0_125] : memref<9x128xf32, #tpu.memory_space<vmem>>, vector<1x128xf32>
    %167 = vector.shape_cast %166 : vector<1x128xf32> to vector<128xf32>
    %168 = vector.shape_cast %167 : vector<128xf32> to vector<1x1x128xf32>
    %169 = vector.broadcast %168 : vector<1x1x128xf32> to vector<16x16x128xf32>
    %170 = arith.mulf %165, %169 : vector<16x16x128xf32>
    %171 = arith.addf %164, %170 : vector<16x16x128xf32>
    %c0_126 = arith.constant 0 : index
    %c2_127 = arith.constant 2 : index
    %c0_128 = arith.constant 0 : index
    %172 = vector.load %arg14[%c0_126, %c2_127, %c0_128] : memref<18x18x128xf32, #tpu.memory_space<vmem>>, vector<16x16x128xf32>
    %c2_129 = arith.constant 2 : index
    %c0_130 = arith.constant 0 : index
    %173 = vector.load %arg8[%c2_129, %c0_130] : memref<9x128xf32, #tpu.memory_space<vmem>>, vector<1x128xf32>
    %174 = vector.shape_cast %173 : vector<1x128xf32> to vector<128xf32>
    %175 = vector.shape_cast %174 : vector<128xf32> to vector<1x1x128xf32>
    %176 = vector.broadcast %175 : vector<1x1x128xf32> to vector<16x16x128xf32>
    %177 = arith.mulf %172, %176 : vector<16x16x128xf32>
    %178 = arith.addf %171, %177 : vector<16x16x128xf32>
    %c1_131 = arith.constant 1 : index
    %c0_132 = arith.constant 0 : index
    %c0_133 = arith.constant 0 : index
    %179 = vector.load %arg14[%c1_131, %c0_132, %c0_133] : memref<18x18x128xf32, #tpu.memory_space<vmem>>, vector<16x16x128xf32>
    %c3_134 = arith.constant 3 : index
    %c0_135 = arith.constant 0 : index
    %180 = vector.load %arg8[%c3_134, %c0_135] : memref<9x128xf32, #tpu.memory_space<vmem>>, vector<1x128xf32>
    %181 = vector.shape_cast %180 : vector<1x128xf32> to vector<128xf32>
    %182 = vector.shape_cast %181 : vector<128xf32> to vector<1x1x128xf32>
    %183 = vector.broadcast %182 : vector<1x1x128xf32> to vector<16x16x128xf32>
    %184 = arith.mulf %179, %183 : vector<16x16x128xf32>
    %185 = arith.addf %178, %184 : vector<16x16x128xf32>
    %c1_136 = arith.constant 1 : index
    %c1_137 = arith.constant 1 : index
    %c0_138 = arith.constant 0 : index
    %186 = vector.load %arg14[%c1_136, %c1_137, %c0_138] : memref<18x18x128xf32, #tpu.memory_space<vmem>>, vector<16x16x128xf32>
    %c4_139 = arith.constant 4 : index
    %c0_140 = arith.constant 0 : index
    %187 = vector.load %arg8[%c4_139, %c0_140] : memref<9x128xf32, #tpu.memory_space<vmem>>, vector<1x128xf32>
    %188 = vector.shape_cast %187 : vector<1x128xf32> to vector<128xf32>
    %189 = vector.shape_cast %188 : vector<128xf32> to vector<1x1x128xf32>
    %190 = vector.broadcast %189 : vector<1x1x128xf32> to vector<16x16x128xf32>
    %191 = arith.mulf %186, %190 : vector<16x16x128xf32>
    %192 = arith.addf %185, %191 : vector<16x16x128xf32>
    %c1_141 = arith.constant 1 : index
    %c2_142 = arith.constant 2 : index
    %c0_143 = arith.constant 0 : index
    %193 = vector.load %arg14[%c1_141, %c2_142, %c0_143] : memref<18x18x128xf32, #tpu.memory_space<vmem>>, vector<16x16x128xf32>
    %c5_144 = arith.constant 5 : index
    %c0_145 = arith.constant 0 : index
    %194 = vector.load %arg8[%c5_144, %c0_145] : memref<9x128xf32, #tpu.memory_space<vmem>>, vector<1x128xf32>
    %195 = vector.shape_cast %194 : vector<1x128xf32> to vector<128xf32>
    %196 = vector.shape_cast %195 : vector<128xf32> to vector<1x1x128xf32>
    %197 = vector.broadcast %196 : vector<1x1x128xf32> to vector<16x16x128xf32>
    %198 = arith.mulf %193, %197 : vector<16x16x128xf32>
    %199 = arith.addf %192, %198 : vector<16x16x128xf32>
    %c2_146 = arith.constant 2 : index
    %c0_147 = arith.constant 0 : index
    %c0_148 = arith.constant 0 : index
    %200 = vector.load %arg14[%c2_146, %c0_147, %c0_148] : memref<18x18x128xf32, #tpu.memory_space<vmem>>, vector<16x16x128xf32>
    %c6_149 = arith.constant 6 : index
    %c0_150 = arith.constant 0 : index
    %201 = vector.load %arg8[%c6_149, %c0_150] : memref<9x128xf32, #tpu.memory_space<vmem>>, vector<1x128xf32>
    %202 = vector.shape_cast %201 : vector<1x128xf32> to vector<128xf32>
    %203 = vector.shape_cast %202 : vector<128xf32> to vector<1x1x128xf32>
    %204 = vector.broadcast %203 : vector<1x1x128xf32> to vector<16x16x128xf32>
    %205 = arith.mulf %200, %204 : vector<16x16x128xf32>
    %206 = arith.addf %199, %205 : vector<16x16x128xf32>
    %c2_151 = arith.constant 2 : index
    %c1_152 = arith.constant 1 : index
    %c0_153 = arith.constant 0 : index
    %207 = vector.load %arg14[%c2_151, %c1_152, %c0_153] : memref<18x18x128xf32, #tpu.memory_space<vmem>>, vector<16x16x128xf32>
    %c7_154 = arith.constant 7 : index
    %c0_155 = arith.constant 0 : index
    %208 = vector.load %arg8[%c7_154, %c0_155] : memref<9x128xf32, #tpu.memory_space<vmem>>, vector<1x128xf32>
    %209 = vector.shape_cast %208 : vector<1x128xf32> to vector<128xf32>
    %210 = vector.shape_cast %209 : vector<128xf32> to vector<1x1x128xf32>
    %211 = vector.broadcast %210 : vector<1x1x128xf32> to vector<16x16x128xf32>
    %212 = arith.mulf %207, %211 : vector<16x16x128xf32>
    %213 = arith.addf %206, %212 : vector<16x16x128xf32>
    %c2_156 = arith.constant 2 : index
    %c2_157 = arith.constant 2 : index
    %c0_158 = arith.constant 0 : index
    %214 = vector.load %arg14[%c2_156, %c2_157, %c0_158] : memref<18x18x128xf32, #tpu.memory_space<vmem>>, vector<16x16x128xf32>
    %c8_159 = arith.constant 8 : index
    %c0_160 = arith.constant 0 : index
    %215 = vector.load %arg8[%c8_159, %c0_160] : memref<9x128xf32, #tpu.memory_space<vmem>>, vector<1x128xf32>
    %216 = vector.shape_cast %215 : vector<1x128xf32> to vector<128xf32>
    %217 = vector.shape_cast %216 : vector<128xf32> to vector<1x1x128xf32>
    %218 = vector.broadcast %217 : vector<1x1x128xf32> to vector<16x16x128xf32>
    %219 = arith.mulf %214, %218 : vector<16x16x128xf32>
    %220 = arith.addf %213, %219 : vector<16x16x128xf32>
    %221 = vector.shape_cast %220 : vector<16x16x128xf32> to vector<256x128xf32>
    %222 = vector.shape_cast %1 : vector<16x16x64xf32> to vector<256x64xf32>
    %223 = tpu.concatenate %221, %222 in 1 : vector<256x128xf32>, vector<256x64xf32> -> vector<256x192xf32>
    %c0_161 = arith.constant 0 : index
    %c0_162 = arith.constant 0 : index
    %224 = vector.load %arg11[%c0_161, %c0_162] : memref<64x256xbf16, #tpu.memory_space<vmem>>, vector<64x256xbf16>
    %225 = arith.truncf %223 : vector<256x192xf32> to vector<256x192xbf16>
    %cst_163 = arith.constant dense<0.000000e+00> : vector<64x192xf32>
    %226 = tpu.matmul %224, %225, %cst_163 {dimension_numbers = #tpu.dot_dimension_numbers<[1], [0], [0], [1], [0, 0, 1, 1], [], []>} : vector<64x256xbf16>, vector<256x192xbf16>, vector<64x192xf32> -> vector<64x192xf32>
    %227 = arith.truncf %226 : vector<64x192xf32> to vector<64x192xbf16>
    %c0_164 = arith.constant 0 : index
    %c0_165 = arith.constant 0 : index
    %228 = vector.load %arg9[%c0_164, %c0_165] : memref<192x128xbf16, #tpu.memory_space<vmem>>, vector<192x128xbf16>
    %cst_166 = arith.constant dense<0.000000e+00> : vector<64x128xf32>
    %229 = tpu.matmul %227, %228, %cst_166 {dimension_numbers = #tpu.dot_dimension_numbers<[1], [0], [0], [1], [0, 0, 1, 1], [], []>} : vector<64x192xbf16>, vector<192x128xbf16>, vector<64x128xf32> -> vector<64x128xf32>
    %c0_167 = arith.constant 0 : index
    %c0_168 = arith.constant 0 : index
    %230 = vector.load %arg10[%c0_167, %c0_168] : memref<1x128xf32, #tpu.memory_space<vmem>>, vector<1x128xf32>
    %231 = vector.broadcast %230 : vector<1x128xf32> to vector<64x128xf32>
    %232 = arith.addf %229, %231 : vector<64x128xf32>
    %233 = vector.shape_cast %232 : vector<64x128xf32> to vector<8x8x128xf32>
    %c0_169 = arith.constant 0 : index
    %c0_170 = arith.constant 0 : index
    %c0_171 = arith.constant 0 : index
    %c0_172 = arith.constant 0 : index
    %234 = vector.load %arg12[%c0_169, %c0_170, %c0_171, %c0_172] : memref<1x8x8x128xf32, #tpu.memory_space<vmem>>, vector<1x8x8x128xf32>
    %235 = vector.shape_cast %234 : vector<1x8x8x128xf32> to vector<8x8x128xf32>
    %236 = vector.shape_cast %233 : vector<8x8x128xf32> to vector<1x8x8x128xf32>
    tpu.vector_store %arg12[%c0_169, %c0_170, %c0_171, %c0_172], %236 {strides = array<i32>} : memref<1x8x8x128xf32, #tpu.memory_space<vmem>>, vector<1x8x8x128xf32>,
    return
  }
  func.func @transform_0(%arg0: i32) -> (i32, i32, i32, i32) {
    %c0_i32 = arith.constant 0 : i32
    %c0_i32_0 = arith.constant 0 : i32
    %c0_i32_1 = arith.constant 0 : i32
    %c0_i32_2 = arith.constant 0 : i32
    return %arg0, %c0_i32, %c0_i32_0, %c0_i32_1 : i32, i32, i32, i32
  }
  func.func @transform_1(%arg0: i32) -> (i32, i32) {
    %c0_i32 = arith.constant 0 : i32
    %c0_i32_0 = arith.constant 0 : i32
    %c0_i32_1 = arith.constant 0 : i32
    return %c0_i32, %c0_i32_0 : i32, i32
  }
  func.func @transform_2(%arg0: i32) -> (i32, i32) {
    %c0_i32 = arith.constant 0 : i32
    %c0_i32_0 = arith.constant 0 : i32
    %c0_i32_1 = arith.constant 0 : i32
    return %c0_i32, %c0_i32_0 : i32, i32
  }
  func.func @transform_3(%arg0: i32) -> (i32, i32) {
    %c0_i32 = arith.constant 0 : i32
    %c0_i32_0 = arith.constant 0 : i32
    %c0_i32_1 = arith.constant 0 : i32
    return %c0_i32, %c0_i32_0 : i32, i32
  }
  func.func @transform_4(%arg0: i32) -> (i32, i32) {
    %c0_i32 = arith.constant 0 : i32
    %c0_i32_0 = arith.constant 0 : i32
    %c0_i32_1 = arith.constant 0 : i32
    return %c0_i32, %c0_i32_0 : i32, i32
  }
  func.func @transform_5(%arg0: i32) -> (i32, i32) {
    %c0_i32 = arith.constant 0 : i32
    %c0_i32_0 = arith.constant 0 : i32
    %c0_i32_1 = arith.constant 0 : i32
    return %c0_i32, %c0_i32_0 : i32, i32
  }
  func.func @transform_6(%arg0: i32) -> (i32, i32) {
    %c0_i32 = arith.constant 0 : i32
    %c0_i32_0 = arith.constant 0 : i32
    %c0_i32_1 = arith.constant 0 : i32
    return %c0_i32, %c0_i32_0 : i32, i32
  }
  func.func @transform_7(%arg0: i32) -> (i32, i32) {
    %c0_i32 = arith.constant 0 : i32
    %c0_i32_0 = arith.constant 0 : i32
    %c0_i32_1 = arith.constant 0 : i32
    return %c0_i32, %c0_i32_0 : i32, i32
  }
  func.func @transform_8(%arg0: i32) -> (i32, i32) {
    %c0_i32 = arith.constant 0 : i32
    %c0_i32_0 = arith.constant 0 : i32
    %c0_i32_1 = arith.constant 0 : i32
    return %c0_i32, %c0_i32_0 : i32, i32
  }
  func.func @transform_9(%arg0: i32) -> (i32, i32) {
    %c0_i32 = arith.constant 0 : i32
    %c0_i32_0 = arith.constant 0 : i32
    %c0_i32_1 = arith.constant 0 : i32
    return %c0_i32, %c0_i32_0 : i32, i32
  }
  func.func @transform_10(%arg0: i32) -> (i32, i32) {
    %c0_i32 = arith.constant 0 : i32
    %c0_i32_0 = arith.constant 0 : i32
    %c0_i32_1 = arith.constant 0 : i32
    return %c0_i32, %c0_i32_0 : i32, i32
  }
  func.func @transform_11(%arg0: i32) -> (i32, i32, i32, i32) {
    %c0_i32 = arith.constant 0 : i32
    %c0_i32_0 = arith.constant 0 : i32
    %c0_i32_1 = arith.constant 0 : i32
    %c0_i32_2 = arith.constant 0 : i32
    return %arg0, %c0_i32, %c0_i32_0, %c0_i32_1 : i32, i32, i32, i32
  }
}

</mosaic_0001>

<bundles_post_ra>
// kernel: block1_forward.1
= control target key start
LH: loop header
LB: loop body
LE: loop exit
PB: predicated region body
PF: predicated region fallthrough
CT: control target
= control target key end

     0   :  { %s7946_s0 = inlined_call_operand.hbm [shape: f32[2,16,16,64], index: 0, kind: input, shape index: {}]   ;;  %s7947_s1 = inlined_call_operand.hbm [shape: f32[9,64], index: 1, kind: input, shape index: {}]   ;;  %s7948_s2 = inlined_call_operand.hbm [shape: bf16[64,128], index: 2, kind: input, shape index: {}]   ;;  %s7949_s3 = inlined_call_operand.vmem [shape: f32[1,128], index: 3, kind: input, shape index: {}]   ;;  %s7950_s4 = inlined_call_operand.vmem [shape: f32[9,128], index: 4, kind: input, shape index: {}]   ;;  %s7951_s5 = inlined_call_operand.hbm [shape: bf16[128,128], index: 5, kind: input, shape index: {}]   ;;  %s7952_s6 = inlined_call_operand.vmem [shape: f32[1,128], index: 6, kind: input, shape index: {}]   ;;  %s7953_s7 = inlined_call_operand.hbm [shape: f32[9,128], index: 7, kind: input, shape index: {}]   ;;  %s7954_s8 = inlined_call_operand.hbm [shape: bf16[192,128], index: 8, kind: input, shape index: {}]   ;;  %s7955_s9 = inlined_call_operand.hbm [shape: f32[1,128], index: 9, kind: input, shape index: {}]   ;;  %s7956_s10 = inlined_call_operand.hbm [shape: bf16[64,256], index: 10, kind: input, shape index: {}]   ;;  %s7957_s11 = inlined_call_operand.hbm [shape: f32[2,8,8,128], index: 11, kind: output, shape index: {}]  }
   0x1   :  { %8021 = sst [smem:[#allocation56_spill]] %s7947_s1 }
   0x2   :  { %8022 = sst [smem:[#allocation57_spill]] %s7948_s2 }
   0x3   :  { %8023 = sst [smem:[#allocation58_spill]] %s7950_s4 }
   0x4   :  { %8024 = sst [smem:[#allocation59_spill]] %s7952_s6 }
   0x5   :  { %8025 = sst [smem:[#allocation60_spill]] %s7957_s11 }
   0x6   :  { %16 = vsyncpa [#allocation5], 0 }
   0x7   :  { %18 = vsyncpa [#allocation5 + $0x1], 0 }
   0x8   :  { %19 = vsyncpa [#allocation8], 0 }
   0x9   :  { %20 = vsyncpa [#allocation11], 0 }
   0xa   :  { %21 = vsyncpa [#allocation14], 0 }
   0xb   :  { %22 = vsyncpa [#allocation17], 0 }
   0xc   :  { %23 = vsyncpa [#allocation6], 0 }
   0xd   :  { %25 = vsyncpa [#allocation6 + $0x1], 0  ;;  %s5378_s17 = smov 0   ;;  %s5380_s18 = smov 0  }
   0xe   :  { %s5382_s19 = smov 0   ;;  %s5384_s20 = smov 0  }
   0xf LB: > { %s5301_s21 = smov [#allocation7]   ;;  %s5399_s23 = sadd.s32 4294967295, %s5299_s20   ;;  %s5299_s20 = sphi %s5384_s20, %s8140_s20   ;;  %s5295_s19 = sphi %s5382_s19, %s8139_s19   ;;  %s5291_s18 = sphi %s5380_s18, %s8138_s18   ;;  %s5287_s17 = sphi %s5378_s17, %s8137_s17  }
  0x10   : > { %s310_s22 = sshll.u32 %s5301_s21, 4  ;;  %p4555_p0 = scmp.ge.s32.totalorder %s5299_s20, 1  ;;  %s5404_s22 = int_to_ptr.vmem [resolvable:$true] %s310_s22 }
  0x11   : > { %p7963_p1 = scmp.eq.s32.totalorder %s5399_s23, 0  ;;  %p298_p2 = scmp.lt.s32.totalorder %s5299_s20, 3 }
  0x12   : > { %s5302_s26 = smov [#allocation10]   ;;  %s5303_s28 = smov [#allocation13]  }
  0x13   : > { %p5406_p3 = pnand %p4555_p0, %p298_p2  ;;  %s342_s27 = sshll.u32 %s5302_s26, 4  ;;  %s5419_s27 = int_to_ptr.vmem [resolvable:$true] %s342_s27 }
  0x14   : > { %s5421_s29 = sshll.u32 %s5303_s28, 4  ;;  %s8028_s1 = sld [smem:[#allocation56_spill]]  ;;  %s372_s29 = int_to_ptr.vmem [resolvable:$true] %s5421_s29 }
  0x15   : > { %s8026_s24 = scalar_select %p5406_p3, 1, 0 }
  0x16   : > { %p4830_p5 = pneg %p5406_p3 }
  0x18   : > { %p5415_p6 = pnand %p4830_p5, %p7963_p1 }
  0x1a   : > { %s4991_s13 = scalar_lea.hbm %s8028_s1, 256  ;;  %p5431_p8 = pneg %p5415_p6 }
  0x1b   : > { %p4992_p7 = scmp.ne.s32.totalorder %s8028_s1, %s4991_s13  ;;  %p4998_p11 = scmp.lt.u32.totalorder %s4991_s13, %s8028_s1 }
  0x1d   : > { %p4994_p9 = pnand %p5431_p8, %p4992_p7 }
  0x1f   : > { %p4995_p10 = pneg %p4994_p9 }
  0x21   : > { %p5000_p12 = pnand %p4998_p11, %p4995_p10 }
  0x23   : > { %5003 = shalt.err (!%p5000_p12)
}
  0x24   : > { %s5004_s28 = scalar_lea.vmem %s5404_s22, 256  ;;  %p5012_p5 = scmp.lt.s32.totalorder %s5404_s22, %s5404_s22 }
  0x25   : > { %p5005_p13 = scmp.ne.s32.totalorder %s5404_s22, %s5004_s28  ;;  %p5013_p4 = scmp.lt.s32.totalorder %s5004_s28, %s5004_s28 }
  0x27   : > { %p5007_p0 = pnand %p5005_p13, %p5431_p8  ;;  %p5014_p7 = por %p5013_p4, %p5012_p5 }
  0x29   : > { %p5008_p2 = pneg %p5007_p0 }
  0x2b   : > { %p5015_p9 = pnand %p5014_p7, %p5008_p2 }
  0x2d   : > { %5018 = shalt.err (!%p5015_p9)
}
  0x2e   : > { %s7961_s30 = smov 128   ;;  %s7965_s12 = smov 8  }
  0x2f   : > { %4833 = dma.hbm_to_vmem [thread:$0]  (!%p5415_p6), %s8028_s1, 256, %s5404_s22, [#allocation8], %s7961_s30, %s7961_s30, %s7965_s12  }
  0x30   : > { %s5019_s26 = scalar_lea.hbm %s7951_s5, 1024 }
  0x31   : > { %p5020_p4 = scmp.ne.s32.totalorder %s7951_s5, %s5019_s26  ;;  %p5026_p12 = scmp.lt.u32.totalorder %s5019_s26, %s7951_s5 }
  0x33   : > { %p5022_p10 = pnand %p5020_p4, %p5431_p8 }
  0x35   : > { %p5023_p11 = pneg %p5022_p10 }
  0x37   : > { %p5028_p13 = pnand %p5026_p12, %p5023_p11 }
  0x39   : > { %5031 = shalt.err (!%p5028_p13)
}
  0x3a   : > { %s5032_s22 = scalar_lea.vmem %s5419_s27, 1024  ;;  %p5040_p7 = scmp.lt.s32.totalorder %s5419_s27, %s5419_s27 }
  0x3b   : > { %p5033_p0 = scmp.ne.s32.totalorder %s5419_s27, %s5032_s22  ;;  %p5041_p9 = scmp.lt.s32.totalorder %s5032_s22, %s5032_s22 }
  0x3d   : > { %p5035_p2 = pnand %p5033_p0, %p5431_p8  ;;  %p5042_p4 = por %p5041_p9, %p5040_p7 }
  0x3f   : > { %p5036_p5 = pneg %p5035_p2 }
  0x41   : > { %p5043_p10 = pnand %p5042_p4, %p5036_p5 }
  0x43   : > { %5046 = shalt.err (!%p5043_p10)
}
  0x44   : > { %s5306_s11 = smov 64   ;;  %s5307_s4 = smov 4  }
  0x45   : > { %4839 = dma.hbm_to_vmem [thread:$0]  (!%p5415_p6), %s7951_s5, 1024, %s5419_s27, [#allocation11], %s5306_s11, %s5306_s11, %s5307_s4  }
  0x46   : > { %s5047_s21 = scalar_lea.hbm %s7954_s8, 1536 }
  0x47   : > { %p5048_p11 = scmp.ne.s32.totalorder %s7954_s8, %s5047_s21  ;;  %p5054_p0 = scmp.lt.u32.totalorder %s5047_s21, %s7954_s8 }
  0x49   : > { %p5050_p12 = pnand %p5048_p11, %p5431_p8 }
  0x4b   : > { %p5051_p13 = pneg %p5050_p12 }
  0x4d   : > { %p5056_p2 = pnand %p5054_p0, %p5051_p13 }
  0x4f   : > { %5059 = shalt.err (!%p5056_p2)
}
  0x50   : > { %s5060_s6 = scalar_lea.vmem %s372_s29, 1536  ;;  %p5068_p4 = scmp.lt.s32.totalorder %s372_s29, %s372_s29 }
  0x51   : > { %p5061_p5 = scmp.ne.s32.totalorder %s372_s29, %s5060_s6  ;;  %p5069_p10 = scmp.lt.s32.totalorder %s5060_s6, %s5060_s6 }
  0x53   : > { %p5063_p7 = pnand %p5061_p5, %p5431_p8  ;;  %p5070_p1 = por %p5069_p10, %p5068_p4 }
  0x55   : > { %p5064_p9 = pneg %p5063_p7 }
  0x57   : > { %p5071_p3 = pnand %p5070_p1, %p5064_p9 }
  0x59   : > { %5074 = shalt.err (!%p5071_p3)
}
  0x5a   : > { %4845 = dma.hbm_to_vmem [thread:$0]  (!%p5415_p6), %s7954_s8, 1536, %s372_s29, [#allocation14], %s5306_s11, %s5306_s11, %s5307_s4  }
  0x5b   : > { %s5308_s13 = smov [#allocation9]   ;;  %s5309_s15 = smov [#allocation12]  }
  0x5c   : > { %s323_s14 = sshll.u32 %s5308_s13, 4  ;;  %s358_s21 = sshll.u32 %s5309_s15, 4  ;;  %s324_s14 = int_to_ptr.vmem [resolvable:$true] %s323_s14  ;;  %s359_s21 = int_to_ptr.vmem [resolvable:$true] %s358_s21 }
  0x5d   : > { %s8030_s2 = sld [smem:[#allocation57_spill]] }
  0x63   : > { %s5075_s22 = scalar_lea.hbm %s8030_s2, 512 }
  0x64   : > { %p5076_p1 = scmp.ne.s32.totalorder %s8030_s2, %s5075_s22  ;;  %p5082_p12 = scmp.lt.u32.totalorder %s5075_s22, %s8030_s2 }
  0x66   : > { %p5078_p3 = pnand %p5076_p1, %p5431_p8 }
  0x68   : > { %p5079_p11 = pneg %p5078_p3 }
  0x6a   : > { %p5084_p13 = pnand %p5082_p12, %p5079_p11 }
  0x6c   : > { %5087 = shalt.err (!%p5084_p13)
}
  0x6d   : > { %s5088_s29 = scalar_lea.vmem %s324_s14, 512  ;;  %p5096_p7 = scmp.lt.s32.totalorder %s324_s14, %s324_s14 }
  0x6e   : > { %p5089_p0 = scmp.ne.s32.totalorder %s324_s14, %s5088_s29  ;;  %p5097_p9 = scmp.lt.s32.totalorder %s5088_s29, %s5088_s29 }
  0x70   : > { %p5091_p2 = pnand %p5089_p0, %p5431_p8  ;;  %p5098_p4 = por %p5097_p9, %p5096_p7 }
  0x72   : > { %p5092_p5 = pneg %p5091_p2 }
  0x74   : > { %p5099_p10 = pnand %p5098_p4, %p5092_p5 }
  0x76   : > { %5102 = shalt.err (!%p5099_p10)
}
  0x77   : > { %4836 = dma.hbm_to_vmem [thread:$0]  (!%p5415_p6), %s8030_s2, 512, %s324_s14, [#allocation8], %s5306_s11, %s5306_s11, %s5307_s4  }
  0x78   : > { %s5103_s15 = scalar_lea.hbm %s7953_s7, 256 }
  0x79   : > { %p5104_p1 = scmp.ne.s32.totalorder %s7953_s7, %s5103_s15  ;;  %p5110_p12 = scmp.lt.u32.totalorder %s5103_s15, %s7953_s7 }
  0x7b   : > { %p5106_p3 = pnand %p5104_p1, %p5431_p8 }
  0x7d   : > { %p5107_p11 = pneg %p5106_p3 }
  0x7f   : > { %p5112_p13 = pnand %p5110_p12, %p5107_p11 }
  0x81   : > { %5115 = shalt.err (!%p5112_p13)
}
  0x82   : > { %s5116_s27 = scalar_lea.vmem %s359_s21, 256  ;;  %p5124_p7 = scmp.lt.s32.totalorder %s359_s21, %s359_s21 }
  0x83   : > { %p5117_p0 = scmp.ne.s32.totalorder %s359_s21, %s5116_s27  ;;  %p5125_p9 = scmp.lt.s32.totalorder %s5116_s27, %s5116_s27 }
  0x85   : > { %p5119_p2 = pnand %p5117_p0, %p5431_p8  ;;  %p5126_p4 = por %p5125_p9, %p5124_p7 }
  0x87   : > { %p5120_p5 = pneg %p5119_p2 }
  0x89   : > { %p5127_p10 = pnand %p5126_p4, %p5120_p5 }
  0x8b   : > { %5130 = shalt.err (!%p5127_p10)
}
  0x8c   : > { %s8031_s11 = smov 8   ;;  %s8032_s4 = smov 128  }
  0x8d   : > { %4842 = dma.hbm_to_vmem [thread:$0]  (!%p5415_p6), %s7953_s7, 256, %s359_s21, [#allocation11], %s8032_s4, %s8032_s4, %s8031_s11  }
  0x8e   : > { %s5310_s1 = smov [#allocation15]   ;;  %s5311_s30 = smov [#allocation16]  }
  0x8f   : > { %s385_s12 = sshll.u32 %s5310_s1, 4  ;;  %s395_s13 = sshll.u32 %s5311_s30, 4  ;;  %s386_s12 = int_to_ptr.vmem [resolvable:$true] %s385_s12  ;;  %s396_s13 = int_to_ptr.vmem [resolvable:$true] %s395_s13 }
  0x90   : > { %s5131_s28 = scalar_lea.hbm %s7955_s9, 16 }
  0x91   : > { %p5132_p1 = scmp.ne.s32.totalorder %s7955_s9, %s5131_s28  ;;  %p5138_p12 = scmp.lt.u32.totalorder %s5131_s28, %s7955_s9 }
  0x93   : > { %p5134_p3 = pnand %p5132_p1, %p5431_p8 }
  0x95   : > { %p5135_p11 = pneg %p5134_p3 }
  0x97   : > { %p5140_p13 = pnand %p5138_p12, %p5135_p11 }
  0x99   : > { %5143 = shalt.err (!%p5140_p13)
}
  0x9a   : > { %s5144_s21 = scalar_lea.vmem %s386_s12, 16  ;;  %s5151_s29 = scalar_lea.vmem %s386_s12, 32 }
  0x9b   : > { %p5145_p0 = scmp.ne.s32.totalorder %s386_s12, %s5144_s21  ;;  %p5152_p7 = scmp.lt.s32.totalorder %s386_s12, %s386_s12 }
  0x9c   : > { %p5153_p9 = scmp.lt.s32.totalorder %s5151_s29, %s5144_s21 }
  0x9d   : > { %p5147_p2 = pnand %p5145_p0, %p5431_p8 }
  0x9e   : > { %p5154_p4 = por %p5153_p9, %p5152_p7 }
  0x9f   : > { %p5148_p5 = pneg %p5147_p2 }
  0xa1   : > { %p5155_p10 = pnand %p5154_p4, %p5148_p5 }
  0xa3   : > { %5158 = shalt.err (!%p5155_p10)
}
  0xa4   : > { %4848 = dma.hbm_to_vmem [thread:$0]  (!%p5415_p6), %s7955_s9, 16, %s386_s12, [#allocation14]  }
  0xa5   : > { %s5159_s28 = scalar_lea.hbm %s7956_s10, 1024 }
  0xa6   : > { %p5160_p1 = scmp.ne.s32.totalorder %s7956_s10, %s5159_s28  ;;  %p5166_p12 = scmp.lt.u32.totalorder %s5159_s28, %s7956_s10 }
  0xa8   : > { %p5162_p3 = pnand %p5160_p1, %p5431_p8 }
  0xaa   : > { %p5163_p11 = pneg %p5162_p3 }
  0xac   : > { %p5168_p13 = pnand %p5166_p12, %p5163_p11 }
  0xae   : > { %5171 = shalt.err (!%p5168_p13)
}
  0xaf   : > { %s5172_s21 = scalar_lea.vmem %s396_s13, 1024  ;;  %p5180_p7 = scmp.lt.s32.totalorder %s396_s13, %s396_s13 }
  0xb0   : > { %p5173_p0 = scmp.ne.s32.totalorder %s396_s13, %s5172_s21  ;;  %p5181_p9 = scmp.lt.s32.totalorder %s5172_s21, %s5172_s21 }
  0xb2   : > { %p5175_p2 = pnand %p5173_p0, %p5431_p8  ;;  %p5182_p4 = por %p5181_p9, %p5180_p7 }
  0xb4   : > { %p5176_p5 = pneg %p5175_p2 }
  0xb6   : > { %p5183_p10 = pnand %p5182_p4, %p5176_p5 }
  0xb8   : > { %5186 = shalt.err (!%p5183_p10)
}
  0xb9   : > { %4851 = dma.hbm_to_vmem [thread:$0]  (!%p5415_p6), %s7956_s10, 1024, %s396_s13, [#allocation17], %s8032_s4, %s8032_s4, %s8031_s11  }
  0xba   : > { %s4554_s25 = sadd.s32 4294967294, %s5299_s20   ;;  %s5586_s16 = sadd.s32 1, %s5299_s20  }
  0xbb   : > { %s38_s1 = sadd.s32 1, %s5295_s19  ;;  %s35_s30 = ssub.s32 %s5299_s20, %s5586_s16 }
  0xbc   : > { %p45_p8 = scmp.ne.s32.totalorder %s5295_s19, %s5291_s18  ;;  %p36_p1 = scmp.eq.s32.totalorder %s35_s30, 0 }
  0xbd   : > { %p46_p3 = scmp.eq.s32.totalorder %s5299_s20, 0  ;;  %p51_p11 = scmp.ne.s32.totalorder %s5291_s18, %s5287_s17 }
  0xbe   : > { %p285_p12 = scmp.eq.s32.totalorder %s5399_s23, 1  ;;  %p8033_p0 = scmp.eq.s32.totalorder %s5399_s23, 0 }
  0xbf   : > { %s5598_s15 = scalar_select %p36_p1, %s5295_s19, %s38_s1  }
  0xc0   : > { %p47_p13 = por %p46_p3, %p45_p8  ;;  %p5602_p2 = por %p8033_p0, %p51_p11 }
  0xc1   : > { %p5606_p6 = por %p285_p12, %p45_p8  ;;  %p291_p5 = scmp.eq.s32.totalorder %s4554_s25, 1 }
  0xc2   : > { %p4867_p7 = scmp.lt.s32.totalorder %s5299_s20, 2  ;;  %s409_s28 = sand.u32 1, %s5295_s19  }
  0xc3   : > { %s8035_s13 = scalar_select %p5606_p6, 1, 0 }
  0xc4   : > { %p5612_p9 = por %p291_p5, %p51_p11  ;;  %s4564_s6 = sshll.u32 %s409_s28, 8 }
  0xc5   : > { %s4664_s27 = sshll.u32 %s5299_s20, 12  ;;  %s413_s29 = scalar_lea.vmem [#allocation4], %s4564_s6 }
  0xc6   : > { %s8036_s22 = scalar_select %p5612_p9, 1, 0 }
  0xc7   : > { %s5620_s12 = scalar_lea.hbm %s7946_s0, %s4664_s27  ;;  %s420_s1 = sshll.u32 %s413_s29, 4  ;;  %s5626_s1 = int_to_ptr.vmem [resolvable:$true] %s420_s1 }
  0xc8   : > { %p5622_p4 = pnand %p4867_p7, %p47_p13  ;;  %s5628_s30 = scalar_lea.sflag [#allocation5], %s409_s28 }
  0xc9   : > { %s5187_s2 = scalar_lea.hbm %s5620_s12, 4096  ;;  %s5192_s14 = scalar_lea.hbm %s7946_s0, 8192 }
  0xca   : > { %p5188_p10 = scmp.ne.s32.totalorder %s5620_s12, %s5187_s2  ;;  %p5189_p8 = pneg %p5622_p4 }
  0xcb   : > { %p5193_p11 = scmp.lt.u32.totalorder %s5620_s12, %s7946_s0  ;;  %p5194_p12 = scmp.lt.u32.totalorder %s5192_s14, %s5187_s2 }
  0xcc   : > { %p5190_p1 = pnand %p5189_p8, %p5188_p10  ;;  %p5196_p0 = scmp.lt.u32.totalorder %s5187_s2, %s5620_s12 }
  0xcd   : > { %p5195_p13 = por %p5194_p12, %p5193_p11 }
  0xce   : > { %p5191_p3 = pneg %p5190_p1 }
  0xcf   : > { %p5197_p5 = por %p5196_p0, %p5195_p13 }
  0xd1   : > { %p5198_p7 = pnand %p5197_p5, %p5191_p3 }
  0xd3   : > { %5201 = shalt.err (!%p5198_p7)
}
  0xd4   : > { %s5202_s28 = scalar_lea.vmem %s5626_s1, 4096  ;;  %s5312_s6 = smov [#allocation4]  }
  0xd5   : > { %p5203_p10 = scmp.ne.s32.totalorder %s5626_s1, %s5202_s28  ;;  %s5207_s27 = sshll.u32 %s5312_s6, 4  ;;  %s5208_s27 = int_to_ptr.vmem [resolvable:$false] %s5207_s27 }
  0xd6   : > { %s5209_s21 = scalar_lea.vmem %s5208_s27, 8192  ;;  %p5210_p6 = scmp.lt.s32.totalorder %s5626_s1, %s5208_s27 }
  0xd7   : > { %p5205_p1 = pnand %p5203_p10, %p5189_p8  ;;  %p5211_p11 = scmp.lt.s32.totalorder %s5209_s21, %s5202_s28 }
  0xd9   : > { %p5206_p9 = pneg %p5205_p1  ;;  %p5212_p12 = por %p5211_p11, %p5210_p6 }
  0xdb   : > { %p5213_p13 = pnand %p5212_p12, %p5206_p9 }
  0xdd   : > { %5216 = shalt.err (!%p5213_p13)
}
  0xde   : > { %4855 = dma.hbm_to_vmem [thread:$0]  (!%p5622_p4), %s5620_s12, 4096, %s5626_s1, %s5628_s30, %s8032_s4, %s8032_s4, %s8031_s11  }
  0xdf   : > { %p8038_p8 = scmp.ne.s32.totalorder %s8026_s24, 0 }
  0xe1   : > { %432 = sbr.rel (%p8038_p8) target bundleno = 1462 (0x5b6), region = 64 }
  0xe8   : > { %s5662_s2 = sand.u32 1, %s5291_s18  }
  0xe9   : > { %s4568_s14 = sshll.u32 %s5662_s2, 8  ;;  %s435_s29 = scalar_lea.sflag [#allocation5], %s5662_s2 }
  0xea   : > { %s5666_s28 = scalar_lea.vmem [#allocation4], %s4568_s14 }
  0xeb   : > { %5262 = dma.done.wait (%p5602_p2), %s435_s29, 4096  }
  0xec   : > { %5264 = vsyncadd (%p5602_p2), %s435_s29, 4294963200  ;;  %p8039_p6 = scmp.eq.s32.totalorder %s5399_s23, 0 }
  0xee   : > { %5266 = dma.done.wait (%p8039_p6), [#allocation8], 768   ;;  %p8040_p9 = pmov %p8039_p6 }
  0xef   : > { %p8041_p4 = pmov %p8039_p6 }
  0xf0   : > { %5268 = vsyncadd (%p8040_p9), [#allocation8], 4294966528 }
  0xf1   : > { %5270 = dma.done.wait (%p8041_p4), [#allocation11], 1280   ;;  %p8042_p3 = pmov %p8041_p4 }
  0xf3   : > { %5272 = vsyncadd (%p8042_p3), [#allocation11], 4294966016  ;;  %p8043_p0 = pmov %p8042_p3 }
  0xf5   : > { %5274 = dma.done.wait (%p8043_p0), [#allocation14], 1552   ;;  %p8044_p5 = pmov %p8043_p0 }
  0xf6   : > { %p8045_p2 = pmov %p8043_p0 }
  0xf7   : > { %5276 = vsyncadd (%p8044_p5), [#allocation14], 4294965744 }
  0xf8   : > { %5278 = dma.done.wait (%p8045_p2), [#allocation17], 1024   ;;  %p8046_p7 = pmov %p8043_p0 }
  0xf9   : > { %vm538_vm0 = vcmask 523264   ;;  %vm541_vm1 = vcmask 517120   ;;  %v5313_v0 = vmov 0.0   ;;  %v4923_v1 = vld [vmem:[#allocation9] sm:$0xff]   ;;  %v4924_v2 = vld [vmem:[#allocation9 + $0x8] sm:$0xff]   ;;  %v4925_v3 = vld [vmem:[#allocation9 + $0x10] sm:$0xff]  }
  0xfa   : > { %5280 = vsyncadd (%p8046_p7), [#allocation17], 4294966272  ;;  %539 = vst.msk [vmem:[#allocation2] sm:$0xff] %vm538_vm0, %v5313_v0  ;;  %4710 = vmatprep.subr.bf16.mxu0 %v4923_v1  ;;  %v5851_v4 = vld [vmem:[%s5666_s28] sm:$0xff]  ;;  %v5854_v5 = vld [vmem:[%s5666_s28 + $0x8] sm:$0xff]  ;;  %s8078_s12 = sld [smem:[#allocation58_spill]] }
  0xfb   : > { %540 = vst.msk [vmem:[#allocation2 + $0x8] sm:$0xff] %vm538_vm0, %v5313_v0  ;;  %543 = vst.msk [vmem:[#allocation2 + $0x18] sm:$0xff] %vm538_vm0, %v5313_v0  ;;  %4711 = vmatpush3.bf16.msra.mxu0 %v4923_v1  ;;  %v5857_v6 = vld [vmem:[%s5666_s28 + $0x10] sm:$0xff]  ;;  %v5860_v7 = vld [vmem:[%s5666_s28 + $0x18] sm:$0xff]  ;;  %s8080_s26 = sld [smem:[#allocation59_spill]]  ;;  %s4576_s30 = sshll.u32 %s5662_s2, 6 }
  0xfc   : > { %542 = vst.msk [vmem:[#allocation2 + $0x10] sm:$0x3] %vm541_vm1, %v5313_v0  ;;  %545 = vst.msk [vmem:[#allocation2 + $0x28] sm:$0x3] %vm541_vm1, %v5313_v0  ;;  %4712 = vmatprep.subr.bf16.mxu0 %v4924_v2  ;;  %v5870_v10 = vld [vmem:[#allocation7] ss:$0 sm:$0xff] }
  0xfd   : > { %544 = vst.msk [vmem:[#allocation2 + $0x20] sm:$0xff] %vm538_vm0, %v5313_v0  ;;  %546 = vst.msk [vmem:[#allocation2 + $0x30] sm:$0xff] %vm538_vm0, %v5313_v0  ;;  %v5874_v15 = vld [vmem:[#allocation7 + $0x1] ss:$0 sm:$0xff]  ;;  %v4926_v18 = vld [vmem:[#allocation9 + $0x18] sm:$0xff]   ;;  %s7885_s6 = scalar_lea.vmem [#allocation18], %s4576_s30 }
  0xfe   : > { %547 = vst.msk [vmem:[#allocation2 + $0x38] sm:$0xff] %vm538_vm0, %v5313_v0  ;;  %549 = vst.msk [vmem:[#allocation2 + $0x48] sm:$0xff] %vm538_vm0, %v5313_v0  ;;  %v5878_v21 = vld [vmem:[#allocation7 + $0x2] ss:$0 sm:$0xff]  ;;  %v5882_v24 = vld [vmem:[#allocation7 + $0x3] ss:$0 sm:$0xff] }
  0xff   : > { %548 = vst.msk [vmem:[#allocation2 + $0x40] sm:$0x3] %vm541_vm1, %v5313_v0  ;;  %551 = vst.msk [vmem:[#allocation2 + $0x58] sm:$0x3] %vm541_vm1, %v5313_v0  ;;  %4713 = vmatpush3.bf16.msra.mxu0 %v4924_v2  ;;  %v5884_v25 = vld [vmem:[#allocation7 + $0x4] ss:$0 sm:$0xff] }
 0x100   : > { %550 = vst.msk [vmem:[#allocation2 + $0x50] sm:$0xff] %vm538_vm0, %v5313_v0  ;;  %552 = vst.msk [vmem:[#allocation2 + $0x60] sm:$0xff] %vm538_vm0, %v5313_v0  ;;  %4714 = vmatprep.subr.bf16.mxu0 %v4925_v3  ;;  %v5886_v26 = vld [vmem:[#allocation7 + $0x5] ss:$0 sm:$0xff]  ;;  %v5888_v29 = vld [vmem:[#allocation7 + $0x6] ss:$0 sm:$0xff] }
 0x101   : > { %553 = vst.msk [vmem:[#allocation2 + $0x68] sm:$0xff] %vm538_vm0, %v5313_v0  ;;  %555 = vst.msk [vmem:[#allocation2 + $0x78] sm:$0xff] %vm538_vm0, %v5313_v0  ;;  %v627_v8 = vld [vmem:[#allocation2] sm:$0xff]  ;;  %v5894_v31 = vld [vmem:[%s5666_s28 + $0x28] sm:$0xff]  ;;  %s4414_s27 = sshll.u32 %s7885_s6, 4  ;;  %s4665_s21 = sshll.u32 %s5399_s23, 10  ;;  %s7895_s27 = int_to_ptr.vmem [resolvable:$true] %s4414_s27 }
 0x102   : > { %554 = vst.msk [vmem:[#allocation2 + $0x70] sm:$0x3] %vm541_vm1, %v5313_v0  ;;  %557 = vst.msk [vmem:[#allocation2 + $0x88] sm:$0x3] %vm541_vm1, %v5313_v0  ;;  %v628_v9 = vld [vmem:[#allocation2 + $0x8] sm:$0xff]  ;;  %v664_v13 = vmul.f32 %v5870_v10, %v627_v8  ;;  %v5891_v30 = vld [vmem:[%s5666_s28 + $0x20] sm:$0xff] }
 0x103   : > { %556 = vst.msk [vmem:[#allocation2 + $0x80] sm:$0xff] %vm538_vm0, %v5313_v0  ;;  %558 = vst.msk [vmem:[#allocation2 + $0x90] sm:$0xff] %vm538_vm0, %v5313_v0  ;;  %v728_v11 = vld [vmem:[#allocation2 + $0x1] sm:$0xff]  ;;  %v729_v12 = vld [vmem:[#allocation2 + $0x9] sm:$0xff]  ;;  %v665_v14 = vmul.f32 %v5870_v10, %v628_v9  ;;  %4715 = vmatpush3.bf16.msra.mxu0 %v4925_v3  ;;  %s4401_s11 = scalar_lea.sflag [#allocation6], %s5662_s2  ;;  %s5217_s23 = scalar_lea.vmem %s7895_s27, 1024 }
 0x104   : > { %559 = vst.msk [vmem:[#allocation2 + $0x98] sm:$0xff] %vm538_vm0, %v5313_v0  ;;  %561 = vst.msk [vmem:[#allocation2 + $0xa8] sm:$0xff] %vm538_vm0, %v5313_v0  ;;  %v829_v16 = vld [vmem:[#allocation2 + $0x2] sm:$0xff]  ;;  %v830_v17 = vld [vmem:[#allocation2 + $0xa] sm:$0xff]  ;;  %v765_v19 = vmul.f32 %v5874_v15, %v728_v11  ;;  %v766_v20 = vmul.f32 %v5874_v15, %v729_v12  ;;  %4716 = vmatprep.subr.bf16.mxu0 %v4926_v18  ;;  %p5218_p10 = scmp.ne.s32.totalorder %s7895_s27, %s5217_s23  ;;  %p8134_p1 = scmp.ne.s32.totalorder %s8035_s13, 0 }
 0x105   : > { %560 = vst.msk [vmem:[#allocation2 + $0xa0] sm:$0x3] %vm541_vm1, %v5313_v0  ;;  %563 = vst.msk [vmem:[#allocation2 + $0xb8] sm:$0x3] %vm541_vm1, %v5313_v0  ;;  %v866_v22 = vmul.f32 %v5878_v21, %v829_v16  ;;  %v867_v23 = vmul.f32 %v5878_v21, %v830_v17  ;;  %v5896_v32 = vld [vmem:[#allocation7 + $0x7] ss:$0 sm:$0xff] }
 0x106   : > { %562 = vst.msk [vmem:[#allocation2 + $0xb0] sm:$0xff] %vm538_vm0, %v5313_v0  ;;  %564 = vst.msk [vmem:[#allocation2 + $0xc0] sm:$0xff] %vm538_vm0, %v5313_v0  ;;  %v797_v27 = vadd.f32 %v765_v19, %v664_v13  ;;  %v798_v28 = vadd.f32 %v766_v20, %v665_v14  ;;  %v5898_v33 = vld [vmem:[#allocation7 + $0x8] ss:$0 sm:$0xff]  ;;  %v5905_v34 = vld [vmem:[%s5666_s28 + $0x30] sm:$0xff]  ;;  %p5219_p11 = pnand %p5218_p10, %p8134_p1  ;;  %s5315_s4 = smov [#allocation18]  }
 0x107   : > { %565 = vst.msk [vmem:[#allocation2 + $0xc8] sm:$0xff] %vm538_vm0, %v5313_v0  ;;  %567 = vst.msk [vmem:[#allocation2 + $0xd8] sm:$0xff] %vm538_vm0, %v5313_v0  ;;  %v5908_v35 = vld [vmem:[%s5666_s28 + $0x38] sm:$0xff]  ;;  %v5911_v36 = vld [vmem:[%s5666_s28 + $0x40] sm:$0xff]  ;;  %4717 = vmatpush3.bf16.msra.mxu0 %v4926_v18  ;;  %s5221_s1 = sshll.u32 %s5315_s4, 4  ;;  %s5222_s1 = int_to_ptr.vmem [resolvable:$false] %s5221_s1 }
 0x108   : > { %566 = vst.msk [vmem:[#allocation2 + $0xd0] sm:$0x3] %vm541_vm1, %v5313_v0  ;;  %569 = vst.msk [vmem:[#allocation2 + $0xe8] sm:$0x3] %vm541_vm1, %v5313_v0  ;;  %v898_v37 = vadd.f32 %v866_v22, %v797_v27  ;;  %v899_v38 = vadd.f32 %v867_v23, %v798_v28  ;;  %v5948_v1 = vld [vmem:[%s5666_s28 + $0x48] sm:$0xff]  ;;  %v5951_v2 = vld [vmem:[%s5666_s28 + $0x50] sm:$0xff]  ;;  %p5220_p12 = pneg %p5219_p11  ;;  %p5224_p13 = scmp.lt.s32.totalorder %s7895_s27, %s5222_s1 }
 0x109   : > { %568 = vst.msk [vmem:[#allocation2 + $0xe0] sm:$0xff] %vm538_vm0, %v5313_v0  ;;  %570 = vst.msk [vmem:[#allocation2 + $0xf0] sm:$0xff] %vm538_vm0, %v5313_v0  ;;  %v5954_v3 = vld [vmem:[%s5666_s28 + $0x58] sm:$0xff]  ;;  %v5965_v13 = vld [vmem:[%s5666_s28 + $0x60] sm:$0xff]  ;;  %s5223_s25 = scalar_lea.vmem %s5222_s1, 2048 }
 0x10a   : > { %571 = vst.msk [vmem:[#allocation2 + $0xf8] sm:$0xff] %vm538_vm0, %v5313_v0  ;;  %573 = vst.msk [vmem:[#allocation2 + $0x108] sm:$0xff] %vm538_vm0, %v5313_v0  ;;  %v5968_v14 = vld [vmem:[%s5666_s28 + $0x68] sm:$0xff]  ;;  %v5971_v16 = vld [vmem:[%s5666_s28 + $0x70] sm:$0xff]  ;;  %p5225_p8 = scmp.lt.s32.totalorder %s5223_s25, %s5217_s23 }
 0x10b   : > { %572 = vst.msk [vmem:[#allocation2 + $0x100] sm:$0x3] %vm541_vm1, %v5313_v0  ;;  %575 = vst.msk [vmem:[#allocation2 + $0x118] sm:$0x3] %vm541_vm1, %v5313_v0 }
 0x10c   : > { %574 = vst.msk [vmem:[#allocation2 + $0x110] sm:$0xff] %vm538_vm0, %v5313_v0  ;;  %576 = vst.msk [vmem:[#allocation2 + $0x120] sm:$0xff] %vm538_vm0, %v5313_v0  ;;  %p5226_p6 = por %p5225_p8, %p5224_p13 }
 0x10d   : > { %577 = vst.msk [vmem:[#allocation2 + $0x128] sm:$0xff] %vm538_vm0, %v5313_v0  ;;  %579 = vst.msk [vmem:[#allocation2 + $0x138] sm:$0xff] %vm538_vm0, %v5313_v0 }
 0x10e   : > { %578 = vst.msk [vmem:[#allocation2 + $0x130] sm:$0x3] %vm541_vm1, %v5313_v0  ;;  %581 = vst.msk [vmem:[#allocation2 + $0x148] sm:$0x3] %vm541_vm1, %v5313_v0  ;;  %p5227_p9 = pnand %p5226_p6, %p5220_p12 }
 0x10f   : > { %580 = vst.msk [vmem:[#allocation2 + $0x140] sm:$0xff] %vm538_vm0, %v5313_v0  ;;  %582 = vst.msk [vmem:[#allocation2 + $0x150] sm:$0xff] %vm538_vm0, %v5313_v0 }
 0x110   : > { %583 = vst.msk [vmem:[#allocation2 + $0x158] sm:$0xff] %vm538_vm0, %v5313_v0  ;;  %585 = vst.msk [vmem:[#allocation2 + $0x168] sm:$0xff] %vm538_vm0, %v5313_v0 }
 0x111   : > { %584 = vst.msk [vmem:[#allocation2 + $0x160] sm:$0x3] %vm541_vm1, %v5313_v0  ;;  %587 = vst.msk [vmem:[#allocation2 + $0x178] sm:$0x3] %vm541_vm1, %v5313_v0 }
 0x112   : > { %586 = vst.msk [vmem:[#allocation2 + $0x170] sm:$0xff] %vm538_vm0, %v5313_v0  ;;  %588 = vst.msk [vmem:[#allocation2 + $0x180] sm:$0xff] %vm538_vm0, %v5313_v0 }
 0x113   : > { %589 = vst.msk [vmem:[#allocation2 + $0x188] sm:$0xff] %vm538_vm0, %v5313_v0  ;;  %591 = vst.msk [vmem:[#allocation2 + $0x198] sm:$0xff] %vm538_vm0, %v5313_v0 }
 0x114   : > { %590 = vst.msk [vmem:[#allocation2 + $0x190] sm:$0x3] %vm541_vm1, %v5313_v0  ;;  %593 = vst.msk [vmem:[#allocation2 + $0x1a8] sm:$0x3] %vm541_vm1, %v5313_v0 }
 0x115   : > { %592 = vst.msk [vmem:[#allocation2 + $0x1a0] sm:$0xff] %vm538_vm0, %v5313_v0  ;;  %1833 = vst [vmem:[#allocation3] sm:$0xff] %v5313_v0 }
 0x116   : > { %1834 = vst [vmem:[#allocation3 + $0x8] sm:$0xff] %v5313_v0  ;;  %1835 = vst [vmem:[#allocation3 + $0x10] sm:$0x3] %v5313_v0 }
 0x117   : > { %1836 = vst [vmem:[#allocation3 + $0x18] sm:$0xff] %v5313_v0  ;;  %1837 = vst [vmem:[#allocation3 + $0x20] sm:$0xff] %v5313_v0 }
 0x118   : > { %1838 = vst [vmem:[#allocation3 + $0x28] sm:$0x3] %v5313_v0  ;;  %1839 = vst [vmem:[#allocation3 + $0x30] sm:$0xff] %v5313_v0 }
 0x119   : > { %1840 = vst [vmem:[#allocation3 + $0x38] sm:$0xff] %v5313_v0  ;;  %1841 = vst [vmem:[#allocation3 + $0x40] sm:$0x3] %v5313_v0 }
 0x11a   : > { %1842 = vst [vmem:[#allocation3 + $0x48] sm:$0xff] %v5313_v0  ;;  %1843 = vst [vmem:[#allocation3 + $0x50] sm:$0xff] %v5313_v0 }
 0x11b   : > { %1844 = vst [vmem:[#allocation3 + $0x58] sm:$0x3] %v5313_v0  ;;  %1845 = vst [vmem:[#allocation3 + $0x60] sm:$0xff] %v5313_v0 }
 0x11c   : > { %1846 = vst [vmem:[#allocation3 + $0x68] sm:$0xff] %v5313_v0  ;;  %1847 = vst [vmem:[#allocation3 + $0x70] sm:$0x3] %v5313_v0 }
 0x11d   : > { %1848 = vst [vmem:[#allocation3 + $0x78] sm:$0xff] %v5313_v0  ;;  %1849 = vst [vmem:[#allocation3 + $0x80] sm:$0xff] %v5313_v0 }
 0x11e   : > { %1850 = vst [vmem:[#allocation3 + $0x88] sm:$0x3] %v5313_v0  ;;  %1851 = vst [vmem:[#allocation3 + $0x90] sm:$0xff] %v5313_v0 }
 0x11f   : > { %1852 = vst [vmem:[#allocation3 + $0x98] sm:$0xff] %v5313_v0  ;;  %1853 = vst [vmem:[#allocation3 + $0xa0] sm:$0x3] %v5313_v0 }
 0x120   : > { %1854 = vst [vmem:[#allocation3 + $0xa8] sm:$0xff] %v5313_v0  ;;  %1855 = vst [vmem:[#allocation3 + $0xb0] sm:$0xff] %v5313_v0 }
 0x121   : > { %1856 = vst [vmem:[#allocation3 + $0xb8] sm:$0x3] %v5313_v0  ;;  %1857 = vst [vmem:[#allocation3 + $0xc0] sm:$0xff] %v5313_v0 }
 0x122   : > { %1858 = vst [vmem:[#allocation3 + $0xc8] sm:$0xff] %v5313_v0  ;;  %1859 = vst [vmem:[#allocation3 + $0xd0] sm:$0x3] %v5313_v0 }
 0x123   : > { %1860 = vst [vmem:[#allocation3 + $0xd8] sm:$0xff] %v5313_v0  ;;  %1861 = vst [vmem:[#allocation3 + $0xe0] sm:$0xff] %v5313_v0 }
 0x124   : > { %1862 = vst [vmem:[#allocation3 + $0xe8] sm:$0x3] %v5313_v0  ;;  %1863 = vst [vmem:[#allocation3 + $0xf0] sm:$0xff] %v5313_v0 }
 0x125   : > { %1864 = vst [vmem:[#allocation3 + $0xf8] sm:$0xff] %v5313_v0  ;;  %1865 = vst [vmem:[#allocation3 + $0x100] sm:$0x3] %v5313_v0 }
 0x126   : > { %1866 = vst [vmem:[#allocation3 + $0x108] sm:$0xff] %v5313_v0  ;;  %1867 = vst [vmem:[#allocation3 + $0x110] sm:$0xff] %v5313_v0 }
 0x127   : > { %1868 = vst [vmem:[#allocation3 + $0x118] sm:$0x3] %v5313_v0  ;;  %1869 = vst [vmem:[#allocation3 + $0x120] sm:$0xff] %v5313_v0 }
 0x128   : > { %1870 = vst [vmem:[#allocation3 + $0x128] sm:$0xff] %v5313_v0  ;;  %1871 = vst [vmem:[#allocation3 + $0x130] sm:$0x3] %v5313_v0 }
 0x129   : > { %1872 = vst [vmem:[#allocation3 + $0x138] sm:$0xff] %v5313_v0  ;;  %1873 = vst [vmem:[#allocation3 + $0x140] sm:$0xff] %v5313_v0 }
 0x12a   : > { %1874 = vst [vmem:[#allocation3 + $0x148] sm:$0x3] %v5313_v0  ;;  %1875 = vst [vmem:[#allocation3 + $0x150] sm:$0xff] %v5313_v0 }
 0x12b   : > { %1876 = vst [vmem:[#allocation3 + $0x158] sm:$0xff] %v5313_v0  ;;  %1877 = vst [vmem:[#allocation3 + $0x160] sm:$0x3] %v5313_v0 }
 0x12c   : > { %1878 = vst [vmem:[#allocation3 + $0x168] sm:$0xff] %v5313_v0  ;;  %1879 = vst [vmem:[#allocation3 + $0x170] sm:$0xff] %v5313_v0 }
 0x12d   : > { %1880 = vst [vmem:[#allocation3 + $0x178] sm:$0x3] %v5313_v0  ;;  %1881 = vst [vmem:[#allocation3 + $0x180] sm:$0xff] %v5313_v0 }
 0x12e   : > { %1882 = vst [vmem:[#allocation3 + $0x188] sm:$0xff] %v5313_v0  ;;  %1883 = vst [vmem:[#allocation3 + $0x190] sm:$0x3] %v5313_v0 }
 0x12f   : > { %1884 = vst [vmem:[#allocation3 + $0x198] sm:$0xff] %v5313_v0  ;;  %1885 = vst [vmem:[#allocation3 + $0x1a0] sm:$0xff] %v5313_v0 }
 0x130   : > { %1886 = vst [vmem:[#allocation3 + $0x1a8] sm:$0x3] %v5313_v0  ;;  %8047 = vst [vmem:[#allocation25_spill] sm:$0xff] %v5854_v5 }
 0x131   : > { %8048 = vst [vmem:[#allocation26_spill] sm:$0xff] %v5857_v6  ;;  %8049 = vst [vmem:[#allocation27_spill] sm:$0xff] %v5860_v7 }
 0x132   : > { %595 = vst.msk [vmem:[#allocation2 + $0x19] sm:$0xff] %vm538_vm0, %v5851_v4  ;;  %596 = vst.msk [vmem:[#allocation2 + $0x21] sm:$0xff] %vm538_vm0, %v5854_v5 }
 0x133   : > { %597 = vst.msk [vmem:[#allocation2 + $0x31] sm:$0xff] %vm538_vm0, %v5857_v6  ;;  %598 = vst.msk [vmem:[#allocation2 + $0x39] sm:$0xff] %vm538_vm0, %v5860_v7 }
 0x134   : > { %8050 = vst [vmem:[#allocation28_spill] sm:$0xff] %v5891_v30  ;;  %8051 = vst [vmem:[#allocation29_spill] sm:$0xff] %v5894_v31 }
 0x135   : > { %599 = vst.msk [vmem:[#allocation2 + $0x49] sm:$0xff] %vm538_vm0, %v5891_v30  ;;  %600 = vst.msk [vmem:[#allocation2 + $0x51] sm:$0xff] %vm538_vm0, %v5894_v31 }
 0x136   : > { %8052 = vst [vmem:[#allocation30_spill] sm:$0xff] %v5905_v34  ;;  %8053 = vst [vmem:[#allocation31_spill] sm:$0xff] %v5908_v35 }
 0x137   : > { %8054 = vst [vmem:[#allocation32_spill] sm:$0xff] %v5911_v36  ;;  %601 = vst.msk [vmem:[#allocation2 + $0x61] sm:$0xff] %vm538_vm0, %v5905_v34 }
 0x138   : > { %602 = vst.msk [vmem:[#allocation2 + $0x69] sm:$0xff] %vm538_vm0, %v5908_v35  ;;  %603 = vst.msk [vmem:[#allocation2 + $0x79] sm:$0xff] %vm538_vm0, %v5911_v36 }
 0x139   : > { %v930_v39 = vld [vmem:[#allocation2 + $0x18] sm:$0xff]  ;;  %v931_v40 = vld [vmem:[#allocation2 + $0x20] sm:$0xff]  ;;  %8055 = vst [vmem:[#allocation33_spill] sm:$0xff] %v5948_v1  ;;  %8056 = vst [vmem:[#allocation34_spill] sm:$0xff] %v5951_v2 }
 0x13a   : > { %v1031_v41 = vld [vmem:[#allocation2 + $0x19] sm:$0xff]  ;;  %v967_v42 = vmul.f32 %v5882_v24, %v930_v39  ;;  %v968_v43 = vmul.f32 %v5882_v24, %v931_v40  ;;  %v1032_v44 = vld [vmem:[#allocation2 + $0x21] sm:$0xff]  ;;  %v5925_v51 = vld [vmem:[#allocation2 + $0x30] sm:$0xff]  ;;  %v666_v53 = vmul.f32 %v5870_v10, %v930_v39  ;;  %v667_v60 = vmul.f32 %v5870_v10, %v931_v40  ;;  %8057 = vst [vmem:[#allocation35_spill] sm:$0xff] %v5954_v3 }
 0x13b   : > { %v1068_v45 = vmul.f32 %v5884_v25, %v1031_v41  ;;  %v1132_v46 = vld [vmem:[#allocation2 + $0x1a] sm:$0xff]  ;;  %v1133_v47 = vld [vmem:[#allocation2 + $0x22] sm:$0xff]  ;;  %v1069_v48 = vmul.f32 %v5884_v25, %v1032_v44  ;;  %v1271_v56 = vmul.f32 %v5888_v29, %v5925_v51  ;;  %v5932_v57 = vld [vmem:[#allocation2 + $0x31] sm:$0xff]  ;;  %v767_v11 = vmul.f32 %v5874_v15, %v1031_v41  ;;  %604 = vst.msk [vmem:[#allocation2 + $0x81] sm:$0xff] %vm538_vm0, %v5948_v1 }
 0x13c   : > { %v1169_v49 = vmul.f32 %v5886_v26, %v1132_v46  ;;  %v1170_v50 = vmul.f32 %v5886_v26, %v1133_v47  ;;  %v5927_v52 = vld [vmem:[#allocation2 + $0x38] sm:$0xff]  ;;  %v999_v54 = vadd.f32 %v967_v42, %v898_v37  ;;  %v1000_v55 = vadd.f32 %v968_v43, %v899_v38  ;;  %605 = vst.msk [vmem:[#allocation2 + $0x91] sm:$0xff] %vm538_vm0, %v5951_v2 }
 0x13d   : > { %v5934_v58 = vld [vmem:[#allocation2 + $0x39] sm:$0xff]  ;;  %v1272_v61 = vmul.f32 %v5888_v29, %v5927_v52  ;;  %v1372_v62 = vmul.f32 %v5896_v32, %v5932_v57  ;;  %v768_v12 = vmul.f32 %v5874_v15, %v1032_v44  ;;  %606 = vst.msk [vmem:[#allocation2 + $0x99] sm:$0xff] %vm538_vm0, %v5954_v3  ;;  %8058 = vst [vmem:[#allocation36_spill] sm:$0xff] %v5965_v13 }
 0x13e   : > { %v5936_v59 = vld [vmem:[#allocation2 + $0x32] sm:$0xff]  ;;  %v1373_v63 = vmul.f32 %v5896_v32, %v5934_v58  ;;  %v1100_v8 = vadd.f32 %v1068_v45, %v999_v54  ;;  %v1101_v9 = vadd.f32 %v1069_v48, %v1000_v55  ;;  %8059 = vst [vmem:[#allocation37_spill] sm:$0xff] %v5968_v14  ;;  %8060 = vst [vmem:[#allocation38_spill] sm:$0xff] %v5971_v16  ;;  %v1437_v27 = vld [vmem:[#allocation2 + $0x3a] sm:$0xff] }
 0x13f   : > { %v1473_v0 = vmul.f32 %v5898_v33, %v5936_v59  ;;  %v868_v17 = vmul.f32 %v5878_v21, %v1132_v46  ;;  %v869_v18 = vmul.f32 %v5878_v21, %v1133_v47  ;;  %v969_v19 = vmul.f32 %v5882_v24, %v5925_v51  ;;  %607 = vst.msk [vmem:[#allocation2 + $0xa9] sm:$0xff] %vm538_vm0, %v5965_v13  ;;  %v5992_v46 = vld [vmem:[#allocation2 + $0x48] sm:$0xff]  ;;  %v5994_v47 = vld [vmem:[#allocation2 + $0x50] sm:$0xff] }
 0x140   : > { %v970_v20 = vmul.f32 %v5882_v24, %v5927_v52  ;;  %608 = vst.msk [vmem:[#allocation2 + $0xb1] sm:$0xff] %vm538_vm0, %v5968_v14  ;;  %609 = vst.msk [vmem:[#allocation2 + $0xc1] sm:$0xff] %vm538_vm0, %v5971_v16  ;;  %v1201_v22 = vadd.f32 %v1169_v49, %v1100_v8  ;;  %v1202_v23 = vadd.f32 %v1170_v50, %v1101_v9  ;;  %v5996_v48 = vld [vmem:[#allocation2 + $0x49] sm:$0xff]  ;;  %v6003_v54 = vld [vmem:[#allocation2 + $0x51] sm:$0xff] }
 0x141   : > { %v799_v28 = vadd.f32 %v767_v11, %v666_v53  ;;  %v800_v37 = vadd.f32 %v768_v12, %v667_v60  ;;  %v1474_v38 = vmul.f32 %v5898_v33, %v1437_v27  ;;  %v1070_v39 = vmul.f32 %v5884_v25, %v5932_v57  ;;  %v6010_v60 = vld [vmem:[%s5666_s28 + $0x78] sm:$0xff]  ;;  %v6015_v12 = vld [vmem:[%s5666_s28 + $0x80] sm:$0xff] }
 0x142   : > { %v1071_v40 = vmul.f32 %v5884_v25, %v5934_v58  ;;  %v1171_v41 = vmul.f32 %v5886_v26, %v5936_v59  ;;  %v1303_v42 = vadd.f32 %v1271_v56, %v1201_v22  ;;  %v1304_v43 = vadd.f32 %v1272_v61, %v1202_v23  ;;  %v6007_v56 = vld [vmem:[#allocation2 + $0x4a] sm:$0xff]  ;;  %8061 = vst [vmem:[#allocation39_spill] sm:$0xff] %v6010_v60 }
 0x143   : > { %v900_v44 = vadd.f32 %v868_v17, %v799_v28  ;;  %v901_v45 = vadd.f32 %v869_v18, %v800_v37  ;;  %v1172_v49 = vmul.f32 %v5886_v26, %v1437_v27  ;;  %v1273_v50 = vmul.f32 %v5888_v29, %v5992_v46  ;;  %610 = vst.msk [vmem:[#allocation2 + $0xc9] sm:$0xff] %vm538_vm0, %v6010_v60  ;;  %v6018_v17 = vld [vmem:[%s5666_s28 + $0x88] sm:$0xff]  ;;  %v6021_v18 = vld [vmem:[%s5666_s28 + $0x90] sm:$0xff] }
 0x144   : > { %v1274_v53 = vmul.f32 %v5888_v29, %v5994_v47  ;;  %v1374_v55 = vmul.f32 %v5896_v32, %v5996_v48  ;;  %v1404_v61 = vadd.f32 %v1372_v62, %v1303_v42  ;;  %v1405_v8 = vadd.f32 %v1373_v63, %v1304_v43  ;;  %8062 = vst [vmem:[#allocation40_spill] sm:$0xff] %v6015_v12  ;;  %v1439_v42 = vld [vmem:[#allocation2 + $0x52] sm:$0xff] }
 0x145   : > { %v1001_v9 = vadd.f32 %v969_v19, %v900_v44  ;;  %v1002_v11 = vadd.f32 %v970_v20, %v901_v45  ;;  %8063 = vst [vmem:[#allocation41_spill] sm:$0xff] %v6018_v17  ;;  %8064 = vst [vmem:[#allocation42_spill] sm:$0xff] %v6021_v18  ;;  %v1375_v22 = vmul.f32 %v5896_v32, %v6003_v54 }
 0x146   : > { %v1475_v23 = vmul.f32 %v5898_v33, %v6007_v56  ;;  %v668_v62 = vmul.f32 %v5870_v10, %v5925_v51  ;;  %v669_v63 = vmul.f32 %v5870_v10, %v5927_v52  ;;  %611 = vst.msk [vmem:[#allocation2 + $0xd9] sm:$0xff] %vm538_vm0, %v6015_v12  ;;  %612 = vst.msk [vmem:[#allocation2 + $0xe1] sm:$0xff] %vm538_vm0, %v6018_v17 }
 0x147   : > { %613 = vst.msk [vmem:[#allocation2 + $0xf1] sm:$0xff] %vm538_vm0, %v6021_v18  ;;  %v1505_v19 = vadd.f32 %v1473_v0, %v1404_v61  ;;  %v1506_v20 = vadd.f32 %v1474_v38, %v1405_v8  ;;  %v1102_v28 = vadd.f32 %v1070_v39, %v1001_v9  ;;  %v1103_v37 = vadd.f32 %v1071_v40, %v1002_v11  ;;  %v6057_v11 = vld [vmem:[#allocation2 + $0x60] sm:$0xff] }
 0x148   : > { %v769_v51 = vmul.f32 %v5874_v15, %v5932_v57  ;;  %v770_v52 = vmul.f32 %v5874_v15, %v5934_v58  ;;  %v870_v43 = vmul.f32 %v5878_v21, %v5936_v59  ;;  %v871_v44 = vmul.f32 %v5878_v21, %v1437_v27 }
 0x149   : > { %v1537_v45 = vpack.c.bf16 %v1506_v20, %v1505_v19  ;;  %v1203_v17 = vadd.f32 %v1171_v41, %v1102_v28  ;;  %v1204_v12 = vadd.f32 %v1172_v49, %v1103_v37  ;;  %v1476_v0 = vmul.f32 %v5898_v33, %v1439_v42  ;;  %v6067_v19 = vld [vmem:[#allocation2 + $0x69] sm:$0xff] }
 0x14a   : > { %v801_v38 = vadd.f32 %v769_v51, %v668_v62  ;;  %v802_v39 = vadd.f32 %v770_v52, %v669_v63  ;;  %v971_v40 = vmul.f32 %v5882_v24, %v5992_v46  ;;  %v972_v57 = vmul.f32 %v5882_v24, %v5994_v47  ;;  %v6059_v62 = vld [vmem:[#allocation2 + $0x68] sm:$0xff] }
 0x14b   : > { %4718 = vmatprep.mubr.msk.bf16.mxu0 %vm538_vm0, %v1537_v45  ;;  %v1305_v58 = vadd.f32 %v1273_v50, %v1203_v17  ;;  %v1306_v61 = vadd.f32 %v1274_v53, %v1204_v12  ;;  %v1072_v59 = vmul.f32 %v5884_v25, %v5996_v48  ;;  %v1073_v27 = vmul.f32 %v5884_v25, %v6003_v54  ;;  %v6065_v63 = vld [vmem:[#allocation2 + $0x61] sm:$0xff]  ;;  %v6086_v45 = vld [vmem:[%s5666_s28 + $0x98] sm:$0xff] }
 0x14c   : > { %v902_v41 = vadd.f32 %v870_v43, %v801_v38  ;;  %v903_v49 = vadd.f32 %v871_v44, %v802_v39  ;;  %v1173_v8 = vmul.f32 %v5886_v26, %v6007_v56  ;;  %v1174_v9 = vmul.f32 %v5886_v26, %v1439_v42  ;;  %8065 = vst [vmem:[#allocation43_spill] sm:$0xff] %v6086_v45 }
 0x14d   : > { %v1406_v50 = vadd.f32 %v1374_v55, %v1305_v58  ;;  %v1407_v53 = vadd.f32 %v1375_v22, %v1306_v61  ;;  %v1275_v12 = vmul.f32 %v5888_v29, %v6057_v11  ;;  %v1276_v17 = vmul.f32 %v5888_v29, %v6059_v62  ;;  %v6077_v22 = vld [vmem:[#allocation2 + $0x62] sm:$0xff]  ;;  %614 = vst.msk [vmem:[#allocation2 + $0xf9] sm:$0xff] %vm538_vm0, %v6086_v45 }
 0x14e   : > { %v1003_v20 = vadd.f32 %v971_v40, %v902_v41  ;;  %v1004_v28 = vadd.f32 %v972_v57, %v903_v49  ;;  %v6071_v37 = vmul.f32 %v5896_v32, %v6065_v63  ;;  %v6075_v55 = vmul.f32 %v5896_v32, %v6067_v19  ;;  %v6088_v40 = vld [vmem:[#allocation2 + $0x6a] sm:$0xff]  ;;  %v6097_v57 = vld [vmem:[%s5666_s28 + $0xa0] sm:$0xff] }
 0x14f   : > { %v1507_v51 = vadd.f32 %v1475_v23, %v1406_v50  ;;  %v1508_v52 = vadd.f32 %v1476_v0, %v1407_v53  ;;  %v6081_v43 = vmul.f32 %v5898_v33, %v6077_v22  ;;  %v670_v44 = vmul.f32 %v5870_v10, %v5992_v46  ;;  %8066 = vst [vmem:[#allocation44_spill] sm:$0xff] %v6097_v57  ;;  %v6100_v46 = vld [vmem:[%s5666_s28 + $0xa8] sm:$0xff]  ;;  %v6118_v41 = vld [vmem:[%s5666_s28 + $0xc0] sm:$0xff] }
 0x150   : > { %v1104_v38 = vadd.f32 %v1072_v59, %v1003_v20  ;;  %v1105_v39 = vadd.f32 %v1073_v27, %v1004_v28  ;;  %v671_v23 = vmul.f32 %v5870_v10, %v5994_v47  ;;  %v771_v0 = vmul.f32 %v5874_v15, %v5996_v48  ;;  %8067 = vst [vmem:[#allocation45_spill] sm:$0xff] %v6100_v46  ;;  %v6112_v48 = vld [vmem:[%s5666_s28 + $0xb0] sm:$0xff]  ;;  %v6115_v27 = vld [vmem:[%s5666_s28 + $0xb8] sm:$0xff] }
 0x151   : > { %v1538_v58 = vpack.c.bf16 %v1508_v52, %v1507_v51  ;;  %v772_v61 = vmul.f32 %v5874_v15, %v6003_v54  ;;  %v872_v59 = vmul.f32 %v5878_v21, %v6007_v56  ;;  %v873_v47 = vmul.f32 %v5878_v21, %v1439_v42  ;;  %615 = vst.msk [vmem:[#allocation2 + $0x109] sm:$0xff] %vm538_vm0, %v6097_v57  ;;  %v6127_v42 = vld [vmem:[%s5666_s28 + $0xc8] sm:$0xff]  ;;  %v6151_v52 = vld [vmem:[%s5666_s28 + $0xe0] sm:$0xff] }
 0x152   : > { %616 = vst.msk [vmem:[#allocation2 + $0x111] sm:$0xff] %vm538_vm0, %v6100_v46  ;;  %8068 = vst [vmem:[#allocation46_spill] sm:$0xff] %v6112_v48  ;;  %v1205_v54 = vadd.f32 %v1173_v8, %v1104_v38  ;;  %v1206_v49 = vadd.f32 %v1174_v9, %v1105_v39  ;;  %v803_v50 = vadd.f32 %v771_v0, %v670_v44  ;;  %v6132_v8 = vld [vmem:[%s5666_s28 + $0xd0] sm:$0xff]  ;;  %v6135_v9 = vld [vmem:[%s5666_s28 + $0xd8] sm:$0xff] }
 0x153   : > { %8069 = vst [vmem:[#allocation47_spill] sm:$0xff] %v6115_v27  ;;  %8070 = vst [vmem:[#allocation48_spill] sm:$0xff] %v6118_v41  ;;  %v973_v56 = vmul.f32 %v5882_v24, %v6057_v11  ;;  %4719 = vmatmul.mubr.msk.bf16.vlgmr.msra.gmra.mrb[0].mxu0 %vm538_vm0, %v1538_v58  ;;  %v1478_v53 = vmul.f32 %v5898_v33, %v6088_v40  ;;  %v804_v20 = vadd.f32 %v772_v61, %v671_v23  ;;  %v6154_v44 = vld [vmem:[%s5666_s28 + $0xe8] sm:$0xff]  ;;  %v6157_v38 = vld [vmem:[%s5666_s28 + $0xf0] sm:$0xff] }
 0x154   : > { %617 = vst.msk [vmem:[#allocation2 + $0x121] sm:$0xff] %vm538_vm0, %v6112_v48  ;;  %618 = vst.msk [vmem:[#allocation2 + $0x129] sm:$0xff] %vm538_vm0, %v6115_v27  ;;  %v974_v28 = vmul.f32 %v5882_v24, %v6059_v62  ;;  %v1074_v51 = vmul.f32 %v5884_v25, %v6065_v63  ;;  %v1307_v39 = vadd.f32 %v1275_v12, %v1205_v54  ;;  %v6161_v61 = vld [vmem:[#allocation2 + $0x78] sm:$0xff] }
 0x155   : > { %8071 = vst [vmem:[#allocation49_spill] sm:$0xff] %v6127_v42  ;;  %619 = vst.msk [vmem:[#allocation2 + $0x139] sm:$0xff] %vm538_vm0, %v6118_v41  ;;  %v1308_v23 = vadd.f32 %v1276_v17, %v1206_v49  ;;  %v904_v0 = vadd.f32 %v872_v59, %v803_v50  ;;  %v1075_v58 = vmul.f32 %v5884_v25, %v6067_v19  ;;  %v1241_v59 = vld [vmem:[#allocation2 + $0x80] sm:$0xff] }
 0x156   : > { %8072 = vst [vmem:[#allocation50_spill] sm:$0xff] %v6132_v8  ;;  %8073 = vst [vmem:[#allocation51_spill] sm:$0xff] %v6135_v9  ;;  %v1175_v12 = vmul.f32 %v5886_v26, %v6077_v22  ;;  %v1176_v17 = vmul.f32 %v5886_v26, %v6088_v40  ;;  %v1277_v54 = vmul.f32 %v5888_v29, %v6161_v61  ;;  %v1341_v49 = vld [vmem:[#allocation2 + $0x79] sm:$0xff]  ;;  %v1342_v50 = vld [vmem:[#allocation2 + $0x81] sm:$0xff] }
 0x157   : > { %620 = vst.msk [vmem:[#allocation2 + $0x141] sm:$0xff] %vm538_vm0, %v6127_v42  ;;  %621 = vst.msk [vmem:[#allocation2 + $0x151] sm:$0xff] %vm538_vm0, %v6132_v8  ;;  %v905_v8 = vadd.f32 %v873_v47, %v804_v20  ;;  %v1005_v47 = vadd.f32 %v973_v56, %v904_v0  ;;  %v1278_v20 = vmul.f32 %v5888_v29, %v1241_v59  ;;  %v6206_v0 = vld [vmem:[#allocation2 + $0x90] sm:$0xff] }
 0x158   : > { %622 = vst.msk [vmem:[#allocation2 + $0x159] sm:$0xff] %vm538_vm0, %v6135_v9  ;;  %8074 = vst [vmem:[#allocation52_spill] sm:$0xff] %v6151_v52  ;;  %v6168_v9 = vld [vmem:[%s5666_s28 + $0xf8] sm:$0xff]  ;;  %v1378_v41 = vmul.f32 %v5896_v32, %v1341_v49  ;;  %v1379_v27 = vmul.f32 %v5896_v32, %v1342_v50  ;;  %v773_v56 = vmul.f32 %v5874_v15, %v6065_v63  ;;  %s8133_s28 = sld [smem:[#allocation60_spill]] }
 0x159   : > { %8075 = vst [vmem:[#allocation53_spill] sm:$0xff] %v6154_v44  ;;  %8076 = vst [vmem:[#allocation54_spill] sm:$0xff] %v6157_v38  ;;  %v1006_v42 = vadd.f32 %v974_v28, %v905_v8  ;;  %v1106_v45 = vadd.f32 %v1074_v51, %v1005_v47  ;;  %v774_v8 = vmul.f32 %v5874_v15, %v6067_v19  ;;  %v1243_v47 = vld [vmem:[#allocation2 + $0x98] sm:$0xff] }
 0x15a   : > { %623 = vst.msk [vmem:[#allocation2 + $0x169] sm:$0xff] %vm538_vm0, %v6151_v52  ;;  %624 = vst.msk [vmem:[#allocation2 + $0x171] sm:$0xff] %vm538_vm0, %v6154_v44  ;;  %v1408_v44 = vadd.f32 %v6071_v37, %v1307_v39  ;;  %v1442_v52 = vld [vmem:[#allocation2 + $0x7a] sm:$0xff]  ;;  %v672_v37 = vmul.f32 %v5870_v10, %v6057_v11  ;;  %v1443_v11 = vld [vmem:[#allocation2 + $0x82] sm:$0xff] }
 0x15b   : > { %8077 = vst [vmem:[#allocation55_spill] sm:$0xff] %v6168_v9  ;;  %625 = vst.msk [vmem:[#allocation2 + $0x181] sm:$0xff] %vm538_vm0, %v6157_v38  ;;  %v1409_v38 = vadd.f32 %v6075_v55, %v1308_v23  ;;  %v1479_v48 = vmul.f32 %v5898_v33, %v1442_v52  ;;  %v1107_v39 = vadd.f32 %v1075_v58, %v1006_v42 }
 0x15c   : > { %626 = vst.msk [vmem:[#allocation2 + $0x189] sm:$0xff] %vm538_vm0, %v6168_v9  ;;  %v1509_v46 = vadd.f32 %v6081_v43, %v1408_v44  ;;  %v673_v55 = vmul.f32 %v5870_v10, %v6059_v62  ;;  %v1207_v23 = vadd.f32 %v1175_v12, %v1106_v45  ;;  %v874_v43 = vmul.f32 %v5878_v21, %v6077_v22 }
 0x15d   : > { %v1510_v57 = vadd.f32 %v1478_v53, %v1409_v38  ;;  %v875_v53 = vmul.f32 %v5878_v21, %v6088_v40  ;;  %v1208_v51 = vadd.f32 %v1176_v17, %v1107_v39  ;;  %v805_v42 = vadd.f32 %v773_v56, %v672_v37  ;;  %v1343_v56 = vld [vmem:[#allocation2 + $0x91] sm:$0xff] }
 0x15e   : > { %v806_v44 = vadd.f32 %v774_v8, %v673_v55  ;;  %v975_v62 = vmul.f32 %v5882_v24, %v6161_v61  ;;  %v1309_v63 = vadd.f32 %v1277_v54, %v1207_v23  ;;  %v1480_v19 = vmul.f32 %v5898_v33, %v1443_v11  ;;  %v1344_v8 = vld [vmem:[#allocation2 + $0x99] sm:$0xff]  ;;  %v1459_v60 = vld [vmem:[#allocation2 + $0x142] sm:$0xff]  ;;  %s7900_s24 = scalar_lea.hbm %s8133_s28, %s4665_s21 }
 0x15f   : > { %v1539_v28 = vpack.c.bf16 %v1510_v57, %v1509_v46  ;;  %v976_v45 = vmul.f32 %v5882_v24, %v1241_v59  ;;  %v1076_v57 = vmul.f32 %v5884_v25, %v1341_v49  ;;  %v1310_v22 = vadd.f32 %v1278_v20, %v1208_v51 }
 0x160   : > { %v906_v46 = vadd.f32 %v874_v43, %v805_v42  ;;  %v907_v38 = vadd.f32 %v875_v53, %v806_v44  ;;  %v1077_v40 = vmul.f32 %v5884_v25, %v1342_v50  ;;  %v1410_v58 = vadd.f32 %v1378_v41, %v1309_v63 }
 0x161   : > { %4722 = vmatprep.mubr.msk.bf16.mxu0 %vm538_vm0, %v1539_v28  ;;  %v1177_v12 = vmul.f32 %v5886_v26, %v1442_v52  ;;  %v1178_v17 = vmul.f32 %v5886_v26, %v1443_v11  ;;  %v1279_v54 = vmul.f32 %v5888_v29, %v6206_v0  ;;  %v1411_v37 = vadd.f32 %v1379_v27, %v1310_v22  ;;  %v1444_v28 = vld [vmem:[#allocation2 + $0x92] sm:$0xff] }
 0x162   : > { %v1007_v39 = vadd.f32 %v975_v62, %v906_v46  ;;  %v1008_v55 = vadd.f32 %v976_v45, %v907_v38  ;;  %v1280_v20 = vmul.f32 %v5888_v29, %v1243_v47  ;;  %v1511_v23 = vadd.f32 %v1479_v48, %v1410_v58  ;;  %v1445_v58 = vld [vmem:[#allocation2 + $0x9a] sm:$0xff] }
 0x163   : > { %v1380_v43 = vmul.f32 %v5896_v32, %v1343_v56  ;;  %v1381_v41 = vmul.f32 %v5896_v32, %v1344_v8  ;;  %v1481_v53 = vmul.f32 %v5898_v33, %v1444_v28  ;;  %v1512_v51 = vadd.f32 %v1480_v19, %v1411_v37 }
 0x164   : > { %v1108_v42 = vadd.f32 %v1076_v57, %v1007_v39  ;;  %v1109_v44 = vadd.f32 %v1077_v40, %v1008_v55  ;;  %v674_v27 = vmul.f32 %v5870_v10, %v6161_v61  ;;  %v675_v62 = vmul.f32 %v5870_v10, %v1241_v59  ;;  %v6226_v59 = vld [vmem:[#allocation2 + $0xa8] sm:$0xff] }
 0x165   : > { %v775_v63 = vmul.f32 %v5874_v15, %v1341_v49  ;;  %v776_v45 = vmul.f32 %v5874_v15, %v1342_v50  ;;  %v876_v48 = vmul.f32 %v5878_v21, %v1442_v52  ;;  %v1540_v22 = vpack.c.bf16 %v1512_v51, %v1511_v23  ;;  %v1346_v51 = vld [vmem:[#allocation2 + $0xb1] sm:$0xff] }
 0x166   : > { %v1209_v46 = vadd.f32 %v1177_v12, %v1108_v42  ;;  %v1210_v38 = vadd.f32 %v1178_v17, %v1109_v44  ;;  %v877_v9 = vmul.f32 %v5878_v21, %v1443_v11  ;;  %v977_v40 = vmul.f32 %v5882_v24, %v6206_v0  ;;  %v6231_v17 = vld [vmem:[#allocation2 + $0xb0] sm:$0xff] }
 0x167   : > { %v807_v19 = vadd.f32 %v775_v63, %v674_v27  ;;  %v808_v57 = vadd.f32 %v776_v45, %v675_v62  ;;  %v978_v61 = vmul.f32 %v5882_v24, %v1243_v47  ;;  %4723 = vmatmul.mubr.msk.bf16.gmra.mrb[4].mxu0 %vm538_vm0, %v1540_v22  ;;  %v1482_v52 = vmul.f32 %v5898_v33, %v1445_v58  ;;  %v6233_v11 = vld [vmem:[#allocation2 + $0xa9] sm:$0xff] }
 0x168   : > { %v1311_v49 = vadd.f32 %v1279_v54, %v1209_v46  ;;  %v1312_v50 = vadd.f32 %v1280_v20, %v1210_v38  ;;  %v1078_v12 = vmul.f32 %v5884_v25, %v1343_v56  ;;  %v1079_v55 = vmul.f32 %v5884_v25, %v1344_v8  ;;  %v1446_v42 = vld [vmem:[#allocation2 + $0xaa] sm:$0xff]  ;;  %v1447_v38 = vld [vmem:[#allocation2 + $0xb2] sm:$0xff] }
 0x169   : > { %v908_v37 = vadd.f32 %v876_v48, %v807_v19  ;;  %v909_v39 = vadd.f32 %v877_v9, %v808_v57  ;;  %v1179_v23 = vmul.f32 %v5886_v26, %v1444_v28  ;;  %v1180_v54 = vmul.f32 %v5886_v26, %v1445_v58 }
 0x16a   : > { %v1412_v44 = vadd.f32 %v1380_v43, %v1311_v49  ;;  %v1413_v27 = vadd.f32 %v1381_v41, %v1312_v50  ;;  %v1281_v20 = vmul.f32 %v5888_v29, %v6226_v59  ;;  %v1282_v45 = vmul.f32 %v5888_v29, %v6231_v17 }
 0x16b   : > { %v1009_v62 = vadd.f32 %v977_v40, %v908_v37  ;;  %v1010_v63 = vadd.f32 %v978_v61, %v909_v39  ;;  %v1382_v9 = vmul.f32 %v5896_v32, %v6233_v11  ;;  %v1383_v46 = vmul.f32 %v5896_v32, %v1346_v51 }
 0x16c   : > { %v1513_v48 = vadd.f32 %v1481_v53, %v1412_v44  ;;  %v1514_v22 = vadd.f32 %v1482_v52, %v1413_v27  ;;  %v1483_v43 = vmul.f32 %v5898_v33, %v1446_v42  ;;  %v676_v57 = vmul.f32 %v5870_v10, %v6206_v0 }
 0x16d   : > { %v1110_v41 = vadd.f32 %v1078_v12, %v1009_v62  ;;  %v1111_v19 = vadd.f32 %v1079_v55, %v1010_v63  ;;  %v677_v40 = vmul.f32 %v5870_v10, %v1243_v47  ;;  %v777_v49 = vmul.f32 %v5874_v15, %v1343_v56  ;;  %v6259_v56 = vld [vmem:[#allocation2 + $0xc0] sm:$0xff]  ;;  %v6268_v62 = vld [vmem:[#allocation2 + $0xc9] sm:$0xff] }
 0x16e   : > { %v1541_v61 = vpack.c.bf16 %v1514_v22, %v1513_v48  ;;  %v778_v50 = vmul.f32 %v5874_v15, %v1344_v8  ;;  %v878_v53 = vmul.f32 %v5878_v21, %v1444_v28  ;;  %v1484_v39 = vmul.f32 %v5898_v33, %v1447_v38  ;;  %v6261_v8 = vld [vmem:[#allocation2 + $0xc8] sm:$0xff] }
 0x16f   : > { %v1211_v52 = vadd.f32 %v1179_v23, %v1110_v41  ;;  %v1212_v37 = vadd.f32 %v1180_v54, %v1111_v19  ;;  %v879_v44 = vmul.f32 %v5878_v21, %v1445_v58  ;;  %v809_v12 = vadd.f32 %v777_v49, %v676_v57  ;;  %v6266_v54 = vld [vmem:[#allocation2 + $0xc1] sm:$0xff] }
 0x170   : > { %4726 = vmatprep.mubr.msk.bf16.mxu0 %vm538_vm0, %v1541_v61  ;;  %v810_v55 = vadd.f32 %v778_v50, %v677_v40  ;;  %v979_v0 = vmul.f32 %v5882_v24, %v6226_v59  ;;  %v980_v47 = vmul.f32 %v5882_v24, %v6231_v17  ;;  %v1080_v27 = vmul.f32 %v5884_v25, %v6233_v11  ;;  %v1448_v19 = vld [vmem:[#allocation2 + $0xc2] sm:$0xff] }
 0x171   : > { %v1313_v28 = vadd.f32 %v1281_v20, %v1211_v52  ;;  %v1314_v23 = vadd.f32 %v1282_v45, %v1212_v37  ;;  %v1081_v58 = vmul.f32 %v5884_v25, %v1346_v51  ;;  %v910_v63 = vadd.f32 %v878_v53, %v809_v12 }
 0x172   : > { %v911_v48 = vadd.f32 %v879_v44, %v810_v55  ;;  %v1181_v22 = vmul.f32 %v5886_v26, %v1446_v42  ;;  %v1182_v41 = vmul.f32 %v5886_v26, %v1447_v38  ;;  %v1283_v20 = vmul.f32 %v5888_v29, %v6259_v56 }
 0x173   : > { %v1414_v57 = vadd.f32 %v1382_v9, %v1313_v28  ;;  %v1415_v40 = vadd.f32 %v1383_v46, %v1314_v23  ;;  %v1284_v45 = vmul.f32 %v5888_v29, %v6261_v8  ;;  %v1011_v61 = vadd.f32 %v979_v0, %v910_v63 }
 0x174   : > { %v1012_v49 = vadd.f32 %v980_v47, %v911_v48  ;;  %v1384_v50 = vmul.f32 %v5896_v32, %v6266_v54  ;;  %v1385_v53 = vmul.f32 %v5896_v32, %v6268_v62  ;;  %v1485_v44 = vmul.f32 %v5898_v33, %v1448_v19  ;;  %v1449_v48 = vld [vmem:[#allocation2 + $0xca] sm:$0xff] }
 0x175   : > { %v1515_v52 = vadd.f32 %v1483_v43, %v1414_v57  ;;  %v1516_v37 = vadd.f32 %v1484_v39, %v1415_v40  ;;  %v678_v9 = vmul.f32 %v5870_v10, %v6226_v59  ;;  %v1112_v46 = vadd.f32 %v1080_v27, %v1011_v61 }
 0x176   : > { %v1113_v12 = vadd.f32 %v1081_v58, %v1012_v49  ;;  %v679_v55 = vmul.f32 %v5870_v10, %v6231_v17  ;;  %v779_v0 = vmul.f32 %v5874_v15, %v6233_v11  ;;  %v780_v28 = vmul.f32 %v5874_v15, %v1346_v51 }
 0x177   : > { %v1542_v47 = vpack.c.bf16 %v1516_v37, %v1515_v52  ;;  %v880_v23 = vmul.f32 %v5878_v21, %v1446_v42  ;;  %v881_v43 = vmul.f32 %v5878_v21, %v1447_v38  ;;  %v1213_v39 = vadd.f32 %v1181_v22, %v1112_v46  ;;  %v1249_v52 = vld [vmem:[#allocation2 + $0xe0] sm:$0xff] }
 0x178   : > { %v1214_v63 = vadd.f32 %v1182_v41, %v1113_v12  ;;  %v811_v57 = vadd.f32 %v779_v0, %v678_v9  ;;  %v981_v59 = vmul.f32 %v5882_v24, %v6259_v56  ;;  %v1486_v17 = vmul.f32 %v5898_v33, %v1449_v48  ;;  %v6300_v41 = vld [vmem:[#allocation2 + $0xd8] sm:$0xff] }
 0x179   : > { %4727 = vmatmul.mubr.msk.bf16.gmra.mrb[8].mxu0 %vm538_vm0, %v1542_v47  ;;  %v812_v27 = vadd.f32 %v780_v28, %v679_v55  ;;  %v982_v11 = vmul.f32 %v5882_v24, %v6261_v8  ;;  %v1082_v51 = vmul.f32 %v5884_v25, %v6266_v54  ;;  %v1315_v42 = vadd.f32 %v1283_v20, %v1213_v39  ;;  %v1350_v55 = vld [vmem:[#allocation2 + $0xe1] sm:$0xff] }
 0x17a   : > { %v1316_v38 = vadd.f32 %v1284_v45, %v1214_v63  ;;  %v912_v58 = vadd.f32 %v880_v23, %v811_v57  ;;  %v1083_v22 = vmul.f32 %v5884_v25, %v6268_v62  ;;  %v1183_v61 = vmul.f32 %v5886_v26, %v1448_v19  ;;  %v1349_v45 = vld [vmem:[#allocation2 + $0xd9] sm:$0xff] }
 0x17b   : > { %v913_v40 = vadd.f32 %v881_v43, %v812_v27  ;;  %v1184_v49 = vmul.f32 %v5886_v26, %v1449_v48  ;;  %v1285_v37 = vmul.f32 %v5888_v29, %v6300_v41  ;;  %v1416_v9 = vadd.f32 %v1384_v50, %v1315_v42  ;;  %v1450_v0 = vld [vmem:[#allocation2 + $0xda] sm:$0xff] }
 0x17c   : > { %v1417_v46 = vadd.f32 %v1385_v53, %v1316_v38  ;;  %v1013_v12 = vadd.f32 %v981_v59, %v912_v58  ;;  %v1286_v20 = vmul.f32 %v5888_v29, %v1249_v52  ;;  %v1386_v28 = vmul.f32 %v5896_v32, %v1349_v45 }
 0x17d   : > { %v1014_v47 = vadd.f32 %v982_v11, %v913_v40  ;;  %v1387_v23 = vmul.f32 %v5896_v32, %v1350_v55  ;;  %v1487_v43 = vmul.f32 %v5898_v33, %v1450_v0  ;;  %v1517_v39 = vadd.f32 %v1485_v44, %v1416_v9 }
 0x17e   : > { %v1518_v63 = vadd.f32 %v1486_v17, %v1417_v46  ;;  %v1114_v57 = vadd.f32 %v1082_v51, %v1013_v12  ;;  %v680_v50 = vmul.f32 %v5870_v10, %v6259_v56  ;;  %v681_v59 = vmul.f32 %v5870_v10, %v6261_v8  ;;  %v1451_v51 = vld [vmem:[#allocation2 + $0xe2] sm:$0xff] }
 0x17f   : > { %v1115_v53 = vadd.f32 %v1083_v22, %v1014_v47  ;;  %v781_v27 = vmul.f32 %v5874_v15, %v6266_v54  ;;  %v782_v11 = vmul.f32 %v5874_v15, %v6268_v62  ;;  %v882_v58 = vmul.f32 %v5878_v21, %v1448_v19 }
 0x180   : > { %v1543_v42 = vpack.c.bf16 %v1518_v63, %v1517_v39  ;;  %v1215_v38 = vadd.f32 %v1183_v61, %v1114_v57  ;;  %v883_v44 = vmul.f32 %v5878_v21, %v1449_v48  ;;  %v983_v22 = vmul.f32 %v5882_v24, %v6300_v41  ;;  %v1251_v63 = vld [vmem:[#allocation2 + $0xf8] sm:$0xff] }
 0x181   : > { %v1216_v17 = vadd.f32 %v1184_v49, %v1115_v53  ;;  %v813_v40 = vadd.f32 %v781_v27, %v680_v50  ;;  %v814_v56 = vadd.f32 %v782_v11, %v681_v59  ;;  %v1488_v54 = vmul.f32 %v5898_v33, %v1451_v51  ;;  %v6327_v49 = vld [vmem:[#allocation2 + $0xf0] sm:$0xff]  ;;  %v1352_v27 = vld [vmem:[#allocation2 + $0xf9] sm:$0xff] }
 0x182   : > { %4730 = vmatprep.mubr.msk.bf16.mxu0 %vm538_vm0, %v1543_v42  ;;  %v1317_v8 = vadd.f32 %v1285_v37, %v1215_v38  ;;  %v984_v62 = vmul.f32 %v5882_v24, %v1249_v52  ;;  %v1084_v61 = vmul.f32 %v5884_v25, %v1349_v45  ;;  %v1085_v48 = vmul.f32 %v5884_v25, %v1350_v55  ;;  %v1351_v59 = vld [vmem:[#allocation2 + $0xf1] sm:$0xff] }
 0x183   : > { %v1318_v9 = vadd.f32 %v1286_v20, %v1216_v17  ;;  %v914_v19 = vadd.f32 %v882_v58, %v813_v40  ;;  %v915_v46 = vadd.f32 %v883_v44, %v814_v56  ;;  %v1185_v47 = vmul.f32 %v5886_v26, %v1450_v0  ;;  %v1452_v11 = vld [vmem:[#allocation2 + $0xf2] sm:$0xff] }
 0x184   : > { %v1418_v12 = vadd.f32 %v1386_v28, %v1317_v8  ;;  %v1186_v39 = vmul.f32 %v5886_v26, %v1451_v51  ;;  %v1287_v37 = vmul.f32 %v5888_v29, %v6327_v49  ;;  %v1288_v20 = vmul.f32 %v5888_v29, %v1251_v63 }
 0x185   : > { %v1419_v57 = vadd.f32 %v1387_v23, %v1318_v9  ;;  %v1015_v50 = vadd.f32 %v983_v22, %v914_v19  ;;  %v1016_v53 = vadd.f32 %v984_v62, %v915_v46  ;;  %v1388_v38 = vmul.f32 %v5896_v32, %v1351_v59 }
 0x186   : > { %v1519_v42 = vadd.f32 %v1487_v43, %v1418_v12  ;;  %v1389_v28 = vmul.f32 %v5896_v32, %v1352_v27  ;;  %v1489_v58 = vmul.f32 %v5898_v33, %v1452_v11  ;;  %v682_v23 = vmul.f32 %v5870_v10, %v6300_v41  ;;  %v1453_v12 = vld [vmem:[#allocation2 + $0xfa] sm:$0xff] }
 0x187   : > { %v1520_v44 = vadd.f32 %v1488_v54, %v1419_v57  ;;  %v1116_v17 = vadd.f32 %v1084_v61, %v1015_v50  ;;  %v1117_v40 = vadd.f32 %v1085_v48, %v1016_v53  ;;  %v683_v56 = vmul.f32 %v5870_v10, %v1249_v52  ;;  %v6355_v50 = vld [vmem:[#allocation2 + $0x110] sm:$0xff] }
 0x188   : > { %v783_v22 = vmul.f32 %v5874_v15, %v1349_v45  ;;  %v784_v8 = vmul.f32 %v5874_v15, %v1350_v55  ;;  %v884_v43 = vmul.f32 %v5878_v21, %v1450_v0  ;;  %v885_v46 = vmul.f32 %v5878_v21, %v1451_v51  ;;  %v6359_v53 = vld [vmem:[#allocation2 + $0x109] sm:$0xff] }
 0x189   : > { %v1544_v62 = vpack.c.bf16 %v1520_v44, %v1519_v42  ;;  %v1217_v9 = vadd.f32 %v1185_v47, %v1116_v17  ;;  %v1218_v19 = vadd.f32 %v1186_v39, %v1117_v40  ;;  %v985_v48 = vmul.f32 %v5882_v24, %v6327_v49  ;;  %v6352_v47 = vld [vmem:[#allocation2 + $0x108] sm:$0xff]  ;;  %v6363_v44 = vld [vmem:[#allocation2 + $0x111] sm:$0xff] }
 0x18a   : > { %v815_v54 = vadd.f32 %v783_v22, %v682_v23  ;;  %v816_v61 = vadd.f32 %v784_v8, %v683_v56  ;;  %v986_v41 = vmul.f32 %v5882_v24, %v1251_v63  ;;  %v1490_v15 = vmul.f32 %v5898_v33, %v1453_v12  ;;  %v6373_v8 = vld [vmem:[#allocation7] ss:$0 sm:$0xff] }
 0x18b   : > { %4731 = vmatmul.mubr.msk.bf16.gmra.mrb[12].mxu0 %vm538_vm0, %v1544_v62  ;;  %v1319_v10 = vadd.f32 %v1287_v37, %v1217_v9  ;;  %v1320_v52 = vadd.f32 %v1288_v20, %v1218_v19  ;;  %v1086_v45 = vmul.f32 %v5884_v25, %v1351_v59  ;;  %v1087_v21 = vmul.f32 %v5884_v25, %v1352_v27  ;;  %v1455_v9 = vld [vmem:[#allocation2 + $0x112] sm:$0xff]  ;;  %v6378_v19 = vld [vmem:[#allocation7 + $0x1] ss:$0 sm:$0xff] }
 0x18c   : > { %v916_v55 = vadd.f32 %v884_v43, %v815_v54  ;;  %v917_v0 = vadd.f32 %v885_v46, %v816_v61  ;;  %v1187_v51 = vmul.f32 %v5886_v26, %v1452_v11  ;;  %v1188_v24 = vmul.f32 %v5886_v26, %v1453_v12  ;;  %v6382_v46 = vld [vmem:[#allocation7 + $0x2] ss:$0 sm:$0xff] }
 0x18d   : > { %v1420_v39 = vadd.f32 %v1388_v38, %v1319_v10  ;;  %v1421_v57 = vadd.f32 %v1389_v28, %v1320_v52  ;;  %v1289_v37 = vmul.f32 %v5888_v29, %v6352_v47  ;;  %v1290_v25 = vmul.f32 %v5888_v29, %v6355_v50  ;;  %v6367_v28 = vld [vmem:[#allocation2 + $0x10a] sm:$0xff]  ;;  %v6390_v52 = vld [vmem:[#allocation7 + $0x3] ss:$0 sm:$0xff] }
 0x18e   : > { %v1017_v20 = vadd.f32 %v985_v48, %v916_v55  ;;  %v1018_v42 = vadd.f32 %v986_v41, %v917_v0  ;;  %v1390_v38 = vmul.f32 %v5896_v32, %v6359_v53  ;;  %v1391_v40 = vmul.f32 %v5896_v32, %v6363_v44  ;;  %v6385_v48 = vld [vmem:[#allocation7 + $0x8] ss:$0 sm:$0xff] }
 0x18f   : > { %v1521_v26 = vadd.f32 %v1489_v58, %v1420_v39  ;;  %v1522_v17 = vadd.f32 %v1490_v15, %v1421_v57  ;;  %v1491_v23 = vmul.f32 %v5898_v33, %v6367_v28  ;;  %v684_v29 = vmul.f32 %v6373_v8, %v6327_v49 }
 0x190   : > { %v1118_v56 = vadd.f32 %v1086_v45, %v1017_v20  ;;  %v1119_v22 = vadd.f32 %v1087_v21, %v1018_v42  ;;  %v685_v43 = vmul.f32 %v6373_v8, %v1251_v63  ;;  %v785_v58 = vmul.f32 %v6378_v19, %v1351_v59  ;;  %v6396_v45 = vld [vmem:[#allocation7 + $0x4] ss:$0 sm:$0xff] }
 0x191   : > { %v1545_v62 = vpack.c.bf16 %v1522_v17, %v1521_v26  ;;  %v786_v32 = vmul.f32 %v6378_v19, %v1352_v27  ;;  %v886_v33 = vmul.f32 %v6382_v46, %v1452_v11  ;;  %v1492_v49 = vmul.f32 %v6385_v48, %v1455_v9 }
 0x192   : > { %v1219_v54 = vadd.f32 %v1187_v51, %v1118_v56  ;;  %v1220_v61 = vadd.f32 %v1188_v24, %v1119_v22  ;;  %v887_v63 = vmul.f32 %v6382_v46, %v1453_v12  ;;  %v817_v41 = vadd.f32 %v785_v58, %v684_v29  ;;  %v6402_v51 = vld [vmem:[#allocation7 + $0x5] ss:$0 sm:$0xff]  ;;  %v1356_v22 = vld [vmem:[#allocation2 + $0x129] sm:$0xff] }
 0x193   : > { %4734 = vmatprep.mubr.msk.bf16.mxu0 %vm538_vm0, %v1545_v62  ;;  %v818_v10 = vadd.f32 %v786_v32, %v685_v43  ;;  %v987_v59 = vmul.f32 %v6390_v52, %v6352_v47  ;;  %v988_v27 = vmul.f32 %v6390_v52, %v6355_v50  ;;  %v1088_v55 = vmul.f32 %v6396_v45, %v6359_v53  ;;  %v1254_v24 = vld [vmem:[#allocation2 + $0x120] sm:$0xff] }
 0x194   : > { %v1321_v11 = vadd.f32 %v1289_v37, %v1219_v54  ;;  %v1322_v15 = vadd.f32 %v1290_v25, %v1220_v61  ;;  %v1089_v12 = vmul.f32 %v6396_v45, %v6363_v44  ;;  %v918_v0 = vadd.f32 %v886_v33, %v817_v41  ;;  %v1255_v37 = vld [vmem:[#allocation2 + $0x128] sm:$0xff]  ;;  %v6407_v25 = vld [vmem:[#allocation7 + $0x6] ss:$0 sm:$0xff]  ;;  %v6411_v62 = vld [vmem:[#allocation7 + $0x7] ss:$0 sm:$0xff] }
 0x195   : > { %v919_v21 = vadd.f32 %v887_v63, %v818_v10  ;;  %v1189_v39 = vmul.f32 %v6402_v51, %v6367_v28  ;;  %v1190_v57 = vmul.f32 %v6402_v51, %v1455_v9  ;;  %v1291_v26 = vmul.f32 %v6407_v25, %v1254_v24  ;;  %v1355_v56 = vld [vmem:[#allocation2 + $0x121] sm:$0xff] }
 0x196   : > { %v1422_v20 = vadd.f32 %v1390_v38, %v1321_v11  ;;  %v1423_v42 = vadd.f32 %v1391_v40, %v1322_v15  ;;  %v1292_v17 = vmul.f32 %v6407_v25, %v1255_v37  ;;  %v1019_v29 = vadd.f32 %v987_v59, %v918_v0  ;;  %v1456_v33 = vld [vmem:[#allocation2 + $0x122] sm:$0xff] }
 0x197   : > { %v1020_v43 = vadd.f32 %v988_v27, %v919_v21  ;;  %v1392_v58 = vmul.f32 %v6411_v62, %v1355_v56  ;;  %v1393_v32 = vmul.f32 %v6411_v62, %v1356_v22  ;;  %v1493_v40 = vmul.f32 %v6385_v48, %v1456_v33 }
 0x198   : > { %v1523_v54 = vadd.f32 %v1491_v23, %v1422_v20  ;;  %v1524_v38 = vadd.f32 %v1492_v49, %v1423_v42  ;;  %v686_v61 = vmul.f32 %v6373_v8, %v6352_v47  ;;  %v1120_v63 = vadd.f32 %v1088_v55, %v1019_v29  ;;  %v1457_v47 = vld [vmem:[#allocation2 + $0x12a] sm:$0xff] }
 0x199   : > { %v1121_v41 = vadd.f32 %v1089_v12, %v1020_v43  ;;  %v687_v10 = vmul.f32 %v6373_v8, %v6355_v50  ;;  %v787_v59 = vmul.f32 %v6378_v19, %v6359_v53  ;;  %v788_v11 = vmul.f32 %v6378_v19, %v6363_v44 }
 0x19a   : > { %v1546_v27 = vpack.c.bf16 %v1524_v38, %v1523_v54  ;;  %v888_v23 = vmul.f32 %v6382_v46, %v6367_v28  ;;  %v889_v49 = vmul.f32 %v6382_v46, %v1455_v9  ;;  %v1221_v15 = vadd.f32 %v1189_v39, %v1120_v63  ;;  %v1256_v39 = vld [vmem:[#allocation2 + $0x138] sm:$0xff]  ;;  %v1257_v54 = vld [vmem:[#allocation2 + $0x140] sm:$0xff] }
 0x19b   : > { %v1222_v0 = vadd.f32 %v1190_v57, %v1121_v41  ;;  %v819_v55 = vadd.f32 %v787_v59, %v686_v61  ;;  %v989_v12 = vmul.f32 %v6390_v52, %v1254_v24  ;;  %v1494_v50 = vmul.f32 %v6385_v48, %v1457_v47  ;;  %v1357_v59 = vld [vmem:[#allocation2 + $0x139] sm:$0xff] }
 0x19c   : > { %4735 = vmatmul.mubr.msk.bf16.gmra.mrb[16].mxu0 %vm538_vm0, %v1546_v27  ;;  %v820_v53 = vadd.f32 %v788_v11, %v687_v10  ;;  %v990_v21 = vmul.f32 %v6390_v52, %v1255_v37  ;;  %v1090_v44 = vmul.f32 %v6396_v45, %v1355_v56  ;;  %v1323_v20 = vadd.f32 %v1291_v26, %v1221_v15  ;;  %v1358_v26 = vld [vmem:[#allocation2 + $0x141] sm:$0xff] }
 0x19d   : > { %v1324_v42 = vadd.f32 %v1292_v17, %v1222_v0  ;;  %v920_v28 = vadd.f32 %v888_v23, %v819_v55  ;;  %v1091_v9 = vmul.f32 %v6396_v45, %v1356_v22  ;;  %v1191_v29 = vmul.f32 %v6402_v51, %v1456_v33  ;;  %v1458_v17 = vld [vmem:[#allocation2 + $0x13a] sm:$0xff] }
 0x19e   : > { %v921_v57 = vadd.f32 %v889_v49, %v820_v53  ;;  %v1192_v43 = vmul.f32 %v6402_v51, %v1457_v47  ;;  %v1293_v38 = vmul.f32 %v6407_v25, %v1256_v39  ;;  %v1424_v61 = vadd.f32 %v1392_v58, %v1323_v20 }
 0x19f   : > { %v1425_v63 = vadd.f32 %v1393_v32, %v1324_v42  ;;  %v1021_v41 = vadd.f32 %v989_v12, %v920_v28  ;;  %v1294_v10 = vmul.f32 %v6407_v25, %v1257_v54  ;;  %v1394_v11 = vmul.f32 %v6411_v62, %v1357_v59 }
 0x1a0   : > { %v1022_v27 = vadd.f32 %v990_v21, %v921_v57  ;;  %v1395_v23 = vmul.f32 %v6411_v62, %v1358_v26  ;;  %v1495_v49 = vmul.f32 %v6385_v48, %v1458_v17  ;;  %v1525_v15 = vadd.f32 %v1493_v40, %v1424_v61 }
 0x1a1   : > { %v1526_v0 = vadd.f32 %v1494_v50, %v1425_v63  ;;  %v1122_v55 = vadd.f32 %v1090_v44, %v1021_v41  ;;  %v688_v53 = vmul.f32 %v6373_v8, %v1254_v24  ;;  %v689_v32 = vmul.f32 %v6373_v8, %v1255_v37  ;;  %v1258_v41 = vld [vmem:[#allocation2 + $0x150] sm:$0xff] }
 0x1a2   : > { %v1123_v58 = vadd.f32 %v1091_v9, %v1022_v27  ;;  %v789_v12 = vmul.f32 %v6378_v19, %v1355_v56  ;;  %v790_v20 = vmul.f32 %v6378_v19, %v1356_v22  ;;  %v890_v28 = vmul.f32 %v6382_v46, %v1456_v33 }
 0x1a3   : > { %v1547_v42 = vpack.c.bf16 %v1526_v0, %v1525_v15  ;;  %v1223_v21 = vadd.f32 %v1191_v29, %v1122_v55  ;;  %v891_v57 = vmul.f32 %v6382_v46, %v1457_v47  ;;  %v991_v44 = vmul.f32 %v6390_v52, %v1256_v39  ;;  %v1259_v0 = vld [vmem:[#allocation2 + $0x158] sm:$0xff] }
 0x1a4   : > { %v1224_v18 = vadd.f32 %v1192_v43, %v1123_v58  ;;  %v821_v40 = vadd.f32 %v789_v12, %v688_v53  ;;  %v822_v50 = vadd.f32 %v790_v20, %v689_v32  ;;  %v1496_v37 = vmul.f32 %v6385_v48, %v1459_v60  ;;  %v1359_v53 = vld [vmem:[#allocation2 + $0x151] sm:$0xff]  ;;  %v1360_v58 = vld [vmem:[#allocation2 + $0x159] sm:$0xff] }
 0x1a5   : > { %4738 = vmatprep.mubr.msk.bf16.mxu0 %vm538_vm0, %v1547_v42  ;;  %v1325_v24 = vadd.f32 %v1293_v38, %v1223_v21  ;;  %v992_v56 = vmul.f32 %v6390_v52, %v1257_v54  ;;  %v1092_v22 = vmul.f32 %v6396_v45, %v1357_v59  ;;  %v1093_v47 = vmul.f32 %v6396_v45, %v1358_v26 }
 0x1a6   : > { %v1326_v9 = vadd.f32 %v1294_v10, %v1224_v18  ;;  %v922_v29 = vadd.f32 %v890_v28, %v821_v40  ;;  %v923_v33 = vadd.f32 %v891_v57, %v822_v50  ;;  %v1193_v61 = vmul.f32 %v6402_v51, %v1458_v17 }
 0x1a7   : > { %v1426_v43 = vadd.f32 %v1394_v11, %v1325_v24  ;;  %v1194_v63 = vmul.f32 %v6402_v51, %v1459_v60  ;;  %v1295_v55 = vmul.f32 %v6407_v25, %v1258_v41  ;;  %v1296_v18 = vmul.f32 %v6407_v25, %v1259_v0 }
 0x1a8   : > { %v1427_v27 = vadd.f32 %v1395_v23, %v1326_v9  ;;  %v1023_v15 = vadd.f32 %v991_v44, %v922_v29  ;;  %v1024_v38 = vadd.f32 %v992_v56, %v923_v33  ;;  %v1396_v10 = vmul.f32 %v6411_v62, %v1359_v53  ;;  %v1460_v56 = vld [vmem:[#allocation2 + $0x152] sm:$0xff]  ;;  %v1461_v9 = vld [vmem:[#allocation2 + $0x15a] sm:$0xff] }
 0x1a9   : > { %v1527_v32 = vadd.f32 %v1495_v49, %v1426_v43  ;;  %v1397_v11 = vmul.f32 %v6411_v62, %v1360_v58  ;;  %v690_v21 = vmul.f32 %v6373_v8, %v1256_v39  ;;  %v691_v23 = vmul.f32 %v6373_v8, %v1257_v54 }
 0x1aa   : > { %v1528_v12 = vadd.f32 %v1496_v37, %v1427_v27  ;;  %v1124_v20 = vadd.f32 %v1092_v22, %v1023_v15  ;;  %v1125_v42 = vadd.f32 %v1093_v47, %v1024_v38  ;;  %v791_v28 = vmul.f32 %v6378_v19, %v1357_v59  ;;  %v1260_v38 = vld [vmem:[#allocation2 + $0x168] sm:$0xff] }
 0x1ab   : > { %v792_v57 = vmul.f32 %v6378_v19, %v1358_v26  ;;  %v892_v40 = vmul.f32 %v6382_v46, %v1458_v17  ;;  %v893_v24 = vmul.f32 %v6382_v46, %v1459_v60  ;;  %v993_v29 = vmul.f32 %v6390_v52, %v1258_v41 }
 0x1ac   : > { %v1548_v49 = vpack.c.bf16 %v1528_v12, %v1527_v32  ;;  %v1225_v50 = vadd.f32 %v1193_v61, %v1124_v20  ;;  %v1226_v44 = vadd.f32 %v1194_v63, %v1125_v42  ;;  %v823_v37 = vadd.f32 %v791_v28, %v690_v21  ;;  %v1261_v32 = vld [vmem:[#allocation2 + $0x170] sm:$0xff] }
 0x1ad   : > { %v824_v22 = vadd.f32 %v792_v57, %v691_v23  ;;  %v994_v39 = vmul.f32 %v6390_v52, %v1259_v0  ;;  %v1497_v26 = vmul.f32 %v6385_v48, %v1460_v56  ;;  %v1498_v17 = vmul.f32 %v6385_v48, %v1461_v9  ;;  %v1361_v42 = vld [vmem:[#allocation2 + $0x169] sm:$0xff]  ;;  %v1362_v21 = vld [vmem:[#allocation2 + $0x171] sm:$0xff] }
 0x1ae   : > { %4739 = vmatmul.mubr.msk.bf16.gmra.mrb[20].mxu0 %vm538_vm0, %v1548_v49  ;;  %v1327_v54 = vadd.f32 %v1295_v55, %v1225_v50  ;;  %v1328_v59 = vadd.f32 %v1296_v18, %v1226_v44  ;;  %v924_v33 = vadd.f32 %v892_v40, %v823_v37  ;;  %v1094_v60 = vmul.f32 %v6396_v45, %v1359_v53  ;;  %v4927_v23 = vld [vmem:[#allocation10] sm:$0xff]  }
 0x1af   : > { %v925_v47 = vadd.f32 %v893_v24, %v824_v22  ;;  %v1095_v43 = vmul.f32 %v6396_v45, %v1360_v58  ;;  %v1195_v27 = vmul.f32 %v6402_v51, %v1460_v56  ;;  %v1196_v15 = vmul.f32 %v6402_v51, %v1461_v9  ;;  %4750 = vmatprep.subr.bf16.mxu1 %v4927_v23  ;;  %v1462_v37 = vld [vmem:[#allocation2 + $0x16a] sm:$0xff] }
 0x1b0   : > { %v1428_v61 = vadd.f32 %v1396_v10, %v1327_v54  ;;  %v1429_v63 = vadd.f32 %v1397_v11, %v1328_v59  ;;  %v1025_v55 = vadd.f32 %v993_v29, %v924_v33  ;;  %v1297_v12 = vmul.f32 %v6407_v25, %v1260_v38  ;;  %4751 = vmatpush3.bf16.msra.mxu1 %v4927_v23 }
 0x1b1   : > { %v1026_v18 = vadd.f32 %v994_v39, %v925_v47  ;;  %v1298_v20 = vmul.f32 %v6407_v25, %v1261_v32  ;;  %v1398_v10 = vmul.f32 %v6411_v62, %v1361_v42  ;;  %v1399_v11 = vmul.f32 %v6411_v62, %v1362_v21 }
 0x1b2   : > { %v1529_v28 = vadd.f32 %v1497_v26, %v1428_v61  ;;  %v1530_v57 = vadd.f32 %v1498_v17, %v1429_v63  ;;  %v1126_v40 = vadd.f32 %v1094_v60, %v1025_v55  ;;  %v692_v50 = vmul.f32 %v6373_v8, %v1258_v41  ;;  %v1463_v41 = vld [vmem:[#allocation2 + $0x172] sm:$0xff] }
 0x1b3   : > { %v1127_v49 = vadd.f32 %v1095_v43, %v1026_v18  ;;  %v693_v44 = vmul.f32 %v6373_v8, %v1259_v0  ;;  %v793_v22 = vmul.f32 %v6378_v19, %v1359_v53  ;;  %v794_v29 = vmul.f32 %v6378_v19, %v1360_v58 }
 0x1b4   : > { %v1549_v24 = vpack.c.bf16 %v1530_v57, %v1529_v28  ;;  %v894_v39 = vmul.f32 %v6382_v46, %v1460_v56  ;;  %v1227_v54 = vadd.f32 %v1195_v27, %v1126_v40  ;;  %v1499_v26 = vmul.f32 %v6385_v48, %v1462_v37  ;;  %v1263_v28 = vld [vmem:[#allocation2 + $0x188] sm:$0xff] }
 0x1b5   : > { %v1228_v59 = vadd.f32 %v1196_v15, %v1127_v49  ;;  %v895_v17 = vmul.f32 %v6382_v46, %v1461_v9  ;;  %v825_v0 = vadd.f32 %v793_v22, %v692_v50  ;;  %v826_v33 = vadd.f32 %v794_v29, %v693_v44  ;;  %v1262_v15 = vld [vmem:[#allocation2 + $0x180] sm:$0xff]  ;;  %v1364_v50 = vld [vmem:[#allocation2 + $0x189] sm:$0xff] }
 0x1b6   : > { %4742 = vmatprep.mubr.msk.bf16.mxu0 %vm538_vm0, %v1549_v24  ;;  %v995_v47 = vmul.f32 %v6390_v52, %v1260_v38  ;;  %v996_v53 = vmul.f32 %v6390_v52, %v1261_v32  ;;  %v1329_v60 = vadd.f32 %v1297_v12, %v1227_v54  ;;  %v1500_v56 = vmul.f32 %v6385_v48, %v1463_v41  ;;  %v1363_v12 = vld [vmem:[#allocation2 + $0x181] sm:$0xff] }
 0x1b7   : > { %v1330_v58 = vadd.f32 %v1298_v20, %v1228_v59  ;;  %v1096_v43 = vmul.f32 %v6396_v45, %v1361_v42  ;;  %v926_v61 = vadd.f32 %v894_v39, %v825_v0  ;;  %v927_v63 = vadd.f32 %v895_v17, %v826_v33 }
 0x1b8   : > { %v1097_v27 = vmul.f32 %v6396_v45, %v1362_v21  ;;  %v1197_v9 = vmul.f32 %v6402_v51, %v1462_v37  ;;  %v1430_v55 = vadd.f32 %v1398_v10, %v1329_v60  ;;  %v1198_v23 = vmul.f32 %v6402_v51, %v1463_v41  ;;  %v1464_v60 = vld [vmem:[#allocation2 + $0x182] sm:$0xff] }
 0x1b9   : > { %v1431_v18 = vadd.f32 %v1399_v11, %v1330_v58  ;;  %v1299_v57 = vmul.f32 %v6407_v25, %v1262_v15  ;;  %v1027_v20 = vadd.f32 %v995_v47, %v926_v61  ;;  %v1028_v40 = vadd.f32 %v996_v53, %v927_v63  ;;  %v1465_v58 = vld [vmem:[#allocation2 + $0x18a] sm:$0xff] }
 0x1ba   : > { %v1300_v49 = vmul.f32 %v6407_v25, %v1263_v28  ;;  %v1400_v44 = vmul.f32 %v6411_v62, %v1363_v12  ;;  %v1531_v24 = vadd.f32 %v1499_v26, %v1430_v55  ;;  %v1401_v29 = vmul.f32 %v6411_v62, %v1364_v50 }
 0x1bb   : > { %v1532_v22 = vadd.f32 %v1500_v56, %v1431_v18  ;;  %v694_v10 = vmul.f32 %v6373_v8, %v1260_v38  ;;  %v1128_v11 = vadd.f32 %v1096_v43, %v1027_v20  ;;  %v1129_v39 = vadd.f32 %v1097_v27, %v1028_v40  ;;  %v1264_v27 = vld [vmem:[#allocation2 + $0x198] sm:$0xff] }
 0x1bc   : > { %v695_v54 = vmul.f32 %v6373_v8, %v1261_v32  ;;  %v795_v59 = vmul.f32 %v6378_v19, %v1361_v42  ;;  %v796_v0 = vmul.f32 %v6378_v19, %v1362_v21  ;;  %v896_v33 = vmul.f32 %v6382_v46, %v1462_v37 }
 0x1bd   : > { %v1550_v17 = vpack.c.bf16 %v1532_v22, %v1531_v24  ;;  %v897_v47 = vmul.f32 %v6382_v46, %v1463_v41  ;;  %v1229_v53 = vadd.f32 %v1197_v9, %v1128_v11  ;;  %v1230_v26 = vadd.f32 %v1198_v23, %v1129_v39  ;;  %v4928_v41 = vld [vmem:[#allocation10 + $0x8] sm:$0xff]   ;;  %v1265_v23 = vld [vmem:[#allocation2 + $0x1a0] sm:$0xff] }
 0x1be   : > { %v827_v56 = vadd.f32 %v795_v59, %v694_v10  ;;  %v997_v38 = vmul.f32 %v6390_v52, %v1262_v15  ;;  %v1501_v8 = vmul.f32 %v6385_v48, %v1464_v60  ;;  %v1502_v32 = vmul.f32 %v6385_v48, %v1465_v58  ;;  %4752 = vmatprep.subr.bf16.mxu1 %v4928_v41  ;;  %v1466_v22 = vld [vmem:[#allocation2 + $0x19a] sm:$0xff]  ;;  %v1467_v39 = vld [vmem:[#allocation2 + $0x1a2] sm:$0xff] }
 0x1bf   : > { %4743 = vmatmul.mubr.msk.bf16.gmra.mrb[24].mxu0 %vm538_vm0, %v1550_v17  ;;  %v828_v42 = vadd.f32 %v796_v0, %v695_v54  ;;  %v998_v19 = vmul.f32 %v6390_v52, %v1263_v28  ;;  %v1331_v21 = vadd.f32 %v1299_v57, %v1229_v53  ;;  %v1332_v37 = vadd.f32 %v1300_v49, %v1230_v26  ;;  %v1365_v28 = vld [vmem:[#allocation2 + $0x199] sm:$0xff] }
 0x1c0   : > { %v928_v43 = vadd.f32 %v896_v33, %v827_v56  ;;  %v1098_v46 = vmul.f32 %v6396_v45, %v1363_v12  ;;  %v1099_v63 = vmul.f32 %v6396_v45, %v1364_v50  ;;  %v1199_v18 = vmul.f32 %v6402_v51, %v1464_v60  ;;  %4753 = vmatpush3.bf16.msra.mxu1 %v4928_v41  ;;  %v4929_v57 = vld [vmem:[#allocation10 + $0x10] sm:$0xff]   ;;  %v4932_v56 = vld [vmem:[#allocation10 + $0x28] sm:$0xff]  }
 0x1c1   : > { %v929_v61 = vadd.f32 %v897_v47, %v828_v42  ;;  %v1432_v9 = vadd.f32 %v1400_v44, %v1331_v21  ;;  %v1433_v15 = vadd.f32 %v1401_v29, %v1332_v37  ;;  %v1200_v52 = vmul.f32 %v6402_v51, %v1465_v58  ;;  %v1366_v45 = vld [vmem:[#allocation2 + $0x1a1] sm:$0xff]  ;;  %4754 = vmatprep.subr.bf16.mxu1 %v4929_v57  ;;  %v6527_v42 = vld [vmem:[%s8078_s12] ss:$0 sm:$0xff] }
 0x1c2   : > { %v1029_v55 = vadd.f32 %v997_v38, %v928_v43  ;;  %v1301_v24 = vmul.f32 %v6407_v25, %v1264_v27  ;;  %v1302_v44 = vmul.f32 %v6407_v25, %v1265_v23  ;;  %v1402_v11 = vmul.f32 %v6411_v62, %v1365_v28  ;;  %v4930_v58 = vld [vmem:[#allocation10 + $0x18] sm:$0xff]   ;;  %v4933_v38 = vld [vmem:[#allocation10 + $0x30] sm:$0xff]   ;;  %v2122_v28 = vld [vmem:[#allocation3 + $0x2] sm:$0xff] }
 0x1c3   : > { %v1030_v20 = vadd.f32 %v998_v19, %v929_v61  ;;  %v1533_v40 = vadd.f32 %v1501_v8, %v1432_v9  ;;  %v1534_v12 = vadd.f32 %v1502_v32, %v1433_v15  ;;  %v1403_v54 = vmul.f32 %v6411_v62, %v1366_v45  ;;  %v4931_v62 = vld [vmem:[#allocation10 + $0x20] sm:$0xff]   ;;  %v6522_v8 = vld [vmem:[%s7949_s3] ss:$0 sm:$0xff]  ;;  %v6534_v61 = vld [vmem:[%s8078_s12 + $0x1] ss:$0 sm:$0xff] }
 0x1c4   : > { %v1130_v49 = vadd.f32 %v1098_v46, %v1029_v55  ;;  %4755 = vmatpush3.bf16.msra.mxu1 %v4929_v57  ;;  %v1503_v17 = vmul.f32 %v6385_v48, %v1466_v22  ;;  %v1504_v33 = vmul.f32 %v6385_v48, %v1467_v39  ;;  %v4934_v48 = vld [vmem:[#allocation10 + $0x38] sm:$0xff]   ;;  %v2021_v19 = vld [vmem:[#allocation3 + $0x1] sm:$0xff]  ;;  %v2022_v43 = vld [vmem:[#allocation3 + $0x9] sm:$0xff] }
 0x1c5   : > { %v1131_v50 = vadd.f32 %v1099_v63, %v1030_v20  ;;  %v1551_v29 = vpack.c.bf16 %v1534_v12, %v1533_v40  ;;  %4756 = vmatprep.subr.bf16.mxu1 %v4930_v58  ;;  %v4968_v15 = vld [vmem:[#allocation3] sm:$0xff]  ;;  %v6544_v57 = vld [vmem:[%s8078_s12 + $0x2] ss:$0 sm:$0xff]  ;;  %v2123_v12 = vld [vmem:[#allocation3 + $0xa] sm:$0xff] }
 0x1c6   : > { %v1231_v10 = vadd.f32 %v1199_v18, %v1130_v49  ;;  %v1957_v55 = vmul.f32 %v4968_v15, %v6527_v42  ;;  %v2058_v18 = vmul.f32 %v6534_v61, %v2021_v19  ;;  %v2159_v45 = vmul.f32 %v6544_v57, %v2122_v28  ;;  %v6551_v22 = vld [vmem:[%s8078_s12 + $0x4] ss:$0 sm:$0xff] }
 0x1c7   : > { %v1232_v51 = vadd.f32 %v1200_v52, %v1131_v50  ;;  %4746 = vmatprep.mubr.msk.bf16.mxu0 %vm538_vm0, %v1551_v29  ;;  %v2059_v52 = vmul.f32 %v6534_v61, %v2022_v43  ;;  %v6556_v29 = vld [vmem:[%s8078_s12 + $0x7] ss:$0 sm:$0xff] }
 0x1c8   : > { %v1333_v59 = vadd.f32 %v1301_v24, %v1231_v10  ;;  %4757 = vmatpush3.bf16.msra.mxu1 %v4930_v58  ;;  %v2090_v24 = vadd.f32 %v2058_v18, %v1957_v55 }
 0x1c9   : > { %v1334_v0 = vadd.f32 %v1302_v44, %v1232_v51  ;;  %4758 = vmatprep.subr.bf16.mxu1 %v4931_v62  ;;  %v2091_v50 = vadd.f32 %v2059_v52, %v1957_v55  ;;  %v2160_v44 = vmul.f32 %v6544_v57, %v2123_v12 }
 0x1ca   : > { %v1434_v25 = vadd.f32 %v1402_v11, %v1333_v59  ;;  %v2191_v10 = vadd.f32 %v2159_v45, %v2090_v24  ;;  %v6561_v11 = vld [vmem:[%s8078_s12 + $0x3] ss:$0 sm:$0xff] }
 0x1cb   : > { %v1435_v47 = vadd.f32 %v1403_v54, %v1334_v0  ;;  %v2192_v39 = vadd.f32 %v2160_v44, %v2091_v50  ;;  %v6566_v54 = vld [vmem:[%s8078_s12 + $0x6] ss:$0 sm:$0xff] }
 0x1cc   : > { %v1535_v53 = vadd.f32 %v1503_v17, %v1434_v25  ;;  %4759 = vmatpush3.bf16.msra.mxu1 %v4931_v62 }
 0x1cd   : > { %v1536_v26 = vadd.f32 %v1504_v33, %v1435_v47  ;;  %4760 = vmatprep.subr.bf16.mxu1 %v4932_v56 }
 0x1cf   : > { %v1552_v60 = vpack.c.bf16 %v1536_v26, %v1535_v53  ;;  %v6580_v53 = vld [vmem:[%s8078_s12 + $0x8] ss:$0 sm:$0xff] }
 0x1d0   : > { %4761 = vmatpush3.bf16.msra.mxu1 %v4932_v56  ;;  %v6589_v56 = vld [vmem:[%s8078_s12 + $0x5] ss:$0 sm:$0xff] }
 0x1d1   : > { %4747 = vmatmul.mubr.msk.bf16.gmra.mrb[28].mxu0 %vm538_vm0, %v1552_v60  ;;  %4762 = vmatprep.subr.bf16.mxu1 %v4933_v38 }
 0x1d4   : > { %4763 = vmatpush3.bf16.msra.mxu1 %v4933_v38 }
 0x1d5   : > { %4764 = vmatprep.subr.bf16.mxu1 %v4934_v48 }
 0x1d8   : > { %4765 = vmatpush3.bf16.msra.mxu1 %v4934_v48 }
 0x226   : > { %v4720_v32 = vpop.f32.mrb[0].mxu0 }
 0x227   : > { %v1683_v21 = vadd.f32 %v4720_v32, %v6522_v8  ;;  %v1674_v37 = vpop.f32.mrb[1].mxu0 }
 0x228   : > { %v1675_v46 = vadd.f32 %v6522_v8, %v1674_v37  ;;  %v4721_v41 = vpop.f32.mrb[2].mxu0 }
 0x229   : > { %v1803_v63 = vmax.f32 %v1683_v21, 0.0  ;;  %v1686_v27 = vadd.f32 %v4721_v41, %v6522_v8  ;;  %v1677_v9 = vpop.f32.mrb[3].mxu0 }
 0x22a   : > { %v1801_v23 = vmax.f32 %v1675_v46, 0.0  ;;  %v1678_v20 = vadd.f32 %v6522_v8, %v1677_v9 }
 0x22b   : > { %1890 = vst [vmem:[#allocation3 + $0x31] sm:$0xff] %v1803_v63  ;;  %v1804_v40 = vmax.f32 %v1686_v27, 0.0  ;;  %v6569_v59 = vmul.f32 %v6556_v29, %v1803_v63  ;;  %v2363_v17 = vmul.f32 %v6551_v22, %v1803_v63  ;;  %v2062_v0 = vmul.f32 %v6534_v61, %v1803_v63 }
 0x22c   : > { %1888 = vst [vmem:[#allocation3 + $0x19] sm:$0xff] %v1801_v23  ;;  %v1802_v49 = vmax.f32 %v1678_v20, 0.0  ;;  %v2361_v25 = vmul.f32 %v6551_v22, %v1801_v23  ;;  %v2060_v26 = vmul.f32 %v6534_v61, %v1801_v23 }
 0x22d   : > { %1891 = vst [vmem:[#allocation3 + $0x39] sm:$0xff] %v1804_v40  ;;  %v6575_v47 = vmul.f32 %v6556_v29, %v1804_v40  ;;  %v2364_v60 = vmul.f32 %v6551_v22, %v1804_v40  ;;  %v2063_v19 = vmul.f32 %v6534_v61, %v1804_v40 }
 0x22e   : > { %1889 = vst [vmem:[#allocation3 + $0x21] sm:$0xff] %v1802_v49  ;;  %v2362_v62 = vmul.f32 %v6551_v22, %v1802_v49  ;;  %v2061_v41 = vmul.f32 %v6534_v61, %v1802_v49 }
 0x232   : > { %v2527_v51 = vld [vmem:[#allocation3 + $0x30] sm:$0xff] }
 0x233   : > { %v2223_v33 = vld [vmem:[#allocation3 + $0x18] sm:$0xff]  ;;  %v2564_v46 = vmul.f32 %v6566_v54, %v2527_v51  ;;  %v2262_v63 = vmul.f32 %v6561_v11, %v2527_v51  ;;  %v1961_v27 = vmul.f32 %v6527_v42, %v2527_v51 }
 0x234   : > { %v2260_v58 = vmul.f32 %v6561_v11, %v2223_v33  ;;  %v2528_v38 = vld [vmem:[#allocation3 + $0x38] sm:$0xff]  ;;  %v1959_v32 = vmul.f32 %v6527_v42, %v2223_v33 }
 0x235   : > { %v2729_v48 = vld [vmem:[#allocation3 + $0x32] sm:$0xff]  ;;  %v2224_v21 = vld [vmem:[#allocation3 + $0x20] sm:$0xff]  ;;  %v2565_v55 = vmul.f32 %v6566_v54, %v2528_v38  ;;  %v2263_v28 = vmul.f32 %v6561_v11, %v2528_v38  ;;  %v1962_v16 = vmul.f32 %v6527_v42, %v2528_v38 }
 0x236   : > { %v2425_v37 = vld [vmem:[#allocation3 + $0x1a] sm:$0xff]  ;;  %v2426_v43 = vld [vmem:[#allocation3 + $0x22] sm:$0xff]  ;;  %v2261_v9 = vmul.f32 %v6561_v11, %v2224_v21  ;;  %v2292_v15 = vadd.f32 %v2260_v58, %v2191_v10  ;;  %v2766_v18 = vmul.f32 %v6580_v53, %v2729_v48  ;;  %v1960_v23 = vmul.f32 %v6527_v42, %v2224_v21 }
 0x237   : > { %v2092_v20 = vadd.f32 %v2060_v26, %v1959_v32  ;;  %v2161_v52 = vmul.f32 %v6544_v57, %v2425_v37  ;;  %v2462_v24 = vmul.f32 %v6589_v56, %v2425_v37  ;;  %v2463_v45 = vmul.f32 %v6589_v56, %v2426_v43 }
 0x238   : > { %v2293_v12 = vadd.f32 %v2261_v9, %v2192_v39  ;;  %v2393_v49 = vadd.f32 %v2361_v25, %v2292_v15  ;;  %v2093_v10 = vadd.f32 %v2061_v41, %v1960_v23  ;;  %v2162_v51 = vmul.f32 %v6544_v57, %v2426_v43  ;;  %v2730_v43 = vld [vmem:[#allocation3 + $0x3a] sm:$0xff] }
 0x239   : > { %v2193_v33 = vadd.f32 %v2161_v52, %v2092_v20 }
 0x23a   : > { %v4724_v40 = vpop.f32.mrb[4].mxu0  ;;  %v2394_v32 = vadd.f32 %v2362_v62, %v2293_v12  ;;  %v2494_v21 = vadd.f32 %v2462_v24, %v2393_v49  ;;  %v2194_v9 = vadd.f32 %v2162_v51, %v2093_v10  ;;  %v2094_v62 = vadd.f32 %v2062_v0, %v1961_v27 }
 0x23b   : > { %v1699_v50 = vadd.f32 %v4724_v40, %v6522_v8  ;;  %v1690_v44 = vpop.f32.mrb[5].mxu0  ;;  %v2294_v15 = vadd.f32 %v2262_v63, %v2193_v33  ;;  %v2095_v24 = vadd.f32 %v2063_v19, %v1962_v16  ;;  %v2767_v63 = vmul.f32 %v6580_v53, %v2730_v43 }
 0x23c   : > { %v1691_v26 = vadd.f32 %v6522_v8, %v1690_v44  ;;  %v4725_v58 = vpop.f32.mrb[6].mxu0  ;;  %v2495_v41 = vadd.f32 %v2463_v45, %v2394_v32  ;;  %v2596_v23 = vadd.f32 %v2564_v46, %v2494_v21  ;;  %v2295_v52 = vadd.f32 %v2263_v28, %v2194_v9 }
 0x23d   : > { %v1807_v39 = vmax.f32 %v1699_v50, 0.0  ;;  %v1702_v25 = vadd.f32 %v4725_v58, %v6522_v8  ;;  %v1693_v37 = vpop.f32.mrb[7].mxu0  ;;  %v2395_v44 = vadd.f32 %v2363_v17, %v2294_v15  ;;  %v2464_v10 = vmul.f32 %v6589_v56, %v2729_v48 }
 0x23e   : > { %v1805_v14 = vmax.f32 %v1691_v26, 0.0  ;;  %v1694_v40 = vadd.f32 %v6522_v8, %v1693_v37  ;;  %v2597_v38 = vadd.f32 %v2565_v55, %v2495_v41  ;;  %v2697_v49 = vadd.f32 %v6569_v59, %v2596_v23 }
 0x23f   : > { %1894 = vst [vmem:[#allocation3 + $0x61] sm:$0xff] %v1807_v39  ;;  %v1808_v20 = vmax.f32 %v1702_v25, 0.0  ;;  %v2396_v50 = vadd.f32 %v2364_v60, %v2295_v52  ;;  %v2163_v46 = vmul.f32 %v6544_v57, %v2729_v48  ;;  %v2465_v17 = vmul.f32 %v6589_v56, %v2730_v43 }
 0x240   : > { %1892 = vst [vmem:[#allocation3 + $0x49] sm:$0xff] %v1805_v14  ;;  %v1806_v12 = vmax.f32 %v1694_v40, 0.0  ;;  %v2698_v45 = vadd.f32 %v6575_v47, %v2597_v38  ;;  %v2667_v0 = vmul.f32 %v6556_v29, %v1805_v14  ;;  %v2164_v27 = vmul.f32 %v6544_v57, %v2730_v43 }
 0x241   : > { %1895 = vst [vmem:[#allocation3 + $0x69] sm:$0xff] %v1808_v20  ;;  %v2798_v55 = vadd.f32 %v2766_v18, %v2697_v49  ;;  %v2496_v59 = vadd.f32 %v2464_v10, %v2395_v44  ;;  %v2365_v19 = vmul.f32 %v6551_v22, %v1805_v14  ;;  %v2497_v28 = vadd.f32 %v2465_v17, %v2396_v50 }
 0x242   : > { %1893 = vst [vmem:[#allocation3 + $0x51] sm:$0xff] %v1806_v12  ;;  %v2668_v16 = vmul.f32 %v6556_v29, %v1806_v12  ;;  %v2799_v60 = vadd.f32 %v2767_v63, %v2698_v45  ;;  %v2195_v51 = vadd.f32 %v2163_v46, %v2094_v62  ;;  %v2196_v33 = vadd.f32 %v2164_v27, %v2095_v24 }
 0x243   : > { %v2366_v48 = vmul.f32 %v6551_v22, %v1806_v12  ;;  %v6623_v47 = vmul.f32 %v6556_v29, %v1807_v39  ;;  %v6626_v26 = vmul.f32 %v6556_v29, %v1808_v20  ;;  %v2064_v58 = vmul.f32 %v6534_v61, %v1805_v14 }
 0x244   : > { %v2830_v18 = vpack.c.bf16 %v2799_v60, %v2798_v55  ;;  %v2065_v21 = vmul.f32 %v6534_v61, %v1806_v12  ;;  %v6631_v25 = vmul.f32 %v6551_v22, %v1807_v39  ;;  %v6634_v37 = vmul.f32 %v6551_v22, %v1808_v20 }
 0x245   : > { %v6641_v41 = vmul.f32 %v6534_v61, %v1807_v39  ;;  %v6644_v14 = vmul.f32 %v6534_v61, %v1808_v20 }
 0x246   : > { %v2531_v32 = vld [vmem:[#allocation3 + $0x60] sm:$0xff]  ;;  %4766 = vmatprep.mubr.bf16.mxu1 %v2830_v18 }
 0x247   : > { %v2529_v9 = vld [vmem:[#allocation3 + $0x48] sm:$0xff]  ;;  %v2568_v15 = vmul.f32 %v6566_v54, %v2531_v32  ;;  %v6638_v40 = vmul.f32 %v6561_v11, %v2531_v32  ;;  %v1965_v38 = vmul.f32 %v6527_v42, %v2531_v32 }
 0x248   : > { %v2566_v23 = vmul.f32 %v6566_v54, %v2529_v9  ;;  %v2264_v43 = vmul.f32 %v6561_v11, %v2529_v9  ;;  %v6648_v52 = vld [vmem:[#allocation3 + $0x68] sm:$0xff]  ;;  %v1963_v12 = vmul.f32 %v6527_v42, %v2529_v9 }
 0x249   : > { %v6650_v44 = vld [vmem:[#allocation3 + $0x62] sm:$0xff]  ;;  %v6652_v62 = vld [vmem:[#allocation3 + $0x6a] sm:$0xff]  ;;  %v2732_v24 = vld [vmem:[#allocation3 + $0x52] sm:$0xff]  ;;  %v2569_v20 = vmul.f32 %v6566_v54, %v6648_v52  ;;  %v2267_v10 = vmul.f32 %v6561_v11, %v6648_v52 }
 0x24a   : > { %v2530_v39 = vld [vmem:[#allocation3 + $0x50] sm:$0xff]  ;;  %v2770_v63 = vmul.f32 %v6580_v53, %v6650_v44  ;;  %v6662_v50 = vmul.f32 %v6580_v53, %v6652_v62  ;;  %v2598_v45 = vadd.f32 %v2566_v23, %v2496_v59  ;;  %v2769_v27 = vmul.f32 %v6580_v53, %v2732_v24 }
 0x24b   : > { %v2731_v49 = vld [vmem:[#allocation3 + $0x4a] sm:$0xff]  ;;  %v2567_v46 = vmul.f32 %v6566_v54, %v2530_v39  ;;  %v2265_v60 = vmul.f32 %v6561_v11, %v2530_v39  ;;  %v2296_v18 = vadd.f32 %v2264_v43, %v2195_v51  ;;  %v2467_v9 = vmul.f32 %v6589_v56, %v2732_v24 }
 0x24c   : > { %v2768_v17 = vmul.f32 %v6580_v53, %v2731_v49  ;;  %v4728_v55 = vpop.f32.mrb[8].mxu0  ;;  %v2466_v32 = vmul.f32 %v6589_v56, %v2731_v49  ;;  %v2699_v1 = vadd.f32 %v2667_v0, %v2598_v45  ;;  %v1964_v36 = vmul.f32 %v6527_v42, %v2530_v39 }
 0x24d   : > { %v1715_v13 = vadd.f32 %v4728_v55, %v6522_v8  ;;  %v1706_v3 = vpop.f32.mrb[9].mxu0  ;;  %v2599_v2 = vadd.f32 %v2567_v46, %v2497_v28  ;;  %v2297_v35 = vadd.f32 %v2265_v60, %v2196_v33  ;;  %v2397_v34 = vadd.f32 %v2365_v19, %v2296_v18 }
 0x24e   : > { %v1707_v59 = vadd.f32 %v6522_v8, %v1706_v3  ;;  %v4729_v23 = vpop.f32.mrb[10].mxu0  ;;  %v2096_v31 = vadd.f32 %v2064_v58, %v1963_v12  ;;  %v2800_v6 = vadd.f32 %v2768_v17, %v2699_v1  ;;  %v2097_v19 = vadd.f32 %v2065_v21, %v1964_v36 }
 0x24f   : > { %v6675_v30 = vmax.f32 %v1715_v13, 0.0  ;;  %v1718_v51 = vadd.f32 %v4729_v23, %v6522_v8  ;;  %v1709_v43 = vpop.f32.mrb[11].mxu0  ;;  %v2700_v7 = vadd.f32 %v2668_v16, %v2599_v2  ;;  %v2398_v0 = vadd.f32 %v2366_v48, %v2297_v35 }
 0x250   : > { %v6678_v5 = vmax.f32 %v1707_v59, 0.0  ;;  %v1710_v28 = vadd.f32 %v6522_v8, %v1709_v43  ;;  %v2498_v46 = vadd.f32 %v2466_v32, %v2397_v34  ;;  %v2165_v13 = vmul.f32 %v6544_v57, %v2731_v49 }
 0x251   : > { %1898 = vst [vmem:[#allocation3 + $0x91] sm:$0xff] %v6675_v30  ;;  %v6682_v3 = vmax.f32 %v1718_v51, 0.0  ;;  %v2801_v33 = vadd.f32 %v2769_v27, %v2700_v7  ;;  %v2499_v2 = vadd.f32 %v2467_v9, %v2398_v0  ;;  %v2166_v16 = vmul.f32 %v6544_v57, %v2732_v24 }
 0x252   : > { %1896 = vst [vmem:[#allocation3 + $0x79] sm:$0xff] %v6678_v5  ;;  %v6686_v58 = vmax.f32 %v1710_v28, 0.0  ;;  %v2600_v1 = vadd.f32 %v2568_v15, %v2498_v46  ;;  %v2197_v34 = vadd.f32 %v2165_v13, %v2096_v31  ;;  %v2468_v48 = vmul.f32 %v6589_v56, %v6650_v44 }
 0x253   : > { %1899 = vst [vmem:[#allocation3 + $0x99] sm:$0xff] %v6682_v3  ;;  %v2831_v35 = vpack.c.bf16 %v2801_v33, %v2800_v6  ;;  %v2469_v7 = vmul.f32 %v6589_v56, %v6652_v62  ;;  %v2601_v36 = vadd.f32 %v2569_v20, %v2499_v2  ;;  %v2198_v12 = vadd.f32 %v2166_v16, %v2097_v19 }
 0x254   : > { %1897 = vst [vmem:[#allocation3 + $0x81] sm:$0xff] %v6686_v58  ;;  %v2701_v21 = vadd.f32 %v6623_v47, %v2600_v1  ;;  %v2671_v15 = vmul.f32 %v6556_v29, %v6678_v5  ;;  %v2298_v39 = vadd.f32 %v6638_v40, %v2197_v34  ;;  %v2672_v6 = vmul.f32 %v6556_v29, %v6686_v58 }
 0x255   : > { %4767 = vmatmul.mubr.bf16.vlgmr.msra.gmra.mrb[0].mxu1 %v2831_v35  ;;  %v1966_v31 = vmul.f32 %v6527_v42, %v6648_v52  ;;  %v2098_v49 = vadd.f32 %v6641_v41, %v1965_v38  ;;  %v2702_v24 = vadd.f32 %v6626_v26, %v2601_v36  ;;  %v2299_v45 = vadd.f32 %v2267_v10, %v2198_v12 }
 0x256   : > { %v2802_v20 = vadd.f32 %v2770_v63, %v2701_v21  ;;  %v2167_v47 = vmul.f32 %v6544_v57, %v6650_v44  ;;  %v2399_v17 = vadd.f32 %v6631_v25, %v2298_v39  ;;  %v2168_v40 = vmul.f32 %v6544_v57, %v6652_v62 }
 0x257   : > { %v2099_v27 = vadd.f32 %v6644_v14, %v1966_v31  ;;  %v2369_v55 = vmul.f32 %v6551_v22, %v6678_v5  ;;  %v2803_v52 = vadd.f32 %v6662_v50, %v2702_v24  ;;  %v2400_v41 = vadd.f32 %v6634_v37, %v2299_v45 }
 0x258   : > { %v2199_v26 = vadd.f32 %v2167_v47, %v2098_v49  ;;  %v2370_v38 = vmul.f32 %v6551_v22, %v6686_v58  ;;  %v6717_v63 = vld [vmem:[#allocation3 + $0x90] sm:$0xff]  ;;  %v2500_v44 = vadd.f32 %v2468_v48, %v2399_v17  ;;  %v2673_v62 = vmul.f32 %v6556_v29, %v6675_v30 }
 0x259   : > { %v2533_v25 = vld [vmem:[#allocation3 + $0x78] sm:$0xff]  ;;  %v2200_v10 = vadd.f32 %v2168_v40, %v2099_v27  ;;  %v2572_v14 = vmul.f32 %v6566_v54, %v6717_v63  ;;  %v2832_v60 = vpack.c.bf16 %v2803_v52, %v2802_v20  ;;  %v2501_v18 = vadd.f32 %v2469_v7, %v2400_v41 }
 0x25a   : > { %v2570_v50 = vmul.f32 %v6566_v54, %v2533_v25  ;;  %v2268_v37 = vmul.f32 %v6561_v11, %v2533_v25  ;;  %v6725_v32 = vld [vmem:[#allocation3 + $0x98] sm:$0xff]  ;;  %v2674_v0 = vmul.f32 %v6556_v29, %v6682_v3  ;;  %v1967_v12 = vmul.f32 %v6527_v42, %v2533_v25 }
 0x25b   : > { %v6727_v9 = vld [vmem:[#allocation3 + $0x92] sm:$0xff]  ;;  %v6729_v59 = vld [vmem:[#allocation3 + $0x9a] sm:$0xff]  ;;  %v2736_v43 = vld [vmem:[#allocation3 + $0x82] sm:$0xff]  ;;  %v2573_v28 = vmul.f32 %v6566_v54, %v6725_v32  ;;  %4770 = vmatprep.mubr.bf16.mxu1 %v2832_v60  ;;  %v2068_v45 = vmul.f32 %v6534_v61, %v6678_v5 }
 0x25c   : > { %v2534_v23 = vld [vmem:[#allocation3 + $0x80] sm:$0xff]  ;;  %v2774_v46 = vmul.f32 %v6580_v53, %v6727_v9  ;;  %v6739_v33 = vmul.f32 %v6580_v53, %v6729_v59  ;;  %v2602_v13 = vadd.f32 %v2570_v50, %v2500_v44  ;;  %v2773_v1 = vmul.f32 %v6580_v53, %v2736_v43 }
 0x25d   : > { %v2735_v51 = vld [vmem:[#allocation3 + $0x7a] sm:$0xff]  ;;  %v2571_v19 = vmul.f32 %v6566_v54, %v2534_v23  ;;  %v2269_v16 = vmul.f32 %v6561_v11, %v2534_v23  ;;  %v2300_v35 = vadd.f32 %v2268_v37, %v2199_v26  ;;  %v2471_v48 = vmul.f32 %v6589_v56, %v2736_v43 }
 0x25e   : > { %v2772_v2 = vmul.f32 %v6580_v53, %v2735_v51  ;;  %v2470_v34 = vmul.f32 %v6589_v56, %v2735_v51  ;;  %v4732_v7 = vpop.f32.mrb[12].mxu0  ;;  %v2703_v21 = vadd.f32 %v2671_v15, %v2602_v13  ;;  %v1968_v39 = vmul.f32 %v6527_v42, %v2534_v23 }
 0x25f   : > { %v2603_v36 = vadd.f32 %v2571_v19, %v2501_v18  ;;  %v1731_v31 = vadd.f32 %v4732_v7, %v6522_v8  ;;  %v1722_v49 = vpop.f32.mrb[13].mxu0  ;;  %v2301_v24 = vadd.f32 %v2269_v16, %v2200_v10  ;;  %v2401_v20 = vadd.f32 %v2369_v55, %v2300_v35 }
 0x260   : > { %v1723_v47 = vadd.f32 %v6522_v8, %v1722_v49  ;;  %v4733_v17 = vpop.f32.mrb[14].mxu0  ;;  %v2804_v40 = vadd.f32 %v2772_v2, %v2703_v21  ;;  %v2069_v15 = vmul.f32 %v6534_v61, %v6686_v58  ;;  %v2100_v60 = vadd.f32 %v2068_v45, %v1967_v12 }
 0x261   : > { %v2704_v27 = vadd.f32 %v2672_v6, %v2603_v36  ;;  %v6755_v52 = vmax.f32 %v1731_v31, 0.0  ;;  %v1734_v41 = vadd.f32 %v4733_v17, %v6522_v8  ;;  %v1725_v26 = vpop.f32.mrb[15].mxu0  ;;  %v2402_v44 = vadd.f32 %v2370_v38, %v2301_v24 }
 0x262   : > { %v2502_v25 = vadd.f32 %v2470_v34, %v2401_v20  ;;  %v6758_v10 = vmax.f32 %v1723_v47, 0.0  ;;  %v1726_v55 = vadd.f32 %v6522_v8, %v1725_v26  ;;  %v2101_v58 = vadd.f32 %v2069_v15, %v1968_v39 }
 0x263   : > { %v2805_v5 = vadd.f32 %v2773_v1, %v2704_v27  ;;  %1902 = vst [vmem:[#allocation3 + $0xc1] sm:$0xff] %v6755_v52  ;;  %v6762_v6 = vmax.f32 %v1734_v41, 0.0  ;;  %v2503_v18 = vadd.f32 %v2471_v48, %v2402_v44  ;;  %v2169_v38 = vmul.f32 %v6544_v57, %v2735_v51 }
 0x264   : > { %v2604_v50 = vadd.f32 %v2572_v14, %v2502_v25  ;;  %1900 = vst [vmem:[#allocation3 + $0xa9] sm:$0xff] %v6758_v10  ;;  %v6765_v37 = vmax.f32 %v1726_v55, 0.0  ;;  %v2170_v19 = vmul.f32 %v6544_v57, %v2736_v43  ;;  %v2270_v1 = vmul.f32 %v6561_v11, %v6717_v63 }
 0x265   : > { %v2833_v23 = vpack.c.bf16 %v2805_v5, %v2804_v40  ;;  %1903 = vst [vmem:[#allocation3 + $0xc9] sm:$0xff] %v6762_v6  ;;  %v2605_v13 = vadd.f32 %v2573_v28, %v2503_v18  ;;  %v2271_v14 = vmul.f32 %v6561_v11, %v6725_v32  ;;  %v2201_v16 = vadd.f32 %v2169_v38, %v2100_v60 }
 0x266   : > { %v2705_v2 = vadd.f32 %v2673_v62, %v2604_v50  ;;  %1901 = vst [vmem:[#allocation3 + $0xb1] sm:$0xff] %v6765_v37  ;;  %v2202_v35 = vadd.f32 %v2170_v19, %v2101_v58  ;;  %v2371_v51 = vmul.f32 %v6551_v22, %v6675_v30  ;;  %v2372_v43 = vmul.f32 %v6551_v22, %v6682_v3 }
 0x267   : > { %4771 = vmatmul.mubr.bf16.gmra.mrb[4].mxu1 %v2833_v23  ;;  %v2706_v34 = vadd.f32 %v2674_v0, %v2605_v13  ;;  %v2472_v62 = vmul.f32 %v6589_v56, %v6727_v9  ;;  %v2473_v48 = vmul.f32 %v6589_v56, %v6729_v59  ;;  %v2302_v7 = vadd.f32 %v2270_v1, %v2201_v16 }
 0x268   : > { %v2806_v28 = vadd.f32 %v2774_v46, %v2705_v2  ;;  %v2303_v36 = vadd.f32 %v2271_v14, %v2202_v35  ;;  %v2675_v21 = vmul.f32 %v6556_v29, %v6758_v10  ;;  %v2676_v12 = vmul.f32 %v6556_v29, %v6765_v37 }
 0x269   : > { %v2807_v39 = vadd.f32 %v6739_v33, %v2706_v34  ;;  %v1969_v0 = vmul.f32 %v6527_v42, %v6717_v63  ;;  %v1970_v46 = vmul.f32 %v6527_v42, %v6725_v32  ;;  %v2070_v31 = vmul.f32 %v6534_v61, %v6675_v30 }
 0x26a   : > { %v2403_v49 = vadd.f32 %v2371_v51, %v2302_v7  ;;  %v2404_v24 = vadd.f32 %v2372_v43, %v2303_v36  ;;  %v2071_v20 = vmul.f32 %v6534_v61, %v6682_v3  ;;  %v2171_v45 = vmul.f32 %v6544_v57, %v6727_v9  ;;  %v6798_v47 = vld [vmem:[#allocation3 + $0xc0] sm:$0xff] }
 0x26b   : > { %v2834_v33 = vpack.c.bf16 %v2807_v39, %v2806_v28  ;;  %v2537_v17 = vld [vmem:[#allocation3 + $0xa8] sm:$0xff]  ;;  %v2102_v27 = vadd.f32 %v2070_v31, %v1969_v0  ;;  %v2172_v63 = vmul.f32 %v6544_v57, %v6729_v59  ;;  %v2373_v32 = vmul.f32 %v6551_v22, %v6758_v10 }
 0x26c   : > { %v2504_v30 = vadd.f32 %v2472_v62, %v2403_v49  ;;  %v2505_v40 = vadd.f32 %v2473_v48, %v2404_v24  ;;  %v2574_v15 = vmul.f32 %v6566_v54, %v2537_v17  ;;  %v2103_v41 = vadd.f32 %v2071_v20, %v1970_v46  ;;  %v6813_v58 = vld [vmem:[#allocation3 + $0xc8] sm:$0xff] }
 0x26d   : > { %4774 = vmatprep.mubr.bf16.mxu1 %v2834_v33  ;;  %v2538_v3 = vld [vmem:[#allocation3 + $0xb0] sm:$0xff]  ;;  %v2203_v44 = vadd.f32 %v2171_v45, %v2102_v27  ;;  %v2272_v25 = vmul.f32 %v6561_v11, %v2537_v17  ;;  %v2374_v55 = vmul.f32 %v6551_v22, %v6765_v37  ;;  %v2576_v59 = vmul.f32 %v6566_v54, %v6798_v47  ;;  %v2741_v31 = vld [vmem:[#allocation3 + $0xc2] sm:$0xff] }
 0x26e   : > { %v2739_v26 = vld [vmem:[#allocation3 + $0xaa] sm:$0xff]  ;;  %v2740_v9 = vld [vmem:[#allocation3 + $0xb2] sm:$0xff]  ;;  %v2575_v5 = vmul.f32 %v6566_v54, %v2538_v3  ;;  %v2606_v60 = vadd.f32 %v2574_v15, %v2504_v30  ;;  %v2204_v38 = vadd.f32 %v2172_v63, %v2103_v41  ;;  %v2273_v19 = vmul.f32 %v6561_v11, %v2538_v3 }
 0x26f   : > { %v2776_v18 = vmul.f32 %v6580_v53, %v2739_v26  ;;  %v2777_v50 = vmul.f32 %v6580_v53, %v2740_v9  ;;  %v4736_v23 = vpop.f32.mrb[16].mxu0  ;;  %v2304_v13 = vadd.f32 %v2272_v25, %v2203_v44  ;;  %v2474_v2 = vmul.f32 %v6589_v56, %v2739_v26  ;;  %v2742_v45 = vld [vmem:[#allocation3 + $0xca] sm:$0xff] }
 0x270   : > { %v1747_v1 = vadd.f32 %v4736_v23, %v6522_v8  ;;  %v1738_v14 = vpop.f32.mrb[17].mxu0  ;;  %v2607_v16 = vadd.f32 %v2575_v5, %v2505_v40  ;;  %v2707_v35 = vadd.f32 %v2675_v21, %v2606_v60  ;;  %v2475_v51 = vmul.f32 %v6589_v56, %v2740_v9 }
 0x271   : > { %v1739_v43 = vadd.f32 %v6522_v8, %v1738_v14  ;;  %v4737_v34 = vpop.f32.mrb[18].mxu0  ;;  %v2305_v28 = vadd.f32 %v2273_v19, %v2204_v38  ;;  %v2405_v62 = vadd.f32 %v2373_v32, %v2304_v13  ;;  %v2577_v48 = vmul.f32 %v6566_v54, %v6813_v58 }
 0x272   : > { %v1819_v7 = vmax.f32 %v1747_v1, 0.0  ;;  %v1750_v36 = vadd.f32 %v4737_v34, %v6522_v8  ;;  %v1741_v39 = vpop.f32.mrb[19].mxu0  ;;  %v2708_v0 = vadd.f32 %v2676_v12, %v2607_v16  ;;  %v2808_v46 = vadd.f32 %v2776_v18, %v2707_v35  ;;  %v2037_v1 = vld [vmem:[#allocation3 + $0xc1] sm:$0xff] }
 0x273   : > { %v6823_v49 = vmax.f32 %v1739_v43, 0.0  ;;  %v1742_v21 = vadd.f32 %v6522_v8, %v1741_v39  ;;  %v2406_v24 = vadd.f32 %v2374_v55, %v2305_v28  ;;  %v2506_v20 = vadd.f32 %v2474_v2, %v2405_v62  ;;  %v2038_v43 = vld [vmem:[#allocation3 + $0xc9] sm:$0xff] }
 0x274   : > { %1906 = vst [vmem:[#allocation3 + $0xf1] sm:$0xff] %v1819_v7  ;;  %v6826_v33 = vmax.f32 %v1750_v36, 0.0  ;;  %v2809_v27 = vadd.f32 %v2777_v50, %v2708_v0  ;;  %v2677_v63 = vmul.f32 %v6556_v29, %v6755_v52  ;;  %v2678_v32 = vmul.f32 %v6556_v29, %v6762_v6 }
 0x275   : > { %1904 = vst [vmem:[#allocation3 + $0xd9] sm:$0xff] %v6823_v49  ;;  %v6833_v12 = vmax.f32 %v1742_v21, 0.0  ;;  %v2507_v30 = vadd.f32 %v2475_v51, %v2406_v24  ;;  %v2608_v40 = vadd.f32 %v2576_v59, %v2506_v20  ;;  %v2778_v15 = vmul.f32 %v6580_v53, %v2741_v31 }
 0x276   : > { %1907 = vst [vmem:[#allocation3 + $0xf9] sm:$0xff] %v6826_v33  ;;  %v2835_v41 = vpack.c.bf16 %v2809_v27, %v2808_v46  ;;  %v2779_v44 = vmul.f32 %v6580_v53, %v2742_v45  ;;  %v1971_v25 = vmul.f32 %v6527_v42, %v2537_v17  ;;  %v1972_v55 = vmul.f32 %v6527_v42, %v2538_v3 }
 0x277   : > { %1905 = vst [vmem:[#allocation3 + $0xe1] sm:$0xff] %v6833_v12  ;;  %v2609_v5 = vadd.f32 %v2577_v48, %v2507_v30  ;;  %v2709_v60 = vadd.f32 %v2677_v63, %v2608_v40  ;;  %v2072_v18 = vmul.f32 %v6534_v61, %v6758_v10  ;;  %v2073_v59 = vmul.f32 %v6534_v61, %v6765_v37 }
 0x278   : > { %4775 = vmatmul.mubr.bf16.gmra.mrb[8].mxu1 %v2835_v41  ;;  %v2173_v50 = vmul.f32 %v6544_v57, %v2739_v26  ;;  %v2174_v23 = vmul.f32 %v6544_v57, %v2740_v9  ;;  %v2274_v17 = vmul.f32 %v6561_v11, %v6798_v47  ;;  %v2275_v3 = vmul.f32 %v6561_v11, %v6813_v58 }
 0x279   : > { %v2710_v38 = vadd.f32 %v2678_v32, %v2609_v5  ;;  %v2810_v19 = vadd.f32 %v2778_v15, %v2709_v60  ;;  %v2104_v13 = vadd.f32 %v2072_v18, %v1971_v25  ;;  %v2105_v2 = vadd.f32 %v2073_v59, %v1972_v55 }
 0x27a   : > { %v2375_v10 = vmul.f32 %v6551_v22, %v6755_v52  ;;  %v2376_v37 = vmul.f32 %v6551_v22, %v6762_v6  ;;  %v2476_v26 = vmul.f32 %v6589_v56, %v2741_v31  ;;  %v2477_v9 = vmul.f32 %v6589_v56, %v2742_v45 }
 0x27b   : > { %v2811_v14 = vadd.f32 %v2779_v44, %v2710_v38  ;;  %v2205_v16 = vadd.f32 %v2173_v50, %v2104_v13  ;;  %v2206_v35 = vadd.f32 %v2174_v23, %v2105_v2  ;;  %v2679_v51 = vmul.f32 %v6556_v29, %v6823_v49 }
 0x27c   : > { %v6859_v34 = vld [vmem:[#allocation3 + $0xd8] sm:$0xff]  ;;  %v2680_v28 = vmul.f32 %v6556_v29, %v6833_v12  ;;  %v1973_v52 = vmul.f32 %v6527_v42, %v6798_v47  ;;  %v1974_v6 = vmul.f32 %v6527_v42, %v6813_v58  ;;  %v2074_v62 = vmul.f32 %v6534_v61, %v2037_v1 }
 0x27d   : > { %v2836_v48 = vpack.c.bf16 %v2811_v14, %v2810_v19  ;;  %v2306_v7 = vadd.f32 %v2274_v17, %v2205_v16  ;;  %v2307_v36 = vadd.f32 %v2275_v3, %v2206_v35  ;;  %v2578_v39 = vmul.f32 %v6566_v54, %v6859_v34 }
 0x27e   : > { %v6870_v0 = vld [vmem:[#allocation3 + $0xe0] sm:$0xff]  ;;  %v2075_v24 = vmul.f32 %v6534_v61, %v2038_v43  ;;  %v2106_v47 = vadd.f32 %v2074_v62, %v1973_v52  ;;  %v2175_v20 = vmul.f32 %v6544_v57, %v2741_v31  ;;  %v2176_v58 = vmul.f32 %v6544_v57, %v2742_v45  ;;  %v2544_v52 = vld [vmem:[#allocation3 + $0xf8] sm:$0xff] }
 0x27f   : > { %v6872_v46 = vld [vmem:[#allocation3 + $0xda] sm:$0xff]  ;;  %v6874_v21 = vld [vmem:[#allocation3 + $0xe2] sm:$0xff]  ;;  %4778 = vmatprep.mubr.bf16.mxu1 %v2836_v48  ;;  %v2407_v27 = vadd.f32 %v2375_v10, %v2306_v7  ;;  %v2408_v63 = vadd.f32 %v2376_v37, %v2307_v36  ;;  %v2579_v32 = vmul.f32 %v6566_v54, %v6870_v0  ;;  %v2276_v44 = vmul.f32 %v6561_v11, %v6859_v34  ;;  %v2644_v36 = vld [vmem:[#allocation3 + $0xf1] sm:$0xff] }
 0x280   : > { %v2780_v30 = vmul.f32 %v6580_v53, %v6872_v46  ;;  %v2781_v40 = vmul.f32 %v6580_v53, %v6874_v21  ;;  %v2107_v15 = vadd.f32 %v2075_v24, %v1974_v6  ;;  %v2207_v41 = vadd.f32 %v2175_v20, %v2106_v47 }
 0x281   : > { %v4740_v31 = vpop.f32.mrb[20].mxu0  ;;  %v2508_v25 = vadd.f32 %v2476_v26, %v2407_v27  ;;  %v2509_v45 = vadd.f32 %v2477_v9, %v2408_v63  ;;  %v2277_v55 = vmul.f32 %v6561_v11, %v6870_v0  ;;  %v2377_v5 = vmul.f32 %v6551_v22, %v6823_v49  ;;  %v2543_v9 = vld [vmem:[#allocation3 + $0xf0] sm:$0xff] }
 0x282   : > { %v1763_v60 = vadd.f32 %v4740_v31, %v6522_v8  ;;  %v1754_v18 = vpop.f32.mrb[21].mxu0  ;;  %v2208_v59 = vadd.f32 %v2176_v58, %v2107_v15  ;;  %v2308_v50 = vadd.f32 %v2276_v44, %v2207_v41  ;;  %v2378_v23 = vmul.f32 %v6551_v22, %v6833_v12  ;;  %v2745_v58 = vld [vmem:[#allocation3 + $0xf2] sm:$0xff]  ;;  %v2746_v41 = vld [vmem:[#allocation3 + $0xfa] sm:$0xff] }
 0x283   : > { %v1755_v17 = vadd.f32 %v6522_v8, %v1754_v18  ;;  %v4741_v3 = vpop.f32.mrb[22].mxu0  ;;  %v2610_v38 = vadd.f32 %v2578_v39, %v2508_v25  ;;  %v2611_v19 = vadd.f32 %v2579_v32, %v2509_v45  ;;  %v2478_v13 = vmul.f32 %v6589_v56, %v6872_v46 }
 0x284   : > { %v1823_v2 = vmax.f32 %v1763_v60, 0.0  ;;  %v1766_v1 = vadd.f32 %v4741_v3, %v6522_v8  ;;  %v1757_v10 = vpop.f32.mrb[23].mxu0  ;;  %v2309_v37 = vadd.f32 %v2277_v55, %v2208_v59  ;;  %v2409_v26 = vadd.f32 %v2377_v5, %v2308_v50 }
 0x285   : > { %v6898_v14 = vmax.f32 %v1755_v17, 0.0  ;;  %v1758_v16 = vadd.f32 %v6522_v8, %v1757_v10  ;;  %v2711_v35 = vadd.f32 %v2679_v51, %v2610_v38  ;;  %v2712_v43 = vadd.f32 %v2680_v28, %v2611_v19 }
 0x286   : > { %1910 = vst [vmem:[#allocation3 + $0x121] sm:$0xff] %v1823_v2  ;;  %v6901_v6 = vmax.f32 %v1766_v1, 0.0  ;;  %v2410_v62 = vadd.f32 %v2378_v23, %v2309_v37  ;;  %v2479_v48 = vmul.f32 %v6589_v56, %v6874_v21  ;;  %v2510_v7 = vadd.f32 %v2478_v13, %v2409_v26  ;;  %v2042_v1 = vld [vmem:[#allocation3 + $0xf9] sm:$0xff] }
 0x287   : > { %1908 = vst [vmem:[#allocation3 + $0x109] sm:$0xff] %v6898_v14  ;;  %v6906_v39 = vmax.f32 %v1758_v16, 0.0  ;;  %v2812_v24 = vadd.f32 %v2780_v30, %v2711_v35  ;;  %v2813_v47 = vadd.f32 %v2781_v40, %v2712_v43  ;;  %v2580_v20 = vmul.f32 %v6566_v54, %v2543_v9 }
 0x288   : > { %1911 = vst [vmem:[#allocation3 + $0x129] sm:$0xff] %v6901_v6  ;;  %v2511_v51 = vadd.f32 %v2479_v48, %v2410_v62  ;;  %v2581_v28 = vmul.f32 %v6566_v54, %v2544_v52  ;;  %v2681_v32 = vmul.f32 %v6556_v29, %v2644_v36  ;;  %v2682_v15 = vmul.f32 %v6556_v29, %v6826_v33 }
 0x289   : > { %1909 = vst [vmem:[#allocation3 + $0x111] sm:$0xff] %v6906_v39  ;;  %v2837_v27 = vpack.c.bf16 %v2813_v47, %v2812_v24  ;;  %v2612_v63 = vadd.f32 %v2580_v20, %v2510_v7  ;;  %v1975_v40 = vmul.f32 %v6527_v42, %v6859_v34  ;;  %v1976_v44 = vmul.f32 %v6527_v42, %v6870_v0 }
 0x28a   : > { %v2613_v30 = vadd.f32 %v2581_v28, %v2511_v51  ;;  %v2076_v31 = vmul.f32 %v6534_v61, %v6823_v49  ;;  %v2782_v45 = vmul.f32 %v6580_v53, %v2745_v58  ;;  %v2077_v55 = vmul.f32 %v6534_v61, %v6833_v12 }
 0x28b   : > { %4779 = vmatmul.mubr.bf16.gmra.mrb[12].mxu1 %v2837_v27  ;;  %v2713_v25 = vadd.f32 %v2681_v32, %v2612_v63  ;;  %v2177_v5 = vmul.f32 %v6544_v57, %v6872_v46  ;;  %v2783_v18 = vmul.f32 %v6580_v53, %v2746_v41  ;;  %v2178_v0 = vmul.f32 %v6544_v57, %v6874_v21 }
 0x28c   : > { %v2714_v60 = vadd.f32 %v2682_v15, %v2613_v30  ;;  %v2108_v34 = vadd.f32 %v2076_v31, %v1975_v40  ;;  %v2109_v50 = vadd.f32 %v2077_v55, %v1976_v44  ;;  %v2278_v49 = vmul.f32 %v6561_v11, %v2543_v9 }
 0x28d   : > { %v2814_v59 = vadd.f32 %v2782_v45, %v2713_v25  ;;  %v2279_v23 = vmul.f32 %v6561_v11, %v2544_v52  ;;  %v2379_v12 = vmul.f32 %v6551_v22, %v2644_v36  ;;  %v2380_v46 = vmul.f32 %v6551_v22, %v6826_v33 }
 0x28e   : > { %v2815_v17 = vadd.f32 %v2783_v18, %v2714_v60  ;;  %v2209_v3 = vadd.f32 %v2177_v5, %v2108_v34  ;;  %v6934_v38 = vld [vmem:[#allocation3 + $0x108] sm:$0xff]  ;;  %v2210_v19 = vadd.f32 %v2178_v0, %v2109_v50  ;;  %v2480_v13 = vmul.f32 %v6589_v56, %v2745_v58  ;;  %v6982_v50 = vld [vmem:[#allocation3 + $0x120] sm:$0xff] }
 0x28f   : > { %v2481_v21 = vmul.f32 %v6589_v56, %v2746_v41  ;;  %v2582_v2 = vmul.f32 %v6566_v54, %v6934_v38  ;;  %v1977_v16 = vmul.f32 %v6527_v42, %v2543_v9  ;;  %v1978_v35 = vmul.f32 %v6527_v42, %v2544_v52 }
 0x290   : > { %v2838_v10 = vpack.c.bf16 %v2815_v17, %v2814_v59  ;;  %v2310_v37 = vadd.f32 %v2278_v49, %v2209_v3  ;;  %v6940_v26 = vld [vmem:[#allocation3 + $0x110] sm:$0xff]  ;;  %v2311_v33 = vadd.f32 %v2279_v23, %v2210_v19  ;;  %v2683_v62 = vmul.f32 %v6556_v29, %v6898_v14  ;;  %v6984_v49 = vld [vmem:[#allocation3 + $0x128] sm:$0xff] }
 0x291   : > { %v2583_v43 = vmul.f32 %v6566_v54, %v6940_v26  ;;  %v2684_v48 = vmul.f32 %v6556_v29, %v6906_v39  ;;  %v2078_v47 = vmul.f32 %v6534_v61, %v2644_v36  ;;  %v2079_v20 = vmul.f32 %v6534_v61, %v2042_v1  ;;  %v6962_v29 = vld [vmem:[%s7949_s3] ss:$0 sm:$0xff]  ;;  %v2748_v25 = vld [vmem:[#allocation3 + $0x112] sm:$0xff]  ;;  %v6995_v19 = vld [vmem:[#allocation3 + $0x121] sm:$0xff] }
 0x292   : > { %v4744_v7 = vpop.f32.mrb[24].mxu0  ;;  %4782 = vmatprep.mubr.bf16.mxu1 %v2838_v10  ;;  %v2411_v24 = vadd.f32 %v2379_v12, %v2310_v37  ;;  %v2179_v9 = vmul.f32 %v6544_v57, %v2745_v58  ;;  %v2412_v54 = vadd.f32 %v2380_v46, %v2311_v33  ;;  %v2180_v51 = vmul.f32 %v6544_v57, %v2746_v41  ;;  %v2747_v58 = vld [vmem:[#allocation3 + $0x10a] sm:$0xff]  ;;  %v6991_v12 = vld [vmem:[%s8078_s12 + $0x4] ss:$0 sm:$0xff]  ;;  %v7003_v10 = vld [vmem:[%s8078_s12 + $0x6] ss:$0 sm:$0xff] }
 0x293   : > { %v6954_v42 = vadd.f32 %v4744_v7, %v6522_v8  ;;  %v1770_v52 = vpop.f32.mrb[25].mxu0  ;;  %v2280_v28 = vmul.f32 %v6561_v11, %v6934_v38  ;;  %v2110_v63 = vadd.f32 %v2078_v47, %v1977_v16  ;;  %v2111_v8 = vadd.f32 %v2079_v20, %v1978_v35  ;;  %v7009_v35 = vld [vmem:[#allocation3 + $0x122] sm:$0xff]  ;;  %v7025_v7 = vld [vmem:[%s8078_s12] ss:$0 sm:$0xff] }
 0x294   : > { %v1771_v36 = vadd.f32 %v6962_v29, %v1770_v52  ;;  %v4745_v61 = vpop.f32.mrb[26].mxu0  ;;  %v2512_v27 = vadd.f32 %v2480_v13, %v2411_v24  ;;  %v2513_v41 = vadd.f32 %v2481_v21, %v2412_v54  ;;  %v2281_v30 = vmul.f32 %v6561_v11, %v6940_v26  ;;  %v7034_v52 = vld [vmem:[%s8078_s12 + $0x1] ss:$0 sm:$0xff] }
 0x295   : > { %v1827_v32 = vmax.f32 %v6954_v42, 0.0  ;;  %v1782_v15 = vadd.f32 %v6962_v29, %v4745_v61  ;;  %v1773_v57 = vpop.f32.mrb[27].mxu0  ;;  %v2211_v45 = vadd.f32 %v2179_v9, %v2110_v63  ;;  %v2784_v60 = vmul.f32 %v6580_v53, %v2747_v58 }
 0x296   : > { %v6969_v40 = vmax.f32 %v1771_v36, 0.0  ;;  %v1774_v44 = vadd.f32 %v6962_v29, %v1773_v57  ;;  %v2614_v31 = vadd.f32 %v2582_v2, %v2512_v27  ;;  %v2615_v5 = vadd.f32 %v2583_v43, %v2513_v41  ;;  %v7050_v36 = vld [vmem:[%s8078_s12 + $0x2] ss:$0 sm:$0xff] }
 0x297   : > { %1914 = vst [vmem:[#allocation3 + $0x151] sm:$0xff] %v1827_v32  ;;  %v6974_v55 = vmax.f32 %v1782_v15, 0.0  ;;  %v2212_v18 = vadd.f32 %v2180_v51, %v2111_v8  ;;  %v2312_v0 = vadd.f32 %v2280_v28, %v2211_v45  ;;  %v2381_v59 = vmul.f32 %v6551_v22, %v6898_v14  ;;  %v7041_v28 = vld [vmem:[%s8078_s12 + $0x8] ss:$0 sm:$0xff] }
 0x298   : > { %1912 = vst [vmem:[#allocation3 + $0x139] sm:$0xff] %v6969_v40  ;;  %v6978_v34 = vmax.f32 %v1774_v44, 0.0  ;;  %v2715_v11 = vadd.f32 %v2683_v62, %v2614_v31  ;;  %v2716_v23 = vadd.f32 %v2684_v48, %v2615_v5  ;;  %v2785_v17 = vmul.f32 %v6580_v53, %v2748_v25  ;;  %v7020_v48 = vld [vmem:[#allocation3 + $0x12a] sm:$0xff] }
 0x299   : > { %1915 = vst [vmem:[#allocation3 + $0x159] sm:$0xff] %v6974_v55  ;;  %v2313_v3 = vadd.f32 %v2281_v30, %v2212_v18  ;;  %v2382_v46 = vmul.f32 %v6991_v12, %v6906_v39  ;;  %v2413_v13 = vadd.f32 %v2381_v59, %v2312_v0  ;;  %v2482_v21 = vmul.f32 %v6589_v56, %v2747_v58 }
 0x29a   : > { %1913 = vst [vmem:[#allocation3 + $0x141] sm:$0xff] %v6978_v34  ;;  %v2816_v22 = vadd.f32 %v2784_v60, %v2715_v11  ;;  %v2483_v2 = vmul.f32 %v6589_v56, %v2748_v25  ;;  %v2817_v53 = vadd.f32 %v2785_v17, %v2716_v23  ;;  %v2584_v37 = vmul.f32 %v7003_v10, %v6982_v50  ;;  %v7014_v56 = vld [vmem:[%s8078_s12 + $0x7] ss:$0 sm:$0xff]  ;;  %v7076_v11 = vld [vmem:[%s8078_s12 + $0x5] ss:$0 sm:$0xff] }
 0x29b   : > { %v2414_v1 = vadd.f32 %v2382_v46, %v2313_v3  ;;  %v2585_v16 = vmul.f32 %v7003_v10, %v6984_v49  ;;  %v2514_v33 = vadd.f32 %v2482_v21, %v2413_v13  ;;  %v2685_v43 = vmul.f32 %v7014_v56, %v6995_v19  ;;  %v2046_v46 = vld [vmem:[#allocation3 + $0x129] sm:$0xff] }
 0x29c   : > { %v2686_v62 = vmul.f32 %v7014_v56, %v6901_v6  ;;  %v1979_v24 = vmul.f32 %v7025_v7, %v6934_v38  ;;  %v2839_v47 = vpack.c.bf16 %v2817_v53, %v2816_v22  ;;  %v1980_v9 = vmul.f32 %v7025_v7, %v6940_v26 }
 0x29d   : > { %v2515_v20 = vadd.f32 %v2483_v2, %v2414_v1  ;;  %v2080_v54 = vmul.f32 %v7034_v52, %v6898_v14  ;;  %v2616_v51 = vadd.f32 %v2584_v37, %v2514_v33  ;;  %v2786_v38 = vmul.f32 %v7041_v28, %v7009_v35 }
 0x29e   : > { %v2081_v26 = vmul.f32 %v7034_v52, %v6906_v39  ;;  %v2181_v61 = vmul.f32 %v7050_v36, %v2747_v58  ;;  %4783 = vmatmul.mubr.bf16.gmra.mrb[16].mxu1 %v2839_v47  ;;  %v2787_v27 = vmul.f32 %v7041_v28, %v7020_v48  ;;  %v2182_v8 = vmul.f32 %v7050_v36, %v2748_v25  ;;  %v7059_v39 = vld [vmem:[%s8078_s12 + $0x3] ss:$0 sm:$0xff] }
 0x29f   : > { %v2617_v14 = vadd.f32 %v2585_v16, %v2515_v20  ;;  %v2112_v63 = vadd.f32 %v2080_v54, %v1979_v24  ;;  %v2717_v15 = vadd.f32 %v2685_v43, %v2616_v51  ;;  %v2282_v41 = vmul.f32 %v7059_v39, %v6982_v50  ;;  %v7065_v30 = vld [vmem:[#allocation3 + $0x138] sm:$0xff] }
 0x2a0   : > { %v2113_v57 = vadd.f32 %v2081_v26, %v1980_v9  ;;  %v2283_v58 = vmul.f32 %v7059_v39, %v6984_v49  ;;  %v2383_v25 = vmul.f32 %v6991_v12, %v6995_v19  ;;  %v2384_v45 = vmul.f32 %v6991_v12, %v6901_v6 }
 0x2a1   : > { %v2718_v44 = vadd.f32 %v2686_v62, %v2617_v14  ;;  %v2213_v31 = vadd.f32 %v2181_v61, %v2112_v63  ;;  %v7071_v5 = vld [vmem:[#allocation3 + $0x140] sm:$0xff]  ;;  %v2818_v60 = vadd.f32 %v2786_v38, %v2717_v15  ;;  %v2484_v0 = vmul.f32 %v7076_v11, %v7009_v35 }
 0x2a2   : > { %v2214_v18 = vadd.f32 %v2182_v8, %v2113_v57  ;;  %v2485_v59 = vmul.f32 %v7076_v11, %v7020_v48  ;;  %v2586_v6 = vmul.f32 %v7003_v10, %v7065_v30  ;;  %v2587_v3 = vmul.f32 %v7003_v10, %v7071_v5  ;;  %v2752_v15 = vld [vmem:[#allocation3 + $0x142] sm:$0xff] }
 0x2a3   : > { %v2819_v23 = vadd.f32 %v2787_v27, %v2718_v44  ;;  %v2314_v17 = vadd.f32 %v2282_v41, %v2213_v31  ;;  %v2687_v21 = vmul.f32 %v7014_v56, %v6969_v40  ;;  %v2688_v2 = vmul.f32 %v7014_v56, %v6978_v34  ;;  %v2751_v27 = vld [vmem:[#allocation3 + $0x13a] sm:$0xff] }
 0x2a4   : > { %v4748_v22 = vpop.f32.mrb[28].mxu0  ;;  %v2315_v13 = vadd.f32 %v2283_v58, %v2214_v18  ;;  %v1981_v53 = vmul.f32 %v7025_v7, %v6982_v50  ;;  %v1982_v43 = vmul.f32 %v7025_v7, %v6984_v49  ;;  %v2082_v20 = vmul.f32 %v7034_v52, %v6995_v19 }
 0x2a5   : > { %v7093_v1 = vadd.f32 %v6962_v29, %v4748_v22  ;;  %v1786_v37 = vpop.f32.mrb[29].mxu0  ;;  %v2840_v16 = vpack.c.bf16 %v2819_v23, %v2818_v60  ;;  %v2415_v33 = vadd.f32 %v2383_v25, %v2314_v17  ;;  %v2083_v9 = vmul.f32 %v7034_v52, %v2046_v46  ;;  %v2551_v23 = vld [vmem:[#allocation3 + $0x150] sm:$0xff]  ;;  %v2552_v17 = vld [vmem:[#allocation3 + $0x158] sm:$0xff] }
 0x2a6   : > { %v1787_v62 = vadd.f32 %v6962_v29, %v1786_v37  ;;  %v4749_v24 = vpop.f32.mrb[30].mxu0  ;;  %v2416_v47 = vadd.f32 %v2384_v45, %v2315_v13  ;;  %v2183_v26 = vmul.f32 %v7050_v36, %v7009_v35  ;;  %v2114_v63 = vadd.f32 %v2082_v20, %v1981_v53 }
 0x2a7   : > { %v1831_v50 = vmax.f32 %v7093_v1, 0.0  ;;  %v1798_v54 = vadd.f32 %v6962_v29, %v4749_v24  ;;  %v1789_v51 = vpop.f32.mrb[31].mxu0  ;;  %4786 = vmatprep.mubr.bf16.mxu1 %v2840_v16  ;;  %v2516_v38 = vadd.f32 %v2484_v0, %v2415_v33  ;;  %v2115_v57 = vadd.f32 %v2083_v9, %v1982_v43  ;;  %v2753_v33 = vld [vmem:[#allocation3 + $0x152] sm:$0xff]  ;;  %v2754_v9 = vld [vmem:[#allocation3 + $0x15a] sm:$0xff] }
 0x2a8   : > { %v7105_v49 = vmax.f32 %v1787_v62, 0.0  ;;  %v1790_v61 = vadd.f32 %v6962_v29, %v1789_v51  ;;  %v2517_v14 = vadd.f32 %v2485_v59, %v2416_v47  ;;  %v2184_v41 = vmul.f32 %v7050_v36, %v7020_v48 }
 0x2a9   : > { %1918 = vst [vmem:[#allocation3 + $0x181] sm:$0xff] %v1831_v50  ;;  %v7110_v19 = vmax.f32 %v1798_v54, 0.0  ;;  %v2618_v8 = vadd.f32 %v2586_v6, %v2516_v38  ;;  %v2215_v29 = vadd.f32 %v2183_v26, %v2114_v63  ;;  %v2284_v44 = vmul.f32 %v7059_v39, %v7065_v30 }
 0x2aa   : > { %1916 = vst [vmem:[#allocation3 + $0x169] sm:$0xff] %v7105_v49  ;;  %v7115_v35 = vmax.f32 %v1790_v61, 0.0  ;;  %v2619_v58 = vadd.f32 %v2587_v3, %v2517_v14  ;;  %v2788_v25 = vmul.f32 %v7041_v28, %v2751_v27  ;;  %v2216_v45 = vadd.f32 %v2184_v41, %v2115_v57  ;;  %v2350_v14 = vld [vmem:[#allocation3 + $0x151] sm:$0xff] }
 0x2ab   : > { %1919 = vst [vmem:[#allocation3 + $0x189] sm:$0xff] %v7110_v19  ;;  %v2719_v31 = vadd.f32 %v2687_v21, %v2618_v8  ;;  %v2285_v60 = vmul.f32 %v7059_v39, %v7071_v5  ;;  %v2789_v18 = vmul.f32 %v7041_v28, %v2752_v15  ;;  %v2316_v0 = vadd.f32 %v2284_v44, %v2215_v29 }
 0x2ac   : > { %1917 = vst [vmem:[#allocation3 + $0x171] sm:$0xff] %v7115_v35  ;;  %v2720_v48 = vadd.f32 %v2688_v2, %v2619_v58  ;;  %v2385_v59 = vmul.f32 %v6991_v12, %v6969_v40  ;;  %v2386_v3 = vmul.f32 %v6991_v12, %v6978_v34  ;;  %v2486_v21 = vmul.f32 %v7076_v11, %v2751_v27 }
 0x2ad   : > { %v2317_v6 = vadd.f32 %v2285_v60, %v2216_v45  ;;  %v2820_v46 = vadd.f32 %v2788_v25, %v2719_v31  ;;  %v2487_v2 = vmul.f32 %v7076_v11, %v2752_v15  ;;  %v2588_v37 = vmul.f32 %v7003_v10, %v2551_v23 }
 0x2ae   : > { %v2821_v22 = vadd.f32 %v2789_v18, %v2720_v48  ;;  %v2417_v13 = vadd.f32 %v2385_v59, %v2316_v0  ;;  %v2589_v16 = vmul.f32 %v7003_v10, %v2552_v17  ;;  %v1983_v24 = vmul.f32 %v7025_v7, %v7065_v30 }
 0x2af   : > { %v2418_v53 = vadd.f32 %v2386_v3, %v2317_v6  ;;  %v1984_v47 = vmul.f32 %v7025_v7, %v7071_v5  ;;  %v2084_v54 = vmul.f32 %v7034_v52, %v6969_v40  ;;  %v2085_v51 = vmul.f32 %v7034_v52, %v6978_v34 }
 0x2b0   : > { %v2841_v43 = vpack.c.bf16 %v2821_v22, %v2820_v46  ;;  %v2518_v62 = vadd.f32 %v2486_v21, %v2417_v13  ;;  %v2185_v38 = vmul.f32 %v7050_v36, %v2751_v27  ;;  %v2689_v61 = vmul.f32 %v7014_v56, %v1827_v32 }
 0x2b1   : > { %v2519_v20 = vadd.f32 %v2487_v2, %v2418_v53  ;;  %v2690_v30 = vmul.f32 %v7014_v56, %v6974_v55  ;;  %v2790_v5 = vmul.f32 %v7041_v28, %v2753_v33  ;;  %v2116_v8 = vadd.f32 %v2084_v54, %v1983_v24  ;;  %v2553_v34 = vld [vmem:[#allocation3 + $0x168] sm:$0xff] }
 0x2b2   : > { %4787 = vmatmul.mubr.bf16.gmra.mrb[20].mxu1 %v2841_v43  ;;  %v2620_v26 = vadd.f32 %v2588_v37, %v2518_v62  ;;  %v2117_v40 = vadd.f32 %v2085_v51, %v1984_v47  ;;  %v2186_v57 = vmul.f32 %v7050_v36, %v2752_v15  ;;  %v2791_v27 = vmul.f32 %v7041_v28, %v2754_v9 }
 0x2b3   : > { %v2621_v63 = vadd.f32 %v2589_v16, %v2519_v20  ;;  %v2286_v58 = vmul.f32 %v7059_v39, %v2551_v23  ;;  %v2287_v42 = vmul.f32 %v7059_v39, %v2552_v17  ;;  %v2217_v29 = vadd.f32 %v2185_v38, %v2116_v8  ;;  %v2554_v25 = vld [vmem:[#allocation3 + $0x170] sm:$0xff] }
 0x2b4   : > { %v2721_v41 = vadd.f32 %v2689_v61, %v2620_v26  ;;  %v2218_v44 = vadd.f32 %v2186_v57, %v2117_v40  ;;  %v2387_v31 = vmul.f32 %v6991_v12, %v2350_v14  ;;  %v2388_v45 = vmul.f32 %v6991_v12, %v6974_v55  ;;  %v2755_v16 = vld [vmem:[#allocation3 + $0x16a] sm:$0xff] }
 0x2b5   : > { %v2722_v32 = vadd.f32 %v2690_v30, %v2621_v63  ;;  %v2488_v60 = vmul.f32 %v7076_v11, %v2753_v33  ;;  %v2489_v15 = vmul.f32 %v7076_v11, %v2754_v9  ;;  %v2590_v48 = vmul.f32 %v7003_v10, %v2553_v34 }
 0x2b6   : > { %v2822_v18 = vadd.f32 %v2790_v5, %v2721_v41  ;;  %v2318_v59 = vadd.f32 %v2286_v58, %v2217_v29  ;;  %v2319_v6 = vadd.f32 %v2287_v42, %v2218_v44  ;;  %v2591_v3 = vmul.f32 %v7003_v10, %v2554_v25  ;;  %v2555_v5 = vld [vmem:[#allocation3 + $0x180] sm:$0xff]  ;;  %v2556_v29 = vld [vmem:[#allocation3 + $0x188] sm:$0xff] }
 0x2b7   : > { %v2823_v0 = vadd.f32 %v2791_v27, %v2722_v32  ;;  %v1985_v46 = vmul.f32 %v7025_v7, %v2551_v23  ;;  %v1986_v22 = vmul.f32 %v7025_v7, %v2552_v17  ;;  %v2086_v13 = vmul.f32 %v7034_v52, %v2350_v14  ;;  %v2756_v17 = vld [vmem:[#allocation3 + $0x172] sm:$0xff] }
 0x2b8   : > { %v2419_v53 = vadd.f32 %v2387_v31, %v2318_v59  ;;  %v2420_v2 = vadd.f32 %v2388_v45, %v2319_v6  ;;  %v2087_v37 = vmul.f32 %v7034_v52, %v6974_v55  ;;  %v2187_v62 = vmul.f32 %v7050_v36, %v2753_v33 }
 0x2b9   : > { %v2842_v21 = vpack.c.bf16 %v2823_v0, %v2822_v18  ;;  %v2118_v43 = vadd.f32 %v2086_v13, %v1985_v46  ;;  %v2188_v24 = vmul.f32 %v7050_v36, %v2754_v9  ;;  %v2288_v47 = vmul.f32 %v7059_v39, %v2553_v34 }
 0x2ba   : > { %v2520_v23 = vadd.f32 %v2488_v60, %v2419_v53  ;;  %v2521_v20 = vadd.f32 %v2489_v15, %v2420_v2  ;;  %v2119_v54 = vadd.f32 %v2087_v37, %v1986_v22  ;;  %v2289_v51 = vmul.f32 %v7059_v39, %v2554_v25  ;;  %v2354_v37 = vld [vmem:[#allocation3 + $0x181] sm:$0xff] }
 0x2bb   : > { %4790 = vmatprep.mubr.bf16.mxu1 %v2842_v21  ;;  %v2691_v38 = vmul.f32 %v7014_v56, %v7105_v49  ;;  %v2692_v55 = vmul.f32 %v7014_v56, %v7115_v35  ;;  %v2219_v26 = vadd.f32 %v2187_v62, %v2118_v43  ;;  %v2792_v9 = vmul.f32 %v7041_v28, %v2755_v16  ;;  %v2757_v21 = vld [vmem:[#allocation3 + $0x182] sm:$0xff] }
 0x2bc   : > { %v2622_v61 = vadd.f32 %v2590_v48, %v2520_v23  ;;  %v2623_v33 = vadd.f32 %v2591_v3, %v2521_v20  ;;  %v2220_v30 = vadd.f32 %v2188_v24, %v2119_v54  ;;  %v2793_v14 = vmul.f32 %v7041_v28, %v2756_v17 }
 0x2bd   : > { %v2320_v63 = vadd.f32 %v2288_v47, %v2219_v26  ;;  %v2389_v8 = vmul.f32 %v6991_v12, %v7105_v49  ;;  %v2390_v40 = vmul.f32 %v6991_v12, %v7115_v35  ;;  %v2490_v58 = vmul.f32 %v7076_v11, %v2755_v16  ;;  %v2659_v26 = vld [vmem:[#allocation3 + $0x1a1] sm:$0xff] }
 0x2be   : > { %v2723_v57 = vadd.f32 %v2691_v38, %v2622_v61  ;;  %v2724_v41 = vadd.f32 %v2692_v55, %v2623_v33  ;;  %v2321_v27 = vadd.f32 %v2289_v51, %v2220_v30  ;;  %v2491_v32 = vmul.f32 %v7076_v11, %v2756_v17  ;;  %v2658_v55 = vld [vmem:[#allocation3 + $0x199] sm:$0xff] }
 0x2bf   : > { %v2421_v42 = vadd.f32 %v2389_v8, %v2320_v63  ;;  %v2592_v44 = vmul.f32 %v7003_v10, %v2555_v5  ;;  %v1987_v31 = vmul.f32 %v7025_v7, %v2553_v34  ;;  %v1988_v48 = vmul.f32 %v7025_v7, %v2554_v25  ;;  %v2758_v7 = vld [vmem:[#allocation3 + $0x18a] sm:$0xff]  ;;  %v2760_v63 = vld [vmem:[#allocation3 + $0x1a2] sm:$0xff] }
 0x2c0   : > { %v2824_v45 = vadd.f32 %v2792_v9, %v2723_v57  ;;  %v2825_v60 = vadd.f32 %v2793_v14, %v2724_v41  ;;  %v2422_v15 = vadd.f32 %v2390_v40, %v2321_v27  ;;  %v2088_v0 = vmul.f32 %v7034_v52, %v7105_v49  ;;  %v4979_v9 = vld [vmem:[#allocation3] sm:$0xff] }
 0x2c1   : > { %v2522_v18 = vadd.f32 %v2490_v58, %v2421_v42  ;;  %v2089_v59 = vmul.f32 %v7034_v52, %v7115_v35  ;;  %v2189_v6 = vmul.f32 %v7050_v36, %v2755_v16  ;;  %v2593_v22 = vmul.f32 %v7003_v10, %v2556_v29  ;;  %v2759_v14 = vld [vmem:[#allocation3 + $0x19a] sm:$0xff] }
 0x2c2   : > { %v2843_v3 = vpack.c.bf16 %v2825_v60, %v2824_v45  ;;  %v2523_v46 = vadd.f32 %v2491_v32, %v2422_v15  ;;  %v2693_v34 = vmul.f32 %v7014_v56, %v1831_v50  ;;  %v2120_v25 = vadd.f32 %v2088_v0, %v1987_v31  ;;  %v7216_v45 = vld [vmem:[#allocation12] ss:$0 sm:$0xff]  ;;  %v3243_v60 = vld [vmem:[#allocation3 + $0x1] sm:$0xff]  ;;  %v3244_v15 = vld [vmem:[#allocation3 + $0x9] sm:$0xff] }
 0x2c3   : > { %v2624_v13 = vadd.f32 %v2592_v44, %v2522_v18  ;;  %v2121_v53 = vadd.f32 %v2089_v59, %v1988_v48  ;;  %v2190_v49 = vmul.f32 %v7050_v36, %v2756_v17  ;;  %v2694_v52 = vmul.f32 %v7014_v56, %v7110_v19  ;;  %v8079_v44 = vld [vmem:[#allocation25_spill] sm:$0xff]  ;;  %v7218_v48 = vld [vmem:[#allocation12 + $0x1] ss:$0 sm:$0xff] }
 0x2c4   : > { %4791 = vmatmul.mubr.bf16.gmra.mrb[24].mxu1 %v2843_v3  ;;  %v2625_v2 = vadd.f32 %v2593_v22, %v2523_v46  ;;  %v2290_v35 = vmul.f32 %v7059_v39, %v2555_v5  ;;  %v2221_v43 = vadd.f32 %v2189_v6, %v2120_v25  ;;  %v2291_v50 = vmul.f32 %v7059_v39, %v2556_v29  ;;  %v3344_v3 = vld [vmem:[#allocation3 + $0x2] sm:$0xff] }
 0x2c5   : > { %v2725_v16 = vadd.f32 %v2693_v34, %v2624_v13  ;;  %v2222_v1 = vadd.f32 %v2190_v49, %v2121_v53  ;;  %v2794_v24 = vmul.f32 %v7041_v28, %v2757_v21  ;;  %v2795_v47 = vmul.f32 %v7041_v28, %v2758_v7  ;;  %v7224_v46 = vld [vmem:[#allocation12 + $0x2] ss:$0 sm:$0xff]  ;;  %v3345_v13 = vld [vmem:[#allocation3 + $0xa] sm:$0xff] }
 0x2c6   : > { %v2726_v62 = vadd.f32 %v2694_v52, %v2625_v2  ;;  %v2322_v23 = vadd.f32 %v2290_v35, %v2221_v43  ;;  %v2391_v20 = vmul.f32 %v6991_v12, %v2354_v37  ;;  %v2392_v17 = vmul.f32 %v6991_v12, %v7110_v19 }
 0x2c7   : > { %v2323_v36 = vadd.f32 %v2291_v50, %v2222_v1  ;;  %v2826_v54 = vadd.f32 %v2794_v24, %v2725_v16  ;;  %v2492_v38 = vmul.f32 %v7076_v11, %v2757_v21  ;;  %v2493_v33 = vmul.f32 %v7076_v11, %v2758_v7  ;;  %v7231_v1 = vld [vmem:[#allocation12 + $0x7] ss:$0 sm:$0xff]  ;;  %v7233_v50 = vld [vmem:[#allocation12 + $0x4] ss:$0 sm:$0xff] }
 0x2c8   : > { %v2827_v51 = vadd.f32 %v2795_v47, %v2726_v62  ;;  %v2423_v61 = vadd.f32 %v2391_v20, %v2322_v23  ;;  %v2594_v30 = vmul.f32 %v4979_v9, %v7003_v10  ;;  %v2695_v12 = vmul.f32 %v7014_v56, %v2658_v55  ;;  %v8081_v62 = vld [vmem:[#allocation26_spill] sm:$0xff]  ;;  %v8082_v24 = vld [vmem:[#allocation27_spill] sm:$0xff]  ;;  %v8083_v20 = vld [vmem:[#allocation28_spill] sm:$0xff] }
 0x2c9   : > { %v2424_v39 = vadd.f32 %v2392_v17, %v2323_v36  ;;  %v2696_v19 = vmul.f32 %v7014_v56, %v2659_v26  ;;  %v2796_v27 = vmul.f32 %v7041_v28, %v2759_v14  ;;  %v2797_v58 = vmul.f32 %v7041_v28, %v2760_v63  ;;  %v7214_v56 = vld [vmem:[%s8080_s26] ss:$0 sm:$0xff]  ;;  %v8084_v17 = vld [vmem:[#allocation29_spill] sm:$0xff] }
 0x2ca   : > { %v2844_v5 = vpack.c.bf16 %v2827_v51, %v2826_v54  ;;  %v2524_v8 = vadd.f32 %v2492_v38, %v2423_v61  ;;  %v4060_v31 = vpack.c.bf16 %v8079_v44, %v5851_v4  ;;  %v3179_v59 = vmul.f32 %v4979_v9, %v7216_v45  ;;  %v8086_v38 = vld [vmem:[#allocation31_spill] sm:$0xff] }
 0x2cb   : > { %v2525_v40 = vadd.f32 %v2493_v33, %v2424_v39  ;;  %v3280_v4 = vmul.f32 %v7218_v48, %v3243_v60  ;;  %v3281_v6 = vmul.f32 %v7218_v48, %v3244_v15  ;;  %v3381_v2 = vmul.f32 %v7224_v46, %v3344_v3 }
 0x2cc   : > { %4794 = vmatprep.mubr.bf16.mxu1 %v2844_v5  ;;  %v2626_v57 = vadd.f32 %v2594_v30, %v2524_v8  ;;  %4131 = vmatprep.subr.bf16.mxu0 %v4060_v31  ;;  %v3382_v16 = vmul.f32 %v7224_v46, %v3345_v13  ;;  %v7274_v31 = vld [vmem:[#allocation12 + $0x5] ss:$0 sm:$0xff] }
 0x2cd   : > { %v2627_v41 = vadd.f32 %v2594_v30, %v2525_v40  ;;  %v3312_v35 = vadd.f32 %v3280_v4, %v3179_v59  ;;  %v3313_v37 = vadd.f32 %v3281_v6, %v3179_v59  ;;  %v7250_v40 = vld [vmem:[#allocation12 + $0x3] ss:$0 sm:$0xff] }
 0x2ce   : > { %v2727_v11 = vadd.f32 %v2695_v12, %v2626_v57 }
 0x2cf   : > { %v2728_v42 = vadd.f32 %v2696_v19, %v2627_v41  ;;  %v3413_v23 = vadd.f32 %v3381_v2, %v3312_v35  ;;  %v3414_v36 = vadd.f32 %v3382_v16, %v3313_v37  ;;  %v7253_v19 = vld [vmem:[#allocation12 + $0x6] ss:$0 sm:$0xff] }
 0x2d0   : > { %v2828_v32 = vadd.f32 %v2796_v27, %v2727_v11 }
 0x2d1   : > { %v2829_v10 = vadd.f32 %v2797_v58, %v2728_v42 }
 0x2d3   : > { %v2845_v29 = vpack.c.bf16 %v2829_v10, %v2828_v32  ;;  %v7266_v32 = vld [vmem:[#allocation12 + $0x8] ss:$0 sm:$0xff] }
 0x2d5   : > { %4795 = vmatmul.mubr.bf16.gmra.mrb[28].mxu1 %v2845_v29 }
 0x328   : > { %v4768_v28 = vpop.f32.mrb[0].mxu1 }
 0x329   : > { %v2960_v18 = vadd.f32 %v4768_v28, %v7214_v56  ;;  %v2951_v0 = vpop.f32.mrb[1].mxu1 }
 0x32a   : > { %v2952_v22 = vadd.f32 %v7214_v56, %v2951_v0  ;;  %v4769_v34 = vpop.f32.mrb[2].mxu1 }
 0x32b   : > { %v3080_v21 = vmax.f32 %v2960_v18, 0.0  ;;  %v2963_v7 = vadd.f32 %v4769_v34, %v7214_v56  ;;  %v2954_v25 = vpop.f32.mrb[3].mxu1 }
 0x32c   : > { %v3078_v53 = vmax.f32 %v2952_v22, 0.0  ;;  %v2955_v49 = vadd.f32 %v7214_v56, %v2954_v25 }
 0x32d   : > { %3112 = vst [vmem:[#allocation3 + $0x31] sm:$0xff] %v3080_v21  ;;  %v3081_v52 = vmax.f32 %v2963_v7, 0.0  ;;  %v7242_v26 = vmul.f32 %v7231_v1, %v3080_v21  ;;  %v7257_v41 = vmul.f32 %v7233_v50, %v3080_v21  ;;  %v7260_v27 = vmul.f32 %v7218_v48, %v3080_v21 }
 0x32e   : > { %3110 = vst [vmem:[#allocation3 + $0x19] sm:$0xff] %v3078_v53  ;;  %v3079_v43 = vmax.f32 %v2955_v49, 0.0  ;;  %v3583_v12 = vmul.f32 %v7233_v50, %v3078_v53  ;;  %v3282_v57 = vmul.f32 %v7218_v48, %v3078_v53 }
 0x32f   : > { %3113 = vst [vmem:[#allocation3 + $0x39] sm:$0xff] %v3081_v52  ;;  %v7264_v42 = vmul.f32 %v7231_v1, %v3081_v52  ;;  %v7269_v10 = vmul.f32 %v7233_v50, %v3081_v52  ;;  %v7272_v29 = vmul.f32 %v7218_v48, %v3081_v52 }
 0x330   : > { %3111 = vst [vmem:[#allocation3 + $0x21] sm:$0xff] %v3079_v43  ;;  %v3584_v58 = vmul.f32 %v7233_v50, %v3079_v43  ;;  %v3283_v60 = vmul.f32 %v7218_v48, %v3079_v43 }
 0x334   : > { %v3748_v11 = vld [vmem:[#allocation3 + $0x30] sm:$0xff] }
 0x335   : > { %v3445_v44 = vld [vmem:[#allocation3 + $0x18] sm:$0xff]  ;;  %v3785_v21 = vmul.f32 %v7253_v19, %v3748_v11  ;;  %v3484_v49 = vmul.f32 %v7250_v40, %v3748_v11  ;;  %v3183_v22 = vmul.f32 %v7216_v45, %v3748_v11 }
 0x336   : > { %v3482_v34 = vmul.f32 %v7250_v40, %v3445_v44  ;;  %v3749_v13 = vld [vmem:[#allocation3 + $0x38] sm:$0xff]  ;;  %v3181_v53 = vmul.f32 %v7216_v45, %v3445_v44 }
 0x337   : > { %v3950_v7 = vld [vmem:[#allocation3 + $0x32] sm:$0xff]  ;;  %v3951_v25 = vld [vmem:[#allocation3 + $0x3a] sm:$0xff]  ;;  %v3648_v35 = vld [vmem:[#allocation3 + $0x22] sm:$0xff]  ;;  %v3786_v37 = vmul.f32 %v7253_v19, %v3749_v13  ;;  %v3485_v44 = vmul.f32 %v7250_v40, %v3749_v13 }
 0x338   : > { %v3446_v2 = vld [vmem:[#allocation3 + $0x20] sm:$0xff]  ;;  %v3987_v16 = vmul.f32 %v7266_v32, %v3950_v7  ;;  %v3988_v43 = vmul.f32 %v7266_v32, %v3951_v25  ;;  %v3514_v18 = vadd.f32 %v3482_v34, %v3413_v23  ;;  %v3685_v33 = vmul.f32 %v7274_v31, %v3648_v35 }
 0x339   : > { %v3647_v52 = vld [vmem:[#allocation3 + $0x1a] sm:$0xff]  ;;  %v3483_v4 = vmul.f32 %v7250_v40, %v3446_v2  ;;  %v3182_v55 = vmul.f32 %v7216_v45, %v3446_v2  ;;  %v3314_v54 = vadd.f32 %v3282_v57, %v3181_v53  ;;  %v3384_v59 = vmul.f32 %v7224_v46, %v3648_v35 }
 0x33a   : > { %v3684_v8 = vmul.f32 %v7274_v31, %v3647_v52  ;;  %v4772_v5 = vpop.f32.mrb[4].mxu1  ;;  %v3383_v47 = vmul.f32 %v7224_v46, %v3647_v52  ;;  %v3615_v11 = vadd.f32 %v3583_v12, %v3514_v18  ;;  %v3686_v14 = vmul.f32 %v7274_v31, %v3950_v7 }
 0x33b   : > { %v2976_v6 = vadd.f32 %v4772_v5, %v7214_v56  ;;  %v2967_v3 = vpop.f32.mrb[5].mxu1  ;;  %v3515_v0 = vadd.f32 %v3483_v4, %v3414_v36  ;;  %v3315_v15 = vadd.f32 %v3283_v60, %v3182_v55  ;;  %v3184_v55 = vmul.f32 %v7216_v45, %v3749_v13 }
 0x33c   : > { %v2968_v23 = vadd.f32 %v7214_v56, %v2967_v3  ;;  %v4773_v34 = vpop.f32.mrb[6].mxu1  ;;  %v3415_v28 = vadd.f32 %v3383_v47, %v3314_v54  ;;  %v3716_v52 = vadd.f32 %v3684_v8, %v3615_v11  ;;  %v3385_v13 = vmul.f32 %v7224_v46, %v3950_v7 }
 0x33d   : > { %v3084_v63 = vmax.f32 %v2976_v6, 0.0  ;;  %v2979_v2 = vadd.f32 %v4773_v34, %v7214_v56  ;;  %v2970_v57 = vpop.f32.mrb[7].mxu1  ;;  %v3616_v53 = vadd.f32 %v3584_v58, %v3515_v0  ;;  %v3416_v36 = vadd.f32 %v3384_v59, %v3315_v15 }
 0x33e   : > { %v3082_v9 = vmax.f32 %v2968_v23, 0.0  ;;  %v2971_v5 = vadd.f32 %v7214_v56, %v2970_v57  ;;  %v3516_v12 = vadd.f32 %v3484_v49, %v3415_v28  ;;  %v3817_v3 = vadd.f32 %v3785_v21, %v3716_v52 }
 0x33f   : > { %3116 = vst [vmem:[#allocation3 + $0x61] sm:$0xff] %v3084_v63  ;;  %v3085_v18 = vmax.f32 %v2979_v2, 0.0  ;;  %v3717_v4 = vadd.f32 %v3685_v33, %v3616_v53  ;;  %v3517_v54 = vadd.f32 %v3485_v44, %v3416_v36  ;;  %v3687_v6 = vmul.f32 %v7274_v31, %v3951_v25 }
 0x340   : > { %3114 = vst [vmem:[#allocation3 + $0x49] sm:$0xff] %v3082_v9  ;;  %v3083_v47 = vmax.f32 %v2971_v5, 0.0  ;;  %v3617_v60 = vadd.f32 %v7257_v41, %v3516_v12  ;;  %v3918_v58 = vadd.f32 %v7242_v26, %v3817_v3  ;;  %v3316_v15 = vadd.f32 %v7260_v27, %v3183_v22 }
 0x341   : > { %3117 = vst [vmem:[#allocation3 + $0x69] sm:$0xff] %v3085_v18  ;;  %v3818_v8 = vadd.f32 %v3786_v37, %v3717_v4  ;;  %v3317_v28 = vadd.f32 %v7272_v29, %v3184_v55  ;;  %v3618_v33 = vadd.f32 %v7269_v10, %v3517_v54  ;;  %v3888_v59 = vmul.f32 %v7231_v1, %v3082_v9 }
 0x342   : > { %3115 = vst [vmem:[#allocation3 + $0x51] sm:$0xff] %v3083_v47  ;;  %v3718_v0 = vadd.f32 %v3686_v14, %v3617_v60  ;;  %v4019_v21 = vadd.f32 %v3987_v16, %v3918_v58  ;;  %v3889_v49 = vmul.f32 %v7231_v1, %v3083_v47  ;;  %v3386_v35 = vmul.f32 %v7224_v46, %v3951_v25 }
 0x343   : > { %v3919_v41 = vadd.f32 %v7264_v42, %v3818_v8  ;;  %v3719_v26 = vadd.f32 %v3687_v6, %v3618_v33  ;;  %v3417_v37 = vadd.f32 %v3385_v13, %v3316_v15  ;;  %v3587_v27 = vmul.f32 %v7233_v50, %v3082_v9 }
 0x344   : > { %v3588_v29 = vmul.f32 %v7233_v50, %v3083_v47  ;;  %v3418_v10 = vadd.f32 %v3386_v35, %v3317_v28  ;;  %v7318_v14 = vmul.f32 %v7231_v1, %v3084_v63  ;;  %v7321_v7 = vmul.f32 %v7231_v1, %v3085_v18 }
 0x345   : > { %v4020_v22 = vadd.f32 %v3988_v43, %v3919_v41  ;;  %v3286_v16 = vmul.f32 %v7218_v48, %v3082_v9  ;;  %v3287_v44 = vmul.f32 %v7218_v48, %v3083_v47  ;;  %v7326_v25 = vmul.f32 %v7233_v50, %v3084_v63 }
 0x346   : > { %v3752_v42 = vld [vmem:[#allocation3 + $0x60] sm:$0xff]  ;;  %v7329_v11 = vmul.f32 %v7233_v50, %v3085_v18  ;;  %v7336_v57 = vmul.f32 %v7218_v48, %v3084_v63  ;;  %v3289_v6 = vmul.f32 %v7218_v48, %v3085_v18  ;;  %v8099_v8 = vpack.c.bf16 %v8082_v24, %v8081_v62 }
 0x347   : > { %v4059_v23 = vpack.c.bf16 %v4020_v22, %v4019_v21  ;;  %v3750_v43 = vld [vmem:[#allocation3 + $0x48] sm:$0xff]  ;;  %v3789_v34 = vmul.f32 %v7253_v19, %v3752_v42  ;;  %v7333_v2 = vmul.f32 %v7250_v40, %v3752_v42  ;;  %v7348_v4 = vmul.f32 %v7216_v45, %v3752_v42 }
 0x348   : > { %v3787_v9 = vmul.f32 %v7253_v19, %v3750_v43  ;;  %v3486_v53 = vmul.f32 %v7250_v40, %v3750_v43  ;;  %v7340_v52 = vld [vmem:[#allocation3 + $0x68] sm:$0xff]  ;;  %v3185_v12 = vmul.f32 %v7216_v45, %v3750_v43 }
 0x349   : > { %v7342_v5 = vld [vmem:[#allocation3 + $0x62] sm:$0xff]  ;;  %v7344_v36 = vld [vmem:[#allocation3 + $0x6a] sm:$0xff]  ;;  %4132 = vmatpush1.bf16.msra.mxu0 %v4059_v23  ;;  %v3953_v63 = vld [vmem:[#allocation3 + $0x52] sm:$0xff]  ;;  %v3790_v47 = vmul.f32 %v7253_v19, %v7340_v52 }
 0x34a   : > { %v3751_v3 = vld [vmem:[#allocation3 + $0x50] sm:$0xff]  ;;  %v7354_v54 = vmul.f32 %v7266_v32, %v7342_v5  ;;  %v7358_v60 = vmul.f32 %v7266_v32, %v7344_v36  ;;  %4133 = vmatprep.subr.bf16.mxu0 %v8099_v8  ;;  %v3819_v15 = vadd.f32 %v3787_v9, %v3718_v0  ;;  %v3990_v33 = vmul.f32 %v7266_v32, %v3953_v63 }
 0x34b   : > { %v3952_v55 = vld [vmem:[#allocation3 + $0x4a] sm:$0xff]  ;;  %v3788_v58 = vmul.f32 %v7253_v19, %v3751_v3  ;;  %v3487_v13 = vmul.f32 %v7250_v40, %v3751_v3  ;;  %v3518_v41 = vadd.f32 %v3486_v53, %v3417_v37  ;;  %v3689_v35 = vmul.f32 %v7274_v31, %v3953_v63  ;;  %v4776_v22 = vpop.f32.mrb[8].mxu1 }
 0x34c   : > { %v3989_v28 = vmul.f32 %v7266_v32, %v3952_v55  ;;  %v3688_v21 = vmul.f32 %v7274_v31, %v3952_v55  ;;  %v3920_v42 = vadd.f32 %v3888_v59, %v3819_v15  ;;  %v3186_v62 = vmul.f32 %v7216_v45, %v3751_v3  ;;  %v2983_v0 = vpop.f32.mrb[9].mxu1 }
 0x34d   : > { %v3820_v18 = vadd.f32 %v3788_v58, %v3719_v26  ;;  %v3318_v24 = vadd.f32 %v3286_v16, %v3185_v12  ;;  %v2992_v23 = vadd.f32 %v4776_v22, %v7214_v56  ;;  %v3519_v43 = vadd.f32 %v3487_v13, %v3418_v10  ;;  %v4777_v37 = vpop.f32.mrb[10].mxu1 }
 0x34e   : > { %v3619_v9 = vadd.f32 %v3587_v27, %v3518_v41  ;;  %v3387_v8 = vmul.f32 %v7224_v46, %v3952_v55  ;;  %v2984_v30 = vadd.f32 %v7214_v56, %v2983_v0  ;;  %v4021_v61 = vadd.f32 %v3989_v28, %v3920_v42  ;;  %v2986_v26 = vpop.f32.mrb[11].mxu1 }
 0x34f   : > { %v3921_v53 = vadd.f32 %v3889_v49, %v3820_v18  ;;  %v3319_v39 = vadd.f32 %v3287_v44, %v3186_v62  ;;  %v7374_v51 = vmax.f32 %v2992_v23, 0.0  ;;  %v2995_v59 = vadd.f32 %v4777_v37, %v7214_v56 }
 0x350   : > { %v3620_v3 = vadd.f32 %v3588_v29, %v3519_v43  ;;  %v3720_v16 = vadd.f32 %v3688_v21, %v3619_v9  ;;  %v3086_v12 = vmax.f32 %v2984_v30, 0.0  ;;  %v2987_v58 = vadd.f32 %v7214_v56, %v2986_v26 }
 0x351   : > { %v4022_v10 = vadd.f32 %v3990_v33, %v3921_v53  ;;  %v3388_v27 = vmul.f32 %v7224_v46, %v3953_v63  ;;  %3120 = vst [vmem:[#allocation3 + $0x91] sm:$0xff] %v7374_v51  ;;  %v7380_v55 = vmax.f32 %v2995_v59, 0.0  ;;  %v3419_v44 = vadd.f32 %v3387_v8, %v3318_v24 }
 0x352   : > { %v3721_v49 = vadd.f32 %v3689_v35, %v3620_v3  ;;  %v3821_v15 = vadd.f32 %v3789_v34, %v3720_v16  ;;  %3118 = vst [vmem:[#allocation3 + $0x79] sm:$0xff] %v3086_v12  ;;  %v3087_v28 = vmax.f32 %v2987_v58, 0.0  ;;  %v3489_v29 = vmul.f32 %v7250_v40, %v7340_v52 }
 0x353   : > { %v4061_v13 = vpack.c.bf16 %v4022_v10, %v4021_v61  ;;  %v3420_v41 = vadd.f32 %v3388_v27, %v3319_v39  ;;  %3121 = vst [vmem:[#allocation3 + $0x99] sm:$0xff] %v7380_v55  ;;  %v3520_v63 = vadd.f32 %v7333_v2, %v3419_v44  ;;  %v3690_v21 = vmul.f32 %v7274_v31, %v7342_v5  ;;  %v8101_v44 = vld [vmem:[#allocation30_spill] sm:$0xff] }
 0x354   : > { %v3822_v30 = vadd.f32 %v3790_v47, %v3721_v49  ;;  %v3922_v33 = vadd.f32 %v7318_v14, %v3821_v15  ;;  %3119 = vst [vmem:[#allocation3 + $0x81] sm:$0xff] %v3087_v28  ;;  %v3691_v61 = vmul.f32 %v7274_v31, %v7344_v36  ;;  %v3892_v39 = vmul.f32 %v7231_v1, %v3086_v12 }
 0x355   : > { %4134 = vmatpush1.bf16.msra.mxu0 %v4061_v13  ;;  %v3521_v34 = vadd.f32 %v3489_v29, %v3420_v41  ;;  %v3188_v35 = vmul.f32 %v7216_v45, %v7340_v52  ;;  %v8100_v47 = vpack.c.bf16 %v8084_v17, %v8083_v20  ;;  %v3621_v2 = vadd.f32 %v7326_v25, %v3520_v63  ;;  %v4937_v20 = vld [vmem:[#allocation16 + $0x4] ss:$8 sps:$4 sm:$0xff]  }
 0x356   : > { %v3923_v14 = vadd.f32 %v7321_v7, %v3822_v30  ;;  %v3893_v22 = vmul.f32 %v7231_v1, %v3087_v28  ;;  %v3320_v18 = vadd.f32 %v7336_v57, %v7348_v4  ;;  %v3389_v24 = vmul.f32 %v7224_v46, %v7342_v5  ;;  %4163 = vmatprep.mubr.bf16.mxu0 %v4937_v20 }
 0x357   : > { %4135 = vmatprep.subr.bf16.mxu0 %v8100_v47  ;;  %v3622_v42 = vadd.f32 %v7329_v11, %v3521_v34  ;;  %v3321_v62 = vadd.f32 %v3289_v6, %v3188_v35  ;;  %v3390_v52 = vmul.f32 %v7224_v46, %v7344_v36  ;;  %v4023_v17 = vadd.f32 %v7354_v54, %v3922_v33 }
 0x358   : > { %v4024_v7 = vadd.f32 %v7358_v60, %v3923_v14  ;;  %v3722_v25 = vadd.f32 %v3690_v21, %v3621_v2  ;;  %v3591_v23 = vmul.f32 %v7233_v50, %v3086_v12  ;;  %v3421_v43 = vadd.f32 %v3389_v24, %v3320_v18  ;;  %v7411_v4 = vld [vmem:[#allocation3 + $0x90] sm:$0xff] }
 0x359   : > { %v3723_v0 = vadd.f32 %v3691_v61, %v3622_v42  ;;  %v3422_v57 = vadd.f32 %v3390_v52, %v3321_v62  ;;  %v3592_v11 = vmul.f32 %v7233_v50, %v3087_v28  ;;  %v3754_v6 = vld [vmem:[#allocation3 + $0x78] sm:$0xff]  ;;  %v3793_v36 = vmul.f32 %v7253_v19, %v7411_v4 }
 0x35a   : > { %v4063_v5 = vpack.c.bf16 %v4024_v7, %v4023_v17  ;;  %v3894_v54 = vmul.f32 %v7231_v1, %v7374_v51  ;;  %v7419_v60 = vmul.f32 %v7231_v1, %v7380_v55  ;;  %v3791_v9 = vmul.f32 %v7253_v19, %v3754_v6  ;;  %v7423_v37 = vld [vmem:[#allocation3 + $0x98] sm:$0xff] }
 0x35b   : > { %v3490_v8 = vmul.f32 %v7250_v40, %v3754_v6  ;;  %v7425_v53 = vld [vmem:[#allocation3 + $0x92] sm:$0xff]  ;;  %v3189_v59 = vmul.f32 %v7216_v45, %v3754_v6  ;;  %v3290_v26 = vmul.f32 %v7218_v48, %v3086_v12  ;;  %v3755_v3 = vld [vmem:[#allocation3 + $0x80] sm:$0xff]  ;;  %v3794_v10 = vmul.f32 %v7253_v19, %v7423_v37 }
 0x35c   : > { %4136 = vmatpush1.bf16.msra.mxu0 %v4063_v5  ;;  %v3956_v16 = vld [vmem:[#allocation3 + $0x7a] sm:$0xff]  ;;  %v3957_v58 = vld [vmem:[#allocation3 + $0x82] sm:$0xff]  ;;  %v3995_v27 = vmul.f32 %v7266_v32, %v7425_v53  ;;  %v3291_v49 = vmul.f32 %v7218_v48, %v3087_v28  ;;  %v3492_v15 = vmul.f32 %v7250_v40, %v7411_v4  ;;  %v8102_v13 = vpack.c.bf16 %v8086_v38, %v8101_v44 }
 0x35d   : > { %v3792_v12 = vmul.f32 %v7253_v19, %v3755_v3  ;;  %v3823_v41 = vadd.f32 %v3791_v9, %v3722_v25  ;;  %v3993_v29 = vmul.f32 %v7266_v32, %v3956_v16  ;;  %v3994_v30 = vmul.f32 %v7266_v32, %v3957_v58 }
 0x35e   : > { %4137 = vmatprep.subr.bf16.mxu0 %v8102_v13  ;;  %v3491_v33 = vmul.f32 %v7250_v40, %v3755_v3  ;;  %v3522_v63 = vadd.f32 %v3490_v8, %v3421_v43  ;;  %v3692_v21 = vmul.f32 %v7274_v31, %v3956_v16  ;;  %v3693_v28 = vmul.f32 %v7274_v31, %v3957_v58  ;;  %v4780_v47 = vpop.f32.mrb[12].mxu1 }
 0x35f   : > { %v3824_v34 = vadd.f32 %v3792_v12, %v3723_v0  ;;  %v3924_v61 = vadd.f32 %v3892_v39, %v3823_v41  ;;  %v3190_v35 = vmul.f32 %v7216_v45, %v3755_v3  ;;  %v3322_v38 = vadd.f32 %v3290_v26, %v3189_v59  ;;  %v2999_v24 = vpop.f32.mrb[13].mxu1  ;;  %v3959_v3 = vld [vmem:[#allocation3 + $0x9a] sm:$0xff] }
 0x360   : > { %v3523_v14 = vadd.f32 %v3491_v33, %v3422_v57  ;;  %v3623_v2 = vadd.f32 %v3591_v23, %v3522_v63  ;;  %v3391_v18 = vmul.f32 %v7224_v46, %v3956_v16  ;;  %v3392_v42 = vmul.f32 %v7224_v46, %v3957_v58  ;;  %v4781_v25 = vpop.f32.mrb[14].mxu1  ;;  %v8103_v33 = vld [vmem:[#allocation33_spill] sm:$0xff] }
 0x361   : > { %v3008_v62 = vadd.f32 %v4780_v47, %v7214_v56  ;;  %v3925_v52 = vadd.f32 %v3893_v22, %v3824_v34  ;;  %v4025_v20 = vadd.f32 %v3993_v29, %v3924_v61  ;;  %v3323_v17 = vadd.f32 %v3291_v49, %v3190_v35  ;;  %v3002_v57 = vpop.f32.mrb[15].mxu1 }
 0x362   : > { %v3000_v7 = vadd.f32 %v7214_v56, %v2999_v24  ;;  %v3624_v39 = vadd.f32 %v3592_v11, %v3523_v14  ;;  %v3724_v0 = vadd.f32 %v3692_v21, %v3623_v2  ;;  %v3423_v43 = vadd.f32 %v3391_v18, %v3322_v38 }
 0x363   : > { %v7450_v5 = vmax.f32 %v3008_v62, 0.0  ;;  %v3011_v23 = vadd.f32 %v4781_v25, %v7214_v56  ;;  %v4026_v6 = vadd.f32 %v3994_v30, %v3925_v52  ;;  %v3424_v9 = vadd.f32 %v3392_v42, %v3323_v17 }
 0x364   : > { %v3090_v8 = vmax.f32 %v3000_v7, 0.0  ;;  %v3003_v59 = vadd.f32 %v7214_v56, %v3002_v57  ;;  %v3725_v26 = vadd.f32 %v3693_v28, %v3624_v39  ;;  %v3825_v22 = vadd.f32 %v3793_v36, %v3724_v0 }
 0x365   : > { %3124 = vst [vmem:[#allocation3 + $0xc1] sm:$0xff] %v7450_v5  ;;  %v7455_v16 = vmax.f32 %v3011_v23, 0.0  ;;  %v4065_v11 = vpack.c.bf16 %v4026_v6, %v4025_v20  ;;  %v3493_v58 = vmul.f32 %v7250_v40, %v7423_v37  ;;  %v3524_v49 = vadd.f32 %v3492_v15, %v3423_v43 }
 0x366   : > { %3122 = vst [vmem:[#allocation3 + $0xa9] sm:$0xff] %v3090_v8  ;;  %v7459_v44 = vmax.f32 %v3003_v59, 0.0  ;;  %v3826_v13 = vadd.f32 %v3794_v10, %v3725_v26  ;;  %v3926_v12 = vadd.f32 %v3894_v54, %v3825_v22  ;;  %v3593_v41 = vmul.f32 %v7233_v50, %v7374_v51  ;;  %v8104_v10 = vld [vmem:[#allocation32_spill] sm:$0xff]  ;;  %v8107_v59 = vld [vmem:[#allocation34_spill] sm:$0xff] }
 0x367   : > { %3125 = vst [vmem:[#allocation3 + $0xc9] sm:$0xff] %v7455_v16  ;;  %4138 = vmatpush1.bf16.msra.mxu0 %v4065_v11  ;;  %v3996_v36 = vmul.f32 %v7266_v32, %v3959_v3  ;;  %v3525_v29 = vadd.f32 %v3493_v58, %v3424_v9  ;;  %v3594_v30 = vmul.f32 %v7233_v50, %v7380_v55  ;;  %v8106_v9 = vld [vmem:[#allocation35_spill] sm:$0xff] }
 0x368   : > { %v3694_v15 = vmul.f32 %v7274_v31, %v7425_v53  ;;  %3123 = vst [vmem:[#allocation3 + $0xb1] sm:$0xff] %v7459_v44  ;;  %v8105_v54 = vpack.c.bf16 %v8103_v33, %v8104_v10  ;;  %v3927_v63 = vadd.f32 %v7419_v60, %v3826_v13  ;;  %v4027_v21 = vadd.f32 %v3995_v27, %v3926_v12 }
 0x369   : > { %v3625_v28 = vadd.f32 %v3593_v41, %v3524_v49  ;;  %v3695_v34 = vmul.f32 %v7274_v31, %v3959_v3  ;;  %v3626_v61 = vadd.f32 %v3594_v30, %v3525_v29  ;;  %v3896_v35 = vmul.f32 %v7231_v1, %v3090_v8 }
 0x36a   : > { %4139 = vmatprep.subr.bf16.mxu0 %v8105_v54  ;;  %v3191_v38 = vmul.f32 %v7216_v45, %v7411_v4  ;;  %v3192_v47 = vmul.f32 %v7216_v45, %v7423_v37  ;;  %v4028_v14 = vadd.f32 %v3996_v36, %v3927_v63  ;;  %v3897_v2 = vmul.f32 %v7231_v1, %v7459_v44 }
 0x36b   : > { %v3292_v60 = vmul.f32 %v7218_v48, %v7374_v51  ;;  %v3293_v27 = vmul.f32 %v7218_v48, %v7380_v55  ;;  %v3726_v18 = vadd.f32 %v3694_v15, %v3625_v28  ;;  %v3727_v42 = vadd.f32 %v3695_v34, %v3626_v61 }
 0x36c   : > { %v3393_v62 = vmul.f32 %v7224_v46, %v7425_v53  ;;  %v3394_v4 = vmul.f32 %v7224_v46, %v3959_v3  ;;  %v4067_v24 = vpack.c.bf16 %v4028_v14, %v4027_v21  ;;  %v3595_v20 = vmul.f32 %v7233_v50, %v3090_v8  ;;  %v7490_v17 = vld [vmem:[#allocation3 + $0xc0] sm:$0xff] }
 0x36d   : > { %v3324_v52 = vadd.f32 %v3292_v60, %v3191_v38  ;;  %v3325_v37 = vadd.f32 %v3293_v27, %v3192_v47  ;;  %v3758_v7 = vld [vmem:[#allocation3 + $0xa8] sm:$0xff]  ;;  %v3596_v51 = vmul.f32 %v7233_v50, %v7459_v44  ;;  %v3797_v55 = vmul.f32 %v7253_v19, %v7490_v17 }
 0x36e   : > { %v3898_v25 = vmul.f32 %v7231_v1, %v7450_v5  ;;  %v7500_v53 = vmul.f32 %v7231_v1, %v7455_v16  ;;  %4140 = vmatpush1.bf16.msra.mxu0 %v4067_v24  ;;  %v3795_v39 = vmul.f32 %v7253_v19, %v3758_v7  ;;  %v3494_v43 = vmul.f32 %v7250_v40, %v3758_v7  ;;  %v7504_v23 = vld [vmem:[#allocation3 + $0xc8] sm:$0xff] }
 0x36f   : > { %v3425_v0 = vadd.f32 %v3393_v62, %v3324_v52  ;;  %v7506_v57 = vld [vmem:[#allocation3 + $0xc2] sm:$0xff]  ;;  %v3294_v6 = vmul.f32 %v7218_v48, %v3090_v8  ;;  %v8108_v26 = vpack.c.bf16 %v8106_v9, %v8107_v59  ;;  %v3759_v22 = vld [vmem:[#allocation3 + $0xb0] sm:$0xff]  ;;  %v3426_v58 = vadd.f32 %v3394_v4, %v3325_v37 }
 0x370   : > { %v3960_v3 = vld [vmem:[#allocation3 + $0xaa] sm:$0xff]  ;;  %v3961_v11 = vld [vmem:[#allocation3 + $0xb2] sm:$0xff]  ;;  %v3798_v49 = vmul.f32 %v7253_v19, %v7504_v23  ;;  %v3999_v13 = vmul.f32 %v7266_v32, %v7506_v57  ;;  %v3193_v12 = vmul.f32 %v7216_v45, %v3758_v7  ;;  %v3796_v41 = vmul.f32 %v7253_v19, %v3759_v22 }
 0x371   : > { %4141 = vmatprep.subr.bf16.mxu0 %v8108_v26  ;;  %v3827_v36 = vadd.f32 %v3795_v39, %v3726_v18  ;;  %v3997_v8 = vmul.f32 %v7266_v32, %v3960_v3  ;;  %v3998_v29 = vmul.f32 %v7266_v32, %v3961_v11  ;;  %v3495_v30 = vmul.f32 %v7250_v40, %v3759_v22  ;;  %v4784_v14 = vpop.f32.mrb[16].mxu1 }
 0x372   : > { %v3526_v15 = vadd.f32 %v3494_v43, %v3425_v0  ;;  %v3696_v33 = vmul.f32 %v7274_v31, %v3960_v3  ;;  %v3697_v10 = vmul.f32 %v7274_v31, %v3961_v11  ;;  %v3828_v54 = vadd.f32 %v3796_v41, %v3727_v42  ;;  %v3015_v42 = vpop.f32.mrb[17].mxu1 }
 0x373   : > { %v3928_v63 = vadd.f32 %v3896_v35, %v3827_v36  ;;  %v3194_v21 = vmul.f32 %v7216_v45, %v3759_v22  ;;  %v3295_v28 = vmul.f32 %v7218_v48, %v7459_v44  ;;  %v3527_v34 = vadd.f32 %v3495_v30, %v3426_v58  ;;  %v4785_v44 = vpop.f32.mrb[18].mxu1  ;;  %v3963_v22 = vld [vmem:[#allocation3 + $0xca] sm:$0xff]  ;;  %v3259_v30 = vld [vmem:[#allocation3 + $0xc1] sm:$0xff] }
 0x374   : > { %v3627_v61 = vadd.f32 %v3595_v20, %v3526_v15  ;;  %v3326_v38 = vadd.f32 %v3294_v6, %v3193_v12  ;;  %v3395_v47 = vmul.f32 %v7224_v46, %v3960_v3  ;;  %v3929_v60 = vadd.f32 %v3897_v2, %v3828_v54  ;;  %v3018_v43 = vpop.f32.mrb[19].mxu1  ;;  %v8109_v15 = vld [vmem:[#allocation37_spill] sm:$0xff] }
 0x375   : > { %v4029_v27 = vadd.f32 %v3997_v8, %v3928_v63  ;;  %v3327_v18 = vadd.f32 %v3295_v28, %v3194_v21  ;;  %v3396_v62 = vmul.f32 %v7224_v46, %v3961_v11  ;;  %v3024_v4 = vadd.f32 %v4784_v14, %v7214_v56  ;;  %v3260_v63 = vld [vmem:[#allocation3 + $0xc9] sm:$0xff]  ;;  %v8113_v28 = vld [vmem:[#allocation45_spill] sm:$0xff] }
 0x376   : > { %v3628_v35 = vadd.f32 %v3596_v51, %v3527_v34  ;;  %v3728_v24 = vadd.f32 %v3696_v33, %v3627_v61  ;;  %v3427_v52 = vadd.f32 %v3395_v47, %v3326_v38  ;;  %v3016_v37 = vadd.f32 %v7214_v56, %v3015_v42  ;;  %v8110_v33 = vld [vmem:[#allocation36_spill] sm:$0xff] }
 0x377   : > { %v4030_v7 = vadd.f32 %v3998_v29, %v3929_v60  ;;  %v3428_v20 = vadd.f32 %v3396_v62, %v3327_v18  ;;  %v3496_v39 = vmul.f32 %v7250_v40, %v7490_v17  ;;  %v3096_v0 = vmax.f32 %v3024_v4, 0.0  ;;  %v8112_v21 = vld [vmem:[#allocation44_spill] sm:$0xff] }
 0x378   : > { %v3027_v2 = vadd.f32 %v4785_v44, %v7214_v56  ;;  %v3729_v6 = vadd.f32 %v3697_v10, %v3628_v35  ;;  %v3829_v9 = vadd.f32 %v3797_v55, %v3728_v24  ;;  %v3094_v59 = vmax.f32 %v3016_v37, 0.0 }
 0x379   : > { %v3019_v26 = vadd.f32 %v7214_v56, %v3018_v43  ;;  %v4069_v51 = vpack.c.bf16 %v4030_v7, %v4029_v27  ;;  %v3497_v3 = vmul.f32 %v7250_v40, %v7504_v23  ;;  %3128 = vst [vmem:[#allocation3 + $0xf1] sm:$0xff] %v3096_v0  ;;  %v3528_v41 = vadd.f32 %v3496_v39, %v3427_v52  ;;  %v8114_v43 = vld [vmem:[#allocation39_spill] sm:$0xff] }
 0x37a   : > { %v3097_v11 = vmax.f32 %v3027_v2, 0.0  ;;  %v3830_v58 = vadd.f32 %v3798_v49, %v3729_v6  ;;  %v3930_v12 = vadd.f32 %v3898_v25, %v3829_v9  ;;  %3126 = vst [vmem:[#allocation3 + $0xd9] sm:$0xff] %v3094_v59  ;;  %v3597_v55 = vmul.f32 %v7233_v50, %v7450_v5  ;;  %v8115_v6 = vld [vmem:[#allocation38_spill] sm:$0xff] }
 0x37b   : > { %v3095_v36 = vmax.f32 %v3019_v26, 0.0  ;;  %4142 = vmatpush1.bf16.msra.mxu0 %v4069_v51  ;;  %v3529_v8 = vadd.f32 %v3497_v3, %v3428_v20  ;;  %v3598_v29 = vmul.f32 %v7233_v50, %v7455_v16  ;;  %v8111_v10 = vpack.c.bf16 %v8109_v15, %v8110_v33 }
 0x37c   : > { %3129 = vst [vmem:[#allocation3 + $0xf9] sm:$0xff] %v3097_v11  ;;  %v3931_v49 = vadd.f32 %v7500_v53, %v3830_v58  ;;  %v4000_v25 = vmul.f32 %v7266_v32, %v3963_v22  ;;  %v4031_v54 = vadd.f32 %v3999_v13, %v3930_v12  ;;  %v4080_v34 = vpack.c.bf16 %v8113_v28, %v8112_v21 }
 0x37d   : > { %4143 = vmatprep.subr.bf16.mxu0 %v8111_v10  ;;  %3127 = vst [vmem:[#allocation3 + $0xe1] sm:$0xff] %v3095_v36  ;;  %v3629_v5 = vadd.f32 %v3597_v55, %v3528_v41  ;;  %v3630_v61 = vadd.f32 %v3598_v29, %v3529_v8  ;;  %v3698_v16 = vmul.f32 %v7274_v31, %v7506_v57 }
 0x37e   : > { %v3699_v38 = vmul.f32 %v7274_v31, %v3963_v22  ;;  %v4032_v47 = vadd.f32 %v4000_v25, %v3931_v49  ;;  %v3195_v14 = vmul.f32 %v7216_v45, %v7490_v17  ;;  %v3196_v53 = vmul.f32 %v7216_v45, %v7504_v23 }
 0x37f   : > { %v3296_v13 = vmul.f32 %v7218_v48, %v3259_v30  ;;  %v3900_v60 = vmul.f32 %v7231_v1, %v3094_v59  ;;  %v3901_v27 = vmul.f32 %v7231_v1, %v3095_v36  ;;  %v3297_v18 = vmul.f32 %v7218_v48, %v3260_v63 }
 0x380   : > { %v3397_v62 = vmul.f32 %v7224_v46, %v7506_v57  ;;  %v4071_v4 = vpack.c.bf16 %v4032_v47, %v4031_v54  ;;  %v3730_v42 = vadd.f32 %v3698_v16, %v3629_v5  ;;  %v3731_v35 = vadd.f32 %v3699_v38, %v3630_v61  ;;  %v7563_v44 = vld [vmem:[#allocation3 + $0xf0] sm:$0xff] }
 0x381   : > { %v3328_v24 = vadd.f32 %v3296_v13, %v3195_v14  ;;  %v3329_v52 = vadd.f32 %v3297_v18, %v3196_v53  ;;  %v3398_v17 = vmul.f32 %v7224_v46, %v3963_v22  ;;  %v3599_v23 = vmul.f32 %v7233_v50, %v3094_v59  ;;  %v7565_v7 = vld [vmem:[#allocation3 + $0xf1] sm:$0xff] }
 0x382   : > { %v3600_v37 = vmul.f32 %v7233_v50, %v3095_v36  ;;  %4144 = vmatpush1.bf16.msra.mxu0 %v4071_v4  ;;  %v3762_v20 = vld [vmem:[#allocation3 + $0xd8] sm:$0xff]  ;;  %v3801_v57 = vmul.f32 %v7253_v19, %v7563_v44  ;;  %v7570_v0 = vmul.f32 %v7231_v1, %v3097_v11  ;;  %v3298_v2 = vmul.f32 %v7218_v48, %v3094_v59 }
 0x383   : > { %v3429_v39 = vadd.f32 %v3397_v62, %v3328_v24  ;;  %v8116_v9 = vpack.c.bf16 %v8114_v43, %v8115_v6  ;;  %v3799_v26 = vmul.f32 %v7253_v19, %v3762_v20  ;;  %v3498_v51 = vmul.f32 %v7250_v40, %v3762_v20  ;;  %v7578_v22 = vld [vmem:[#allocation3 + $0xf8] sm:$0xff] }
 0x384   : > { %v3902_v3 = vmul.f32 %v7231_v1, %v7565_v7  ;;  %v3197_v58 = vmul.f32 %v7216_v45, %v3762_v20  ;;  %v3763_v12 = vld [vmem:[#allocation3 + $0xe0] sm:$0xff]  ;;  %v3430_v8 = vadd.f32 %v3398_v17, %v3329_v52  ;;  %v3802_v59 = vmul.f32 %v7253_v19, %v7578_v22 }
 0x385   : > { %4145 = vmatprep.subr.bf16.mxu0 %v8116_v9  ;;  %v3964_v11 = vld [vmem:[#allocation3 + $0xda] sm:$0xff]  ;;  %v3965_v41 = vld [vmem:[#allocation3 + $0xe2] sm:$0xff]  ;;  %v3299_v55 = vmul.f32 %v7218_v48, %v3095_v36  ;;  %v3500_v29 = vmul.f32 %v7250_v40, %v7563_v44  ;;  %v3800_v30 = vmul.f32 %v7253_v19, %v3763_v12  ;;  %v3831_v15 = vadd.f32 %v3799_v26, %v3730_v42  ;;  %v4788_v16 = vpop.f32.mrb[20].mxu1 }
 0x386   : > { %v4001_v33 = vmul.f32 %v7266_v32, %v3964_v11  ;;  %v4002_v10 = vmul.f32 %v7266_v32, %v3965_v41  ;;  %v3499_v49 = vmul.f32 %v7250_v40, %v3763_v12  ;;  %v3530_v25 = vadd.f32 %v3498_v51, %v3429_v39  ;;  %v3031_v18 = vpop.f32.mrb[21].mxu1  ;;  %v3967_v51 = vld [vmem:[#allocation3 + $0xfa] sm:$0xff] }
 0x387   : > { %v3700_v54 = vmul.f32 %v7274_v31, %v3964_v11  ;;  %v3701_v63 = vmul.f32 %v7274_v31, %v3965_v41  ;;  %v3832_v5 = vadd.f32 %v3800_v30, %v3731_v35  ;;  %v3932_v61 = vadd.f32 %v3900_v60, %v3831_v15  ;;  %v4789_v35 = vpop.f32.mrb[22].mxu1 }
 0x388   : > { %v3198_v48 = vmul.f32 %v7216_v45, %v3763_v12  ;;  %v3330_v36 = vadd.f32 %v3298_v2, %v3197_v58  ;;  %v3531_v38 = vadd.f32 %v3499_v49, %v3430_v8  ;;  %v3631_v47 = vadd.f32 %v3599_v23, %v3530_v25  ;;  %v3034_v23 = vpop.f32.mrb[23].mxu1  ;;  %v3565_v58 = vld [vmem:[#allocation3 + $0xf9] sm:$0xff]  ;;  %v8118_v49 = vld [vmem:[#allocation40_spill] sm:$0xff] }
 0x389   : > { %v3399_v14 = vmul.f32 %v7224_v46, %v3964_v11  ;;  %v3400_v53 = vmul.f32 %v7224_v46, %v3965_v41  ;;  %v3040_v13 = vadd.f32 %v4788_v16, %v7214_v56  ;;  %v3933_v62 = vadd.f32 %v3901_v27, %v3832_v5  ;;  %v3966_v27 = vld [vmem:[#allocation3 + $0xf2] sm:$0xff] }
 0x38a   : > { %v4033_v4 = vadd.f32 %v4001_v33, %v3932_v61  ;;  %v3331_v42 = vadd.f32 %v3299_v55, %v3198_v48  ;;  %v3032_v24 = vadd.f32 %v7214_v56, %v3031_v18  ;;  %v3632_v60 = vadd.f32 %v3600_v37, %v3531_v38  ;;  %v7620_v48 = vld [vmem:[#allocation12] ss:$0 sm:$0xff] }
 0x38b   : > { %v3732_v52 = vadd.f32 %v3700_v54, %v3631_v47  ;;  %v3431_v45 = vadd.f32 %v3399_v14, %v3330_v36  ;;  %v3100_v17 = vmax.f32 %v3040_v13, 0.0  ;;  %v3043_v20 = vadd.f32 %v4789_v35, %v7214_v56  ;;  %v7627_v14 = vld [vmem:[#allocation12 + $0x1] ss:$0 sm:$0xff] }
 0x38c   : > { %v4034_v39 = vadd.f32 %v4002_v10, %v3933_v62  ;;  %v3432_v2 = vadd.f32 %v3400_v53, %v3331_v42  ;;  %v3098_v43 = vmax.f32 %v3032_v24, 0.0  ;;  %v3035_v6 = vadd.f32 %v7214_v56, %v3034_v23  ;;  %v7635_v24 = vld [vmem:[#allocation12 + $0x2] ss:$0 sm:$0xff] }
 0x38d   : > { %v3733_v9 = vadd.f32 %v3701_v63, %v3632_v60  ;;  %v3833_v26 = vadd.f32 %v3801_v57, %v3732_v52  ;;  %3132 = vst [vmem:[#allocation3 + $0x121] sm:$0xff] %v3100_v17  ;;  %v7601_v12 = vmax.f32 %v3043_v20, 0.0  ;;  %v3501_v11 = vmul.f32 %v7250_v40, %v7578_v22 }
 0x38e   : > { %v4073_v37 = vpack.c.bf16 %v4034_v39, %v4033_v4  ;;  %v3532_v41 = vadd.f32 %v3500_v29, %v3431_v45  ;;  %3130 = vst [vmem:[#allocation3 + $0x109] sm:$0xff] %v3098_v43  ;;  %v7605_v8 = vmax.f32 %v3035_v6, 0.0  ;;  %v3601_v56 = vmul.f32 %v7233_v50, %v7565_v7  ;;  %v8117_v29 = vld [vmem:[#allocation41_spill] sm:$0xff] }
 0x38f   : > { %v3834_v55 = vadd.f32 %v3802_v59, %v3733_v9  ;;  %v3934_v30 = vadd.f32 %v3902_v3, %v3833_v26  ;;  %3133 = vst [vmem:[#allocation3 + $0x129] sm:$0xff] %v7601_v12  ;;  %v4003_v57 = vmul.f32 %v7266_v32, %v3966_v27  ;;  %v4004_v15 = vmul.f32 %v7266_v32, %v3967_v51  ;;  %v8120_v9 = vld [vmem:[#allocation43_spill] sm:$0xff]  ;;  %v8121_v26 = vld [vmem:[#allocation42_spill] sm:$0xff] }
 0x390   : > { %4146 = vmatpush1.bf16.msra.mxu0 %v4073_v37  ;;  %v3533_v33 = vadd.f32 %v3501_v11, %v3432_v2  ;;  %v3602_v10 = vmul.f32 %v7233_v50, %v3565_v58  ;;  %3131 = vst [vmem:[#allocation3 + $0x111] sm:$0xff] %v7605_v8  ;;  %v8119_v25 = vpack.c.bf16 %v8117_v29, %v8118_v49 }
 0x391   : > { %v3935_v3 = vadd.f32 %v7570_v0, %v3834_v55  ;;  %v3633_v59 = vadd.f32 %v3601_v56, %v3532_v41  ;;  %v3702_v54 = vmul.f32 %v7274_v31, %v3966_v27  ;;  %v3703_v63 = vmul.f32 %v7274_v31, %v3967_v51 }
 0x392   : > { %4147 = vmatprep.subr.bf16.mxu0 %v8119_v25  ;;  %v4035_v5 = vadd.f32 %v4003_v57, %v3934_v30  ;;  %v3634_v61 = vadd.f32 %v3602_v10, %v3533_v33  ;;  %v3199_v36 = vmul.f32 %v7620_v48, %v7563_v44  ;;  %v3200_v16 = vmul.f32 %v7620_v48, %v7578_v22 }
 0x393   : > { %v4036_v38 = vadd.f32 %v4004_v15, %v3935_v3  ;;  %v3904_v47 = vmul.f32 %v7231_v1, %v3098_v43  ;;  %v3300_v0 = vmul.f32 %v7627_v14, %v7565_v7  ;;  %v3301_v53 = vmul.f32 %v7627_v14, %v3565_v58 }
 0x394   : > { %v3734_v13 = vadd.f32 %v3702_v54, %v3633_v59  ;;  %v3735_v18 = vadd.f32 %v3703_v63, %v3634_v61  ;;  %v3905_v62 = vmul.f32 %v7231_v1, %v7605_v8  ;;  %v3401_v44 = vmul.f32 %v7224_v46, %v3966_v27  ;;  %v7638_v60 = vld [vmem:[#allocation3 + $0x120] sm:$0xff] }
 0x395   : > { %v4075_v4 = vpack.c.bf16 %v4036_v38, %v4035_v5  ;;  %v3332_v42 = vadd.f32 %v3300_v0, %v3199_v36  ;;  %v3333_v22 = vadd.f32 %v3301_v53, %v3200_v16  ;;  %v3402_v35 = vmul.f32 %v7635_v24, %v3967_v51  ;;  %v7640_v52 = vld [vmem:[#allocation3 + $0x121] sm:$0xff] }
 0x396   : > { %v3766_v7 = vld [vmem:[#allocation3 + $0x108] sm:$0xff]  ;;  %v3603_v45 = vmul.f32 %v7233_v50, %v3098_v43  ;;  %v3604_v17 = vmul.f32 %v7233_v50, %v7605_v8  ;;  %v3805_v46 = vmul.f32 %v7253_v19, %v7638_v60  ;;  %v7649_v20 = vmul.f32 %v7231_v1, %v7640_v52 }
 0x397   : > { %4148 = vmatpush1.bf16.msra.mxu0 %v4075_v4  ;;  %v3803_v23 = vmul.f32 %v7253_v19, %v3766_v7  ;;  %v3502_v39 = vmul.f32 %v7250_v40, %v3766_v7  ;;  %v7653_v2 = vld [vmem:[#allocation3 + $0x128] sm:$0xff]  ;;  %v7657_v6 = vmul.f32 %v7231_v1, %v7601_v12  ;;  %v3302_v50 = vmul.f32 %v7627_v14, %v3098_v43  ;;  %v3767_v51 = vld [vmem:[#allocation3 + $0x110] sm:$0xff] }
 0x398   : > { %v8122_v27 = vpack.c.bf16 %v8120_v9, %v8121_v26  ;;  %v3968_v58 = vld [vmem:[#allocation3 + $0x10a] sm:$0xff]  ;;  %v3969_v37 = vld [vmem:[#allocation3 + $0x112] sm:$0xff]  ;;  %v3433_v11 = vadd.f32 %v3401_v44, %v3332_v42  ;;  %v3434_v41 = vadd.f32 %v3402_v35, %v3333_v22  ;;  %v3806_v55 = vmul.f32 %v7253_v19, %v7653_v2  ;;  %v7690_v26 = vld [vmem:[#allocation12 + $0x3] ss:$0 sm:$0xff] }
 0x399   : > { %v3201_v30 = vmul.f32 %v7620_v48, %v3766_v7  ;;  %v3804_v56 = vmul.f32 %v7253_v19, %v3767_v51  ;;  %v3835_v1 = vadd.f32 %v3803_v23, %v3734_v13  ;;  %v4005_v57 = vmul.f32 %v7266_v32, %v3968_v58  ;;  %v4792_v19 = vpop.f32.mrb[24].mxu1  ;;  %v3970_v23 = vld [vmem:[#allocation3 + $0x122] sm:$0xff] }
 0x39a   : > { %4149 = vmatprep.subr.bf16.mxu0 %v8122_v27  ;;  %v4006_v43 = vmul.f32 %v7266_v32, %v3969_v37  ;;  %v3503_v15 = vmul.f32 %v7250_v40, %v3767_v51  ;;  %v3534_v33 = vadd.f32 %v3502_v39, %v3433_v11  ;;  %v3704_v10 = vmul.f32 %v7274_v31, %v3968_v58  ;;  %v7679_v40 = vld [vmem:[%s8080_s26] ss:$0 sm:$0xff]  ;;  %v3047_v61 = vpop.f32.mrb[25].mxu1  ;;  %v7701_v11 = vld [vmem:[#allocation12 + $0x8] ss:$0 sm:$0xff] }
 0x39b   : > { %v3705_v29 = vmul.f32 %v7274_v31, %v3969_v37  ;;  %v3836_v49 = vadd.f32 %v3804_v56, %v3735_v18  ;;  %v3936_v25 = vadd.f32 %v3904_v47, %v3835_v1  ;;  %v3202_v3 = vmul.f32 %v7620_v48, %v3767_v51  ;;  %v8124_v56 = vld [vmem:[#allocation47_spill] sm:$0xff] }
 0x39c   : > { %v3303_v59 = vmul.f32 %v7627_v14, %v7605_v8  ;;  %v3535_v54 = vadd.f32 %v3503_v15, %v3434_v41  ;;  %v3635_v63 = vadd.f32 %v3603_v45, %v3534_v33  ;;  %v3334_v5 = vadd.f32 %v3302_v50, %v3201_v30  ;;  %v4793_v8 = vpop.f32.mrb[26].mxu1  ;;  %v3971_v50 = vld [vmem:[#allocation3 + $0x12a] sm:$0xff]  ;;  %v8123_v30 = vld [vmem:[#allocation46_spill] sm:$0xff] }
 0x39d   : > { %v3403_v32 = vmul.f32 %v7635_v24, %v3968_v58  ;;  %v3056_v31 = vadd.f32 %v7679_v40, %v4792_v19  ;;  %v3937_v36 = vadd.f32 %v3905_v62, %v3836_v49  ;;  %v4037_v16 = vadd.f32 %v4005_v57, %v3936_v25  ;;  %v3050_v4 = vpop.f32.mrb[27].mxu1 }
 0x39e   : > { %v3335_v38 = vadd.f32 %v3303_v59, %v3202_v3  ;;  %v3048_v47 = vadd.f32 %v7679_v40, %v3047_v61  ;;  %v3636_v0 = vadd.f32 %v3604_v17, %v3535_v54  ;;  %v3736_v53 = vadd.f32 %v3704_v10, %v3635_v63  ;;  %v7718_v3 = vld [vmem:[#allocation12 + $0x5] ss:$0 sm:$0xff]  ;;  %v8125_v54 = vld [vmem:[#allocation48_spill] sm:$0xff]  ;;  %v8126_v63 = vld [vmem:[#allocation49_spill] sm:$0xff] }
 0x39f   : > { %v3404_v13 = vmul.f32 %v7635_v24, %v3969_v37  ;;  %v3104_v18 = vmax.f32 %v3056_v31, 0.0  ;;  %v3059_v44 = vadd.f32 %v7679_v40, %v4793_v8  ;;  %v4038_v42 = vadd.f32 %v4006_v43, %v3937_v36  ;;  %v7706_v43 = vld [vmem:[#allocation12 + $0x4] ss:$0 sm:$0xff] }
 0x3a0   : > { %v3435_v22 = vadd.f32 %v3403_v32, %v3334_v5  ;;  %v7685_v35 = vmax.f32 %v3048_v47, 0.0  ;;  %v3051_v7 = vadd.f32 %v7679_v40, %v3050_v4  ;;  %v3737_v62 = vadd.f32 %v3705_v29, %v3636_v0  ;;  %v3268_v29 = vld [vmem:[#allocation3 + $0x129] sm:$0xff] }
 0x3a1   : > { %v3837_v45 = vadd.f32 %v3805_v46, %v3736_v53  ;;  %3136 = vst [vmem:[#allocation3 + $0x151] sm:$0xff] %v3104_v18  ;;  %v7688_v39 = vmax.f32 %v3059_v44, 0.0  ;;  %v4077_v17 = vpack.c.bf16 %v4038_v42, %v4037_v16  ;;  %v3436_v9 = vadd.f32 %v3404_v13, %v3335_v38  ;;  %v7743_v18 = vld [vmem:[#allocation12 + $0x6] ss:$0 sm:$0xff] }
 0x3a2   : > { %v3504_v27 = vmul.f32 %v7690_v26, %v7638_v60  ;;  %3134 = vst [vmem:[#allocation3 + $0x139] sm:$0xff] %v7685_v35  ;;  %v7695_v51 = vmax.f32 %v3051_v7, 0.0  ;;  %v3838_v58 = vadd.f32 %v3806_v55, %v3737_v62  ;;  %v3505_v46 = vmul.f32 %v7690_v26, %v7653_v2 }
 0x3a3   : > { %v3938_v37 = vadd.f32 %v7649_v20, %v3837_v45  ;;  %3137 = vst [vmem:[#allocation3 + $0x159] sm:$0xff] %v7688_v39  ;;  %4150 = vmatpush1.bf16.msra.mxu0 %v4077_v17  ;;  %v4007_v41 = vmul.f32 %v7701_v11, %v3970_v23  ;;  %v4082_v1 = vpack.c.bf16 %v8124_v56, %v8123_v30 }
 0x3a4   : > { %v3536_v57 = vadd.f32 %v3504_v27, %v3435_v22  ;;  %v3605_v55 = vmul.f32 %v7706_v43, %v7640_v52  ;;  %3135 = vst [vmem:[#allocation3 + $0x141] sm:$0xff] %v7695_v51  ;;  %4151 = vmatprep.subr.bf16.mxu0 %v4080_v34  ;;  %v3939_v20 = vadd.f32 %v7657_v6, %v3838_v58 }
 0x3a5   : > { %v4008_v15 = vmul.f32 %v7701_v11, %v3971_v50  ;;  %v3537_v33 = vadd.f32 %v3505_v46, %v3436_v9  ;;  %v3606_v10 = vmul.f32 %v7706_v43, %v7601_v12  ;;  %v4039_v49 = vadd.f32 %v4007_v41, %v3938_v37 }
 0x3a6   : > { %v3637_v25 = vadd.f32 %v3605_v55, %v3536_v57  ;;  %v3706_v59 = vmul.f32 %v7718_v3, %v3970_v23  ;;  %v3203_v19 = vmul.f32 %v7620_v48, %v7638_v60  ;;  %v3204_v34 = vmul.f32 %v7620_v48, %v7653_v2  ;;  %v7732_v60 = vld [vmem:[#allocation12 + $0x7] ss:$0 sm:$0xff] }
 0x3a7   : > { %v4040_v21 = vadd.f32 %v4008_v15, %v3939_v20  ;;  %v3638_v28 = vadd.f32 %v3606_v10, %v3537_v33  ;;  %v3304_v6 = vmul.f32 %v7627_v14, %v7640_v52  ;;  %v3707_v12 = vmul.f32 %v7718_v3, %v3971_v50 }
 0x3a8   : > { %v4084_v5 = vpack.c.bf16 %v8126_v63, %v8125_v54  ;;  %v3305_v32 = vmul.f32 %v7627_v14, %v3268_v29  ;;  %v3405_v31 = vmul.f32 %v7635_v24, %v3970_v23  ;;  %v3738_v36 = vadd.f32 %v3706_v59, %v3637_v25  ;;  %v7736_v38 = vld [vmem:[#allocation3 + $0x150] sm:$0xff]  ;;  %v4796_v30 = vpop.f32.mrb[28].mxu1 }
 0x3a9   : > { %v4079_v61 = vpack.c.bf16 %v4040_v21, %v4039_v49  ;;  %v3908_v16 = vmul.f32 %v7732_v60, %v7685_v35  ;;  %v3336_v2 = vadd.f32 %v3304_v6, %v3203_v19  ;;  %v7738_v52 = vld [vmem:[#allocation3 + $0x151] sm:$0xff]  ;;  %v3739_v47 = vadd.f32 %v3707_v12, %v3638_v28  ;;  %v3063_v15 = vpop.f32.mrb[29].mxu1 }
 0x3aa   : > { %v3770_v8 = vld [vmem:[#allocation3 + $0x138] sm:$0xff]  ;;  %v3909_v0 = vmul.f32 %v7732_v60, %v7695_v51  ;;  %v3337_v53 = vadd.f32 %v3305_v32, %v3204_v34  ;;  %v3406_v13 = vmul.f32 %v7635_v24, %v3971_v50  ;;  %v3607_v42 = vmul.f32 %v7706_v43, %v7685_v35  ;;  %v4797_v25 = vpop.f32.mrb[30].mxu1 }
 0x3ab   : > { %4152 = vmatpush1.bf16.msra.mxu0 %v4079_v61  ;;  %v3807_v44 = vmul.f32 %v7743_v18, %v3770_v8  ;;  %v3506_v4 = vmul.f32 %v7690_v26, %v3770_v8  ;;  %v3608_v22 = vmul.f32 %v7706_v43, %v7695_v51  ;;  %v7751_v7 = vld [vmem:[#allocation3 + $0x158] sm:$0xff]  ;;  %v3771_v62 = vld [vmem:[#allocation3 + $0x140] sm:$0xff]  ;;  %v3437_v17 = vadd.f32 %v3405_v31, %v3336_v2  ;;  %v3066_v6 = vpop.f32.mrb[31].mxu1 }
 0x3ac   : > { %4153 = vmatprep.subr.bf16.mxu0 %v4082_v1  ;;  %v3972_v45 = vld [vmem:[#allocation3 + $0x13a] sm:$0xff]  ;;  %v3973_v23 = vld [vmem:[#allocation3 + $0x142] sm:$0xff]  ;;  %v3438_v50 = vadd.f32 %v3406_v13, %v3337_v53  ;;  %v3809_v9 = vmul.f32 %v7743_v18, %v7736_v38  ;;  %v3910_v27 = vmul.f32 %v7732_v60, %v7738_v52  ;;  %v3808_v58 = vmul.f32 %v7743_v18, %v3771_v62 }
 0x3ad   : > { %v3839_v37 = vadd.f32 %v3807_v44, %v3738_v36  ;;  %v4009_v46 = vmul.f32 %v7701_v11, %v3972_v45  ;;  %v3810_v41 = vmul.f32 %v7743_v18, %v7751_v7  ;;  %v4010_v56 = vmul.f32 %v7701_v11, %v3973_v23 }
 0x3ae   : > { %v3507_v1 = vmul.f32 %v7690_v26, %v3771_v62  ;;  %v3538_v57 = vadd.f32 %v3506_v4, %v3437_v17  ;;  %v3708_v55 = vmul.f32 %v7718_v3, %v3972_v45  ;;  %v7765_v20 = vadd.f32 %v7679_v40, %v4796_v30  ;;  %v3975_v4 = vld [vmem:[#allocation3 + $0x15a] sm:$0xff] }
 0x3af   : > { %v3840_v33 = vadd.f32 %v3808_v58, %v3739_v47  ;;  %v3940_v10 = vadd.f32 %v3908_v16, %v3839_v37  ;;  %v3709_v29 = vmul.f32 %v7718_v3, %v3973_v23  ;;  %v3064_v49 = vadd.f32 %v7679_v40, %v3063_v15 }
 0x3b0   : > { %v3539_v59 = vadd.f32 %v3507_v1, %v3438_v50  ;;  %v3639_v19 = vadd.f32 %v3607_v42, %v3538_v57  ;;  %v3205_v21 = vmul.f32 %v7620_v48, %v3770_v8  ;;  %v3108_v28 = vmax.f32 %v7765_v20, 0.0  ;;  %v8127_v1 = vld [vmem:[#allocation50_spill] sm:$0xff] }
 0x3b1   : > { %v3075_v34 = vadd.f32 %v7679_v40, %v4797_v25  ;;  %v3941_v12 = vadd.f32 %v3909_v0, %v3840_v33  ;;  %v4041_v32 = vadd.f32 %v4009_v46, %v3940_v10  ;;  %v7772_v31 = vmax.f32 %v3064_v49, 0.0 }
 0x3b2   : > { %v3067_v61 = vadd.f32 %v7679_v40, %v3066_v6  ;;  %v3640_v36 = vadd.f32 %v3608_v22, %v3539_v59  ;;  %v3740_v16 = vadd.f32 %v3708_v55, %v3639_v19  ;;  %3140 = vst [vmem:[#allocation3 + $0x181] sm:$0xff] %v3108_v28  ;;  %v3206_v8 = vmul.f32 %v7620_v48, %v3771_v62  ;;  %v3974_v40 = vld [vmem:[#allocation3 + $0x152] sm:$0xff] }
 0x3b3   : > { %v7777_v2 = vmax.f32 %v3075_v34, 0.0  ;;  %v4042_v47 = vadd.f32 %v4010_v56, %v3941_v12  ;;  %v3306_v53 = vmul.f32 %v7627_v14, %v7685_v35  ;;  %3138 = vst [vmem:[#allocation3 + $0x169] sm:$0xff] %v7772_v31  ;;  %v3307_v42 = vmul.f32 %v7627_v14, %v7695_v51  ;;  %v3272_v55 = vld [vmem:[#allocation3 + $0x159] sm:$0xff] }
 0x3b4   : > { %v7783_v0 = vmax.f32 %v3067_v61, 0.0  ;;  %v3741_v13 = vadd.f32 %v3709_v29, %v3640_v36  ;;  %v3841_v44 = vadd.f32 %v3809_v9, %v3740_v16  ;;  %v3911_v62 = vmul.f32 %v7732_v60, %v7688_v39 }
 0x3b5   : > { %3141 = vst [vmem:[#allocation3 + $0x189] sm:$0xff] %v7777_v2  ;;  %v4081_v22 = vpack.c.bf16 %v4042_v47, %v4041_v32  ;;  %v3338_v17 = vadd.f32 %v3306_v53, %v3205_v21  ;;  %v3407_v35 = vmul.f32 %v7635_v24, %v3972_v45  ;;  %v3339_v37 = vadd.f32 %v3307_v42, %v3206_v8 }
 0x3b6   : > { %3139 = vst [vmem:[#allocation3 + $0x171] sm:$0xff] %v7783_v0  ;;  %v3842_v50 = vadd.f32 %v3810_v41, %v3741_v13  ;;  %v3942_v58 = vadd.f32 %v3910_v27, %v3841_v44  ;;  %v3408_v9 = vmul.f32 %v7635_v24, %v3973_v23  ;;  %v4011_v46 = vmul.f32 %v7701_v11, %v3974_v40  ;;  %v8128_v41 = vld [vmem:[#allocation51_spill] sm:$0xff] }
 0x3b7   : > { %4154 = vmatpush1.bf16.msra.mxu0 %v4081_v22  ;;  %v4012_v51 = vmul.f32 %v7701_v11, %v3975_v4  ;;  %v3439_v30 = vadd.f32 %v3407_v35, %v3338_v17  ;;  %v3508_v56 = vmul.f32 %v7690_v26, %v7736_v38  ;;  %v4086_v27 = vpack.c.bf16 %v8128_v41, %v8127_v1  ;;  %v8129_v41 = vld [vmem:[#allocation52_spill] sm:$0xff] }
 0x3b8   : > { %4155 = vmatprep.subr.bf16.mxu0 %v4084_v5  ;;  %v3943_v45 = vadd.f32 %v3911_v62, %v3842_v50  ;;  %v3440_v57 = vadd.f32 %v3408_v9, %v3339_v37  ;;  %v3509_v23 = vmul.f32 %v7690_v26, %v7751_v7  ;;  %v4043_v15 = vadd.f32 %v4011_v46, %v3942_v58 }
 0x3b9   : > { %v3540_v33 = vadd.f32 %v3508_v56, %v3439_v30  ;;  %v3609_v10 = vmul.f32 %v7706_v43, %v7738_v52  ;;  %v3610_v29 = vmul.f32 %v7706_v43, %v7688_v39  ;;  %v3710_v63 = vmul.f32 %v7718_v3, %v3974_v40  ;;  %v3776_v46 = vld [vmem:[#allocation3 + $0x180] sm:$0xff] }
 0x3ba   : > { %v4044_v49 = vadd.f32 %v4012_v51, %v3943_v45  ;;  %v3541_v54 = vadd.f32 %v3509_v23, %v3440_v57  ;;  %v3207_v5 = vmul.f32 %v7620_v48, %v7736_v38  ;;  %v3774_v59 = vld [vmem:[#allocation3 + $0x168] sm:$0xff]  ;;  %v3208_v19 = vmul.f32 %v7620_v48, %v7751_v7 }
 0x3bb   : > { %v3641_v25 = vadd.f32 %v3609_v10, %v3540_v33  ;;  %v3308_v21 = vmul.f32 %v7627_v14, %v7738_v52  ;;  %v3309_v34 = vmul.f32 %v7627_v14, %v3272_v55  ;;  %v3711_v39 = vmul.f32 %v7718_v3, %v3975_v4 }
 0x3bc   : > { %v4083_v6 = vpack.c.bf16 %v4044_v49, %v4043_v15  ;;  %v3642_v12 = vadd.f32 %v3610_v29, %v3541_v54  ;;  %v3409_v32 = vmul.f32 %v7635_v24, %v3974_v40  ;;  %v3811_v38 = vmul.f32 %v7743_v18, %v3774_v59  ;;  %v3777_v1 = vld [vmem:[#allocation3 + $0x188] sm:$0xff] }
 0x3bd   : > { %v3742_v61 = vadd.f32 %v3710_v63, %v3641_v25  ;;  %v3775_v36 = vld [vmem:[#allocation3 + $0x170] sm:$0xff]  ;;  %v3340_v16 = vadd.f32 %v3308_v21, %v3207_v5  ;;  %v3341_v47 = vadd.f32 %v3309_v34, %v3208_v19  ;;  %v3410_v52 = vmul.f32 %v7635_v24, %v3975_v4  ;;  %v3978_v34 = vld [vmem:[#allocation3 + $0x182] sm:$0xff] }
 0x3be   : > { %4156 = vmatpush1.bf16.msra.mxu0 %v4083_v6  ;;  %v3743_v8 = vadd.f32 %v3711_v39, %v3642_v12  ;;  %v3812_v7 = vmul.f32 %v7743_v18, %v3775_v36  ;;  %v3976_v53 = vld [vmem:[#allocation3 + $0x16a] sm:$0xff]  ;;  %v3912_v44 = vmul.f32 %v7732_v60, %v7772_v31  ;;  %v3977_v42 = vld [vmem:[#allocation3 + $0x172] sm:$0xff]  ;;  %v3510_v22 = vmul.f32 %v7690_v26, %v3774_v59 }
 0x3bf   : > { %4157 = vmatprep.subr.bf16.mxu0 %v4086_v27  ;;  %v3843_v13 = vadd.f32 %v3811_v38, %v3742_v61  ;;  %v3441_v40 = vadd.f32 %v3409_v32, %v3340_v16  ;;  %v3913_v17 = vmul.f32 %v7732_v60, %v7783_v0  ;;  %v3442_v35 = vadd.f32 %v3410_v52, %v3341_v47  ;;  %v8130_v27 = vld [vmem:[#allocation53_spill] sm:$0xff]  ;;  %v3979_v6 = vld [vmem:[#allocation3 + $0x18a] sm:$0xff] }
 0x3c0   : > { %v3844_v62 = vadd.f32 %v3812_v7, %v3743_v8  ;;  %v3511_v50 = vmul.f32 %v7690_v26, %v3775_v36  ;;  %v4013_v37 = vmul.f32 %v7701_v11, %v3976_v53  ;;  %v3611_v9 = vmul.f32 %v7706_v43, %v7772_v31 }
 0x3c1   : > { %v3944_v58 = vadd.f32 %v3912_v44, %v3843_v13  ;;  %v3542_v4 = vadd.f32 %v3510_v22, %v3441_v40  ;;  %v4014_v30 = vmul.f32 %v7701_v11, %v3977_v42  ;;  %v3612_v45 = vmul.f32 %v7706_v43, %v7783_v0 }
 0x3c2   : > { %v3945_v51 = vadd.f32 %v3913_v17, %v3844_v62  ;;  %v3543_v56 = vadd.f32 %v3511_v50, %v3442_v35  ;;  %v4088_v57 = vpack.c.bf16 %v8130_v27, %v8129_v41  ;;  %v3712_v55 = vmul.f32 %v7718_v3, %v3976_v53  ;;  %v3879_v17 = vld [vmem:[#allocation3 + $0x199] sm:$0xff]  ;;  %v8132_v50 = vld [vmem:[#allocation55_spill] sm:$0xff] }
 0x3c3   : > { %v3643_v23 = vadd.f32 %v3611_v9, %v3542_v4  ;;  %v3713_v15 = vmul.f32 %v7718_v3, %v3977_v42  ;;  %v4045_v33 = vadd.f32 %v4013_v37, %v3944_v58  ;;  %v3813_v49 = vmul.f32 %v7743_v18, %v3776_v46  ;;  %v8131_v35 = vld [vmem:[#allocation54_spill] sm:$0xff] }
 0x3c4   : > { %v4046_v10 = vadd.f32 %v4014_v30, %v3945_v51  ;;  %v3644_v29 = vadd.f32 %v3612_v45, %v3543_v56  ;;  %v3814_v63 = vmul.f32 %v7743_v18, %v3777_v1  ;;  %v3209_v5 = vmul.f32 %v7620_v48, %v3774_v59  ;;  %v3880_v9 = vld [vmem:[#allocation3 + $0x1a1] sm:$0xff]  ;;  %v4948_v41 = vld [vmem:[#allocation13 + $0x8] sm:$0xff]  }
 0x3c5   : > { %v3744_v54 = vadd.f32 %v3712_v55, %v3643_v23  ;;  %v3210_v25 = vmul.f32 %v7620_v48, %v3775_v36  ;;  %v3310_v12 = vmul.f32 %v7627_v14, %v7772_v31  ;;  %v3311_v39 = vmul.f32 %v7627_v14, %v7783_v0  ;;  %v3576_v31 = vld [vmem:[#allocation3 + $0x181] sm:$0xff] }
 0x3c6   : > { %v4085_v19 = vpack.c.bf16 %v4046_v10, %v4045_v33  ;;  %v3745_v21 = vadd.f32 %v3713_v15, %v3644_v29  ;;  %v3914_v61 = vmul.f32 %v7732_v60, %v3108_v28  ;;  %v3915_v59 = vmul.f32 %v7732_v60, %v7777_v2  ;;  %v4990_v30 = vld [vmem:[#allocation3] sm:$0xff] }
 0x3c7   : > { %v3845_v32 = vadd.f32 %v3813_v49, %v3744_v54  ;;  %v3411_v48 = vmul.f32 %v7635_v24, %v3976_v53  ;;  %v3342_v38 = vadd.f32 %v3310_v12, %v3209_v5  ;;  %v3343_v16 = vadd.f32 %v3311_v39, %v3210_v25  ;;  %v3980_v45 = vld [vmem:[#allocation3 + $0x19a] sm:$0xff]  ;;  %v4938_v25 = vld [vmem:[#allocation16 + $0x14] ss:$8 sps:$4 sm:$0xff]  }
 0x3c8   : > { %4158 = vmatpush1.bf16.msra.mxu0 %v4085_v19  ;;  %v3846_v36 = vadd.f32 %v3814_v63, %v3745_v21  ;;  %v3412_v47 = vmul.f32 %v7635_v24, %v3977_v42  ;;  %v4015_v14 = vmul.f32 %v7701_v11, %v3978_v34  ;;  %v4016_v20 = vmul.f32 %v7701_v11, %v3979_v6  ;;  %v4947_v24 = vld [vmem:[#allocation13] sm:$0xff]   ;;  %v4949_v33 = vld [vmem:[#allocation13 + $0x10] sm:$0xff]   ;;  %v4950_v63 = vld [vmem:[#allocation13 + $0x18] sm:$0xff]  }
 0x3c9   : > { %4159 = vmatprep.subr.bf16.mxu0 %v4088_v57  ;;  %v3946_v8 = vadd.f32 %v3914_v61, %v3845_v32  ;;  %v3512_v28 = vmul.f32 %v7690_v26, %v3776_v46  ;;  %v3443_v7 = vadd.f32 %v3411_v48, %v3342_v38  ;;  %v3513_v53 = vmul.f32 %v7690_v26, %v3777_v1  ;;  %v3981_v1 = vld [vmem:[#allocation3 + $0x1a2] sm:$0xff]  ;;  %v4935_v5 = vld [vmem:[#allocation16] ss:$8 sps:$4 sm:$0xff]  }
 0x3ca   : > { %v3947_v0 = vadd.f32 %v3915_v59, %v3846_v36  ;;  %v3444_v52 = vadd.f32 %v3412_v47, %v3343_v16  ;;  %v3613_v13 = vmul.f32 %v7706_v43, %v3576_v31  ;;  %v3614_v44 = vmul.f32 %v7706_v43, %v7777_v2  ;;  %v4951_v19 = vld [vmem:[#allocation13 + $0x20] sm:$0xff]   ;;  %v4940_v21 = vld [vmem:[#allocation16 + $0x10] ss:$8 sps:$4 sm:$0xff]   ;;  %v4956_v59 = vld [vmem:[#allocation13 + $0x48] sm:$0xff]  }
 0x3cb   : > { %v4047_v42 = vadd.f32 %v4015_v14, %v3946_v8  ;;  %v3544_v22 = vadd.f32 %v3512_v28, %v3443_v7  ;;  %v4090_v58 = vpack.c.bf16 %v8132_v50, %v8131_v35  ;;  %v3714_v37 = vmul.f32 %v7718_v3, %v3978_v34  ;;  %v4941_v34 = vld [vmem:[#allocation16 + $0x24] ss:$8 sps:$4 sm:$0xff]   ;;  %v4954_v12 = vld [vmem:[#allocation13 + $0x38] sm:$0xff]   ;;  %v4943_v39 = vld [vmem:[#allocation16 + $0x20] ss:$8 sps:$4 sm:$0xff]  }
 0x3cc   : > { %v4048_v40 = vadd.f32 %v4016_v20, %v3947_v0  ;;  %v3545_v62 = vadd.f32 %v3513_v53, %v3444_v52  ;;  %v3715_v4 = vmul.f32 %v7718_v3, %v3979_v6  ;;  %v3815_v43 = vmul.f32 %v4990_v30, %v7743_v18  ;;  %v4953_v6 = vld [vmem:[#allocation13 + $0x30] sm:$0xff]   ;;  %v4955_v61 = vld [vmem:[#allocation13 + $0x40] sm:$0xff]   ;;  %v4958_v38 = vld [vmem:[#allocation13 + $0x58] sm:$0xff]  }
 0x3cd   : > { %v3645_v46 = vadd.f32 %v3613_v13, %v3544_v22  ;;  %v5314_v2 = vmov 0   ;;  %v3916_v56 = vmul.f32 %v7732_v60, %v3879_v17  ;;  %v3917_v3 = vmul.f32 %v7732_v60, %v3880_v9  ;;  %v4944_v32 = vld [vmem:[#allocation16 + $0x34] ss:$8 sps:$4 sm:$0xff]   ;;  %v4946_v48 = vld [vmem:[#allocation16 + $0x30] ss:$8 sps:$4 sm:$0xff]  }
 0x3ce   : > { %v4087_v26 = vpack.c.bf16 %v4048_v40, %v4047_v42  ;;  %v3646_v51 = vadd.f32 %v3614_v44, %v3545_v62  ;;  %4327 = vmatprep.subr.bf16.mxu1 %v5314_v2  ;;  %v4017_v18 = vmul.f32 %v7701_v11, %v3980_v45  ;;  %v4018_v15 = vmul.f32 %v7701_v11, %v3981_v1  ;;  %v4952_v11 = vld [vmem:[#allocation13 + $0x28] sm:$0xff]   ;;  %v4957_v36 = vld [vmem:[#allocation13 + $0x50] sm:$0xff]   ;;  %v4642_v9 = vld [vmem:[#allocation15] ss:$0 sm:$0xff] }
 0x3cf   : > { %4328 = vmatpush1.bf16.msra.mxu1 %v4947_v24  ;;  %v3746_v27 = vadd.f32 %v3714_v37, %v3645_v46 }
 0x3d0   : > { %4160 = vmatpush1.bf16.msra.mxu0 %v4087_v26  ;;  %v3747_v57 = vadd.f32 %v3715_v4, %v3646_v51  ;;  %4329 = vmatprep.subr.bf16.mxu1 %v5314_v2 }
 0x3d1   : > { %4161 = vmatprep.subr.bf16.mxu0 %v4090_v58  ;;  %v3847_v23 = vadd.f32 %v3815_v43, %v3746_v27 }
 0x3d2   : > { %v3848_v55 = vadd.f32 %v3815_v43, %v3747_v57 }
 0x3d3   : > { %4330 = vmatpush1.bf16.msra.mxu1 %v4948_v41  ;;  %v3948_v10 = vadd.f32 %v3916_v56, %v3847_v23 }
 0x3d4   : > { %v3949_v29 = vadd.f32 %v3917_v3, %v3848_v55  ;;  %4331 = vmatprep.subr.bf16.mxu1 %v5314_v2 }
 0x3d5   : > { %v4049_v49 = vadd.f32 %v4017_v18, %v3948_v10 }
 0x3d6   : > { %v4050_v54 = vadd.f32 %v4018_v15, %v3949_v29 }
 0x3d7   : > { %4332 = vmatpush1.bf16.msra.mxu1 %v4949_v33 }
 0x3d8   : > { %v4089_v60 = vpack.c.bf16 %v4050_v54, %v4049_v49  ;;  %4333 = vmatprep.subr.bf16.mxu1 %v5314_v2 }
 0x3da   : > { %4162 = vmatpush1.bf16.msra.mxu0 %v4089_v60 }
 0x3db   : > { %4334 = vmatpush1.bf16.msra.mxu1 %v4950_v63 }
 0x3dc   : > { %4335 = vmatprep.subr.bf16.mxu1 %v5314_v2 }
 0x3dd   : > { %4164 = vmatmul.mubr.bf16.vlgmr.msra.gmra.mrb[32].mxu0 %v4935_v5 }
 0x3de   : > { %4173 = vmatprep.mubr.bf16.mxu0 %v4938_v25 }
 0x3df   : > { %4336 = vmatpush1.bf16.msra.mxu1 %v4951_v19 }
 0x3e0   : > { %4337 = vmatprep.subr.bf16.mxu1 %v5314_v2 }
 0x3e3   : > { %4338 = vmatpush1.bf16.msra.mxu1 %v4952_v11 }
 0x3e4   : > { %4339 = vmatprep.subr.bf16.mxu1 %v5314_v2 }
 0x3e5   : > { %4174 = vmatmul.mubr.bf16.gmra.mrb[36].mxu0 %v4940_v21 }
 0x3e6   : > { %4183 = vmatprep.mubr.bf16.mxu0 %v4941_v34 }
 0x3e7   : > { %4340 = vmatpush1.bf16.msra.mxu1 %v4953_v6 }
 0x3e8   : > { %4341 = vmatprep.subr.bf16.mxu1 %v5314_v2 }
 0x3eb   : > { %4342 = vmatpush1.bf16.msra.mxu1 %v4954_v12 }
 0x3ec   : > { %4343 = vmatprep.subr.bf16.mxu1 %v5314_v2 }
 0x3ed   : > { %4184 = vmatmul.mubr.bf16.gmra.mrb[40].mxu0 %v4943_v39 }
 0x3ee   : > { %4193 = vmatprep.mubr.bf16.mxu0 %v4944_v32 }
 0x3ef   : > { %4344 = vmatpush1.bf16.msra.mxu1 %v4955_v61 }
 0x3f0   : > { %4345 = vmatprep.subr.bf16.mxu1 %v5314_v2 }
 0x3f3   : > { %4346 = vmatpush1.bf16.msra.mxu1 %v4956_v59 }
 0x3f4   : > { %4347 = vmatprep.subr.bf16.mxu1 %v5314_v2 }
 0x3f5   : > { %4194 = vmatmul.mubr.bf16.gmra.mrb[44].mxu0 %v4946_v48 }
 0x3f7   : > { %4348 = vmatpush1.bf16.msra.mxu1 %v4957_v36 }
 0x3f8   : > { %4349 = vmatprep.subr.bf16.mxu1 %v5314_v2 }
 0x3fb   : > { %4350 = vmatpush1.bf16.msra.mxu1 %v4958_v38 }
 0x4b0   : > { %v4165_v16 = vpop.f32.mrb[32].mxu0 }
 0x4b1   : > { %v4167_v47 = vpop.f32.mrb[33].mxu0 }
 0x4b2   : > { %v4169_v31 = vpop.f32.mrb[34].mxu0 }
 0x4b3   : > { %v4204_v8 = vpack.c.bf16 %v4169_v31, %v4165_v16  ;;  %v4171_v14 = vpop.f32.mrb[35].mxu0 }
 0x4b4   : > { %v4205_v20 = vpack.c.bf16 %v4171_v14, %v4167_v47 }
 0x4b6   : > { %4655 = vmatprep.mubr.msk.bf16.mxu1 %vm538_vm0, %v4205_v20 }
 0x4b7   : > { %4360 = vmatmul.mubr.bf16.vlgmr.msra.gmra.mrb[32].mxu1 %v4204_v8 }
 0x4b8   : > { %v4175_v28 = vpop.f32.mrb[36].mxu0 }
 0x4b9   : > { %v4177_v0 = vpop.f32.mrb[37].mxu0 }
 0x4ba   : > { %v4179_v7 = vpop.f32.mrb[38].mxu0 }
 0x4bb   : > { %v4206_v52 = vpack.c.bf16 %v4179_v7, %v4175_v28  ;;  %v4181_v53 = vpop.f32.mrb[39].mxu0 }
 0x4bc   : > { %v4207_v13 = vpack.c.bf16 %v4181_v53, %v4177_v0 }
 0x4be   : > { %4656 = vmatprep.mubr.msk.bf16.mxu1 %vm538_vm0, %v4207_v13 }
 0x4bf   : > { %4368 = vmatmul.mubr.bf16.gmra.mrb[36].mxu1 %v4206_v52 }
 0x4c0   : > { %v4185_v44 = vpop.f32.mrb[40].mxu0 }
 0x4c1   : > { %v4187_v24 = vpop.f32.mrb[41].mxu0 }
 0x4c2   : > { %v4189_v42 = vpop.f32.mrb[42].mxu0 }
 0x4c3   : > { %v4208_v40 = vpack.c.bf16 %v4189_v42, %v4185_v44  ;;  %v4191_v22 = vpop.f32.mrb[43].mxu0 }
 0x4c4   : > { %v4209_v62 = vpack.c.bf16 %v4191_v22, %v4187_v24 }
 0x4c6   : > { %4657 = vmatprep.mubr.msk.bf16.mxu1 %vm538_vm0, %v4209_v62 }
 0x4c7   : > { %4376 = vmatmul.mubr.bf16.gmra.mrb[40].mxu1 %v4208_v40 }
 0x4c8   : > { %v4195_v17 = vpop.f32.mrb[44].mxu0 }
 0x4c9   : > { %v4197_v35 = vpop.f32.mrb[45].mxu0 }
 0x4ca   : > { %v4199_v50 = vpop.f32.mrb[46].mxu0 }
 0x4cb   : > { %v4210_v58 = vpack.c.bf16 %v4199_v50, %v4195_v17  ;;  %v4201_v37 = vpop.f32.mrb[47].mxu0 }
 0x4cc   : > { %v4211_v4 = vpack.c.bf16 %v4201_v37, %v4197_v35 }
 0x4ce   : > { %4658 = vmatprep.mubr.msk.bf16.mxu1 %vm538_vm0, %v4211_v4 }
 0x4cf   : > { %4384 = vmatmul.mubr.bf16.gmra.mrb[44].mxu1 %v4210_v58 }
 0x58a   : > { %v4361_v26 = vpop.f32.mrb[32].mxu1 }
 0x58b   : > { %v4362_v46 = vadd.f32 %v4642_v9, %v4361_v26  ;;  %v4363_v51 = vpop.f32.mrb[33].mxu1 }
 0x58c   : > { %v4364_v30 = vpop.f32.mrb[34].mxu1 }
 0x58d   : > { %4392 = vst [vmem:[%s7885_s6] sm:$0xff] %v4362_v46  ;;  %v4365_v43 = vadd.f32 %v4642_v9, %v4364_v30  ;;  %v4366_v2 = vpop.f32.mrb[35].mxu1 }
 0x58f   : > { %4393 = vst [vmem:[%s7885_s6 + $0x8] sm:$0xff] %v4365_v43 }
 0x592   : > { %v4369_v56 = vpop.f32.mrb[36].mxu1 }
 0x593   : > { %v4370_v45 = vadd.f32 %v4642_v9, %v4369_v56  ;;  %v4371_v1 = vpop.f32.mrb[37].mxu1 }
 0x594   : > { %v4372_v41 = vpop.f32.mrb[38].mxu1 }
 0x595   : > { %4394 = vst [vmem:[%s7885_s6 + $0x10] sm:$0xff] %v4370_v45  ;;  %v4373_v27 = vadd.f32 %v4642_v9, %v4372_v41  ;;  %v4374_v57 = vpop.f32.mrb[39].mxu1 }
 0x597   : > { %4395 = vst [vmem:[%s7885_s6 + $0x18] sm:$0xff] %v4373_v27 }
 0x59a   : > { %v4377_v3 = vpop.f32.mrb[40].mxu1 }
 0x59b   : > { %v4378_v23 = vadd.f32 %v4642_v9, %v4377_v3  ;;  %v4379_v55 = vpop.f32.mrb[41].mxu1 }
 0x59c   : > { %v4380_v18 = vpop.f32.mrb[42].mxu1 }
 0x59d   : > { %4396 = vst [vmem:[%s7885_s6 + $0x20] sm:$0xff] %v4378_v23  ;;  %v4381_v15 = vadd.f32 %v4642_v9, %v4380_v18  ;;  %v4382_v33 = vpop.f32.mrb[43].mxu1 }
 0x59f   : > { %4397 = vst [vmem:[%s7885_s6 + $0x28] sm:$0xff] %v4381_v15 }
 0x5a2   : > { %v4385_v10 = vpop.f32.mrb[44].mxu1 }
 0x5a3   : > { %v4386_v29 = vadd.f32 %v4642_v9, %v4385_v10  ;;  %v4387_v49 = vpop.f32.mrb[45].mxu1 }
 0x5a4   : > { %v4388_v54 = vpop.f32.mrb[46].mxu1 }
 0x5a5   : > { %4398 = vst [vmem:[%s7885_s6 + $0x30] sm:$0xff] %v4386_v29  ;;  %v4389_v63 = vadd.f32 %v4642_v9, %v4388_v54  ;;  %v4390_v60 = vpop.f32.mrb[47].mxu1 }
 0x5a7   : > { %4399 = vst [vmem:[%s7885_s6 + $0x38] sm:$0xff] %v4389_v63 }
 0x5a8   : > { %5230 = shalt.err (!%p5227_p9)
}
 0x5a9   : > { %s5231_s30 = scalar_lea.hbm %s7900_s24, 1024  ;;  %s5235_s14 = scalar_lea.hbm %s8133_s28, 2048 }
 0x5aa   : > { %p5232_p4 = scmp.ne.s32.totalorder %s7900_s24, %s5231_s30  ;;  %p5236_p5 = scmp.lt.u32.totalorder %s7900_s24, %s8133_s28 }
 0x5ab   : > { %p5237_p2 = scmp.lt.u32.totalorder %s5235_s14, %s5231_s30  ;;  %p5239_p10 = scmp.lt.u32.totalorder %s5231_s30, %s7900_s24 }
 0x5ac   : > { %p5233_p3 = pnand %p5232_p4, %p8134_p1 }
 0x5ad   : > { %p5238_p7 = por %p5237_p2, %p5236_p5 }
 0x5ae   : > { %p5234_p0 = pneg %p5233_p3 }
 0x5af   : > { %p5240_p11 = por %p5239_p10, %p5238_p7 }
 0x5b1   : > { %p5241_p12 = pnand %p5240_p11, %p5234_p0 }
 0x5b3   : > { %5244 = shalt.err (!%p5241_p12)
}
 0x5b4   : > { %s5316_s23 = smov 128   ;;  %s5317_s1 = smov 8  }
 0x5b5   : > { %4828 = dma.vmem_to_hbm [thread:$0]  (%p8134_p1), %s7895_s27, 1024, %s7900_s24, %s4401_s11, %s5316_s23, %s5316_s23, %s5317_s1  }
 0x5b6 PF: > { %s4429_s25 = sand.u32 1, %s5287_s17   ;;  %p8135_p13 = scmp.ne.s32.totalorder %s8036_s22, 0 }
 0x5b7   : > { %p8136_p8 = scmp.ge.s32.totalorder %s5299_s20, 2  ;;  %s4430_s30 = scalar_lea.sflag [#allocation6], %s4429_s25 }
 0x5b9   : > { %p4857_p6 = pnand %p8136_p8, %p8135_p13 }
 0x5bb   : > { %5282 = dma.done.wait (!%p4857_p6), %s4430_s30, 1024  }
 0x5bc   : > { %5284 = vsyncadd (!%p4857_p6), %s4430_s30, 4294966272  ;;  %p28_p9 = scmp.ge.s32.totalorder %s5586_s16, 4   ;;  %s8137_s17 = smov %s5291_s18 }
 0x5bd   : > { %s8138_s18 = smov %s5295_s19  ;;  %s8139_s19 = smov %s5598_s15 }
 0x5be   : > { %s8140_s20 = smov %s5586_s16  ;;  %30 = sbr.rel (!%p28_p9) target bundleno = 15 (0xf), region = 141 }
 0x5c5   :  { %4435 = vsyncpa [#allocation5], 1 }
 0x5c6   :  { %4437 = vsyncpa [#allocation5 + $0x1], 1 }
 0x5c7   :  { %4438 = vsyncpa [#allocation8], 1 }
 0x5c8   :  { %4439 = vsyncpa [#allocation11], 1 }
 0x5c9   :  { %4440 = vsyncpa [#allocation14], 1 }
 0x5ca   :  { %4441 = vsyncpa [#allocation17], 1 }
 0x5cb   :  { %4442 = vsyncpa [#allocation6], 1 }
 0x5cc   :  { %4444 = vsyncpa [#allocation6 + $0x1], 1 }

</bundles_post_ra>
